<compile_context>
chip_gen: v6e
topology: v6e:2x2x1
jax: 0.10.0
libtpu: 0.0.40
codegen_flags: <defaults>
</compile_context>

<pallas_src>
import math

import jax
import jax.numpy as jnp
from jax import lax
from jax.experimental import pallas as pl
from jax.experimental.pallas import tpu as pltpu

# ------------- scaled-down config (module defaults: in=512, d_model=768, groups=16, heads=4, layers=3) -------------
B, T = 2, 16          # batch, sequence length
BT = B * T
C_IN = 32             # in_channels
D = 64                # d_model
G = 4                 # num_groups for the positional grouped conv (divides D)
H = 4                 # n_heads
DH = D // H           # head dim
N_ENC = 3             # n_encoder
FF = 4 * D            # feed-forward width
K = 5                 # positional conv kernel size (odd -> 'same' padding)
PAD = K // 2
EPS = 1e-5            # LayerNorm eps (PyTorch default)

_BF16 = jnp.bfloat16
_F32 = jnp.float32


def _ln(y, g, b):
    """LayerNorm over the last dim, stats in f32."""
    mu = jnp.mean(y, axis=-1, keepdims=True)
    var = jnp.mean((y - mu) ** 2, axis=-1, keepdims=True)
    return ((y - mu) * lax.rsqrt(var + EPS)) * g + b


def _erf(x):
    """Abramowitz & Stegun 7.1.26 erf (max abs err 1.5e-7) -- VPU/EUP-only ops."""
    p = 0.3275911
    a1, a2, a3, a4, a5 = 0.254829592, -0.284496736, 1.421413741, -1.453152027, 1.061405429
    z = jnp.abs(x)
    t = 1.0 / (1.0 + p * z)
    poly = ((((a5 * t + a4) * t + a3) * t + a2) * t + a1) * t
    e = 1.0 - poly * jnp.exp(-z * z)
    return jnp.where(x >= 0, e, -e)


def _gelu_exact(x):
    """PyTorch nn.GELU default (exact erf form)."""
    return 0.5 * x * (1.0 + _erf(x * (1.0 / math.sqrt(2.0))))


# ====================== single fused Pallas kernel ======================

def _context_kernel(
    x_ref,
    fp_g_ref, fp_bt_ref, fp_w_ref, fp_b_ref,
    pe_w_ref, pe_mask_ref, pe_b_ref,
    wqkv_ref, bqkv_ref, wo_ref, bo_ref,
    ln1_g_ref, ln1_b_ref,
    w1_ref, b1_ref, w2_ref, b2_ref, ln2_g_ref, ln2_b_ref,
    o_ref,
):
    """Whole Context.forward for the full (folded) batch, fused in one kernel invocation."""
    # ---------------- FeatureProjection: LayerNorm(C_IN) -> Linear(C_IN, D) ----------------
    # Rows are folded over batch: (B*T, C_IN) -> (B*T, D).  Dropout = identity (inference).
    xn = _ln(x_ref[...], fp_g_ref[...], fp_bt_ref[...])
    x = jnp.dot(xn.astype(_BF16), fp_w_ref[...],
                preferred_element_type=_F32) + fp_b_ref[...]           # (BT, D) f32

    # ---------- PositionalEncoding: x + GELU(grouped_conv1d(x, K, groups=G, 'same')) ----------
    # K shifted views via sublane roll (XLU slot, effectively free) + a precomputed
    # validity mask (zeros the out-of-sequence rows, also prevents cross-batch leakage),
    # lane-concatenated into (BT, K*D) -> ONE contraction-(K*D) MXU push.
    taps = []
    for k in range(K):                                                 # static unrolled taps
        off = k - PAD
        taps.append(x if off == 0 else pltpu.roll(x, shift=(-off) % BT, axis=0))
    xk = (jnp.concatenate(taps, axis=1) * pe_mask_ref[...]).astype(_BF16)   # (BT, K*D)
    conv = jnp.dot(xk, pe_w_ref[...], preferred_element_type=_F32) + pe_b_ref[...]
    x = x + _gelu_exact(conv)

    # ------------- Transformer: N_ENC post-norm encoder layers (MHA + ReLU FFN) -------------
    scale = 1.0 / math.sqrt(DH)
    # TODO(synk): at the real 12-layer / T>=512 config, switch the layer loop to
    # lax.fori_loop over a stacked-weight grid axis and tile attention/FFN over T.
    for l in range(N_ENC):                                             # static unrolled layers
        xb = x.astype(_BF16)
        # Packed QKV: one (BT, D) x (D, 3D) MXU push per layer; per-head tiles are
        # static lane slices of the packed result.
        qkv = jnp.dot(xb, wqkv_ref[l], preferred_element_type=_F32) + bqkv_ref[l]  # (BT, 3D)

        ctx_rows = []
        for b in range(B):                                             # attention is per-sequence
            r0 = b * T
            ctx_heads = []
            for h in range(H):
                q = qkv[r0:r0 + T, h * DH:(h + 1) * DH] * scale
                kk = qkv[r0:r0 + T, D + h * DH:D + (h + 1) * DH]
                v = qkv[r0:r0 + T, 2 * D + h * DH:2 * D + (h + 1) * DH]
                s = lax.dot_general(q.astype(_BF16), kk.astype(_BF16),
                                    (((1,), (1,)), ((), ())),
                                    preferred_element_type=_F32)       # (T, T)
                s = s - jnp.max(s, axis=-1, keepdims=True)
                p = jnp.exp(s)
                p = p / jnp.sum(p, axis=-1, keepdims=True)             # exact divide
                ctx_heads.append(jnp.dot(p.astype(_BF16), v.astype(_BF16),
                                         preferred_element_type=_F32))  # (T, DH)
            ctx_rows.append(jnp.concatenate(ctx_heads, axis=1))        # (T, D) lane concat
        ctx = jnp.concatenate(ctx_rows, axis=0)                        # (BT, D)
        # Single fused output projection: contraction D instead of H shallow DH pushes.
        attn = jnp.dot(ctx.astype(_BF16), wo_ref[l],
                       preferred_element_type=_F32) + bo_ref[l]
        x = _ln(x + attn, ln1_g_ref[l], ln1_b_ref[l])

        h1 = jnp.dot(x.astype(_BF16), w1_ref[l], preferred_element_type=_F32) + b1_ref[l]
        h1 = jnp.maximum(h1, 0.0)
        f = jnp.dot(h1.astype(_BF16), w2_ref[l], preferred_element_type=_F32) + b2_ref[l]
        x = _ln(x + f, ln2_g_ref[l], ln2_b_ref[l])

    # Lane-dense store: (BT, D) with D on the lane axis.  The module's permute(0, 2, 1)
    # is applied as a layout choice in the wrapper (T=16 lanes would make every store a
    # masked vst.msk and burn XLU transposes).
    o_ref[...] = x


# ====================== pallas_call wrapper ======================

_WEIGHT_ORDER = (
    "fp_ln_g", "fp_ln_b", "fp_w", "fp_b",
    "pe_w", "pe_mask", "pe_b",
    "wqkv", "bqkv", "wo", "bo",
    "ln1_g", "ln1_b", "w1", "b1", "w2", "b2", "ln2_g", "ln2_b",
)


@jax.jit
def context_forward(x, params):
    """Full Context.forward.  x: (B, T, C_IN) f32 -> (B, D, T) f32."""
    weights = [params[name] for name in _WEIGHT_ORDER]
    x2 = x.reshape(BT, C_IN)
    vmem = pl.BlockSpec(memory_space=pltpu.MemorySpace.VMEM)   # whole array resident in VMEM
    out = pl.pallas_call(
        _context_kernel,
        out_shape=jax.ShapeDtypeStruct((BT, D), _F32),
        in_specs=[vmem] * (1 + len(weights)),
        out_specs=vmem,
        compiler_params=pltpu.CompilerParams(vmem_limit_bytes=32 * 1024 * 1024),
    )(x2, *weights)
    # permute(0, 2, 1) of the module: done outside the kernel so the in-kernel store stays
    # lane-dense (at real T >= 128 the transpose could be fused back into the kernel).
    return out.reshape(B, T, D).transpose(0, 2, 1)


# ====================== deterministic parameter init ======================

def init_params(key):
    ks = iter(jax.random.split(key, 32))

    def nrm(shape, s=0.02):
        return (s * jax.random.normal(next(ks), shape)).astype(_F32)

    cg = D // G
    # Grouped Conv1d(D, D, K, groups=G) folded into a single (K*D, D) contraction:
    # row (k*D + g*cg + i) -> column (g*cg + j) carries tap k of group g (zero across groups).
    # TODO(synk): at the real groups=16 a per-group batched contraction would avoid the
    # structural zeros entirely; kept as one dense deep contraction here (reviewer option b).
    w_grp = nrm((K, G, cg, cg))
    w_full = jnp.zeros((K, D, D), _F32)
    for g in range(G):
        w_full = w_full.at[:, g * cg:(g + 1) * cg, g * cg:(g + 1) * cg].set(w_grp[:, g])
    pe_w = w_full.reshape(K * D, D).astype(_BF16)

    # Constant 'same'-padding validity mask for the K shifted views (not a learned weight):
    # mask[r, k*D + c] = 1 iff (r mod T) + (k - PAD) lands inside the sequence.
    t_idx = jnp.arange(BT) % T                                   # position within each sequence
    k_off = jnp.arange(K) - PAD
    valid = (t_idx[:, None] + k_off[None, :] >= 0) & (t_idx[:, None] + k_off[None, :] < T)
    pe_mask = jnp.broadcast_to(valid[:, :, None], (BT, K, D)).reshape(BT, K * D).astype(_F32)

    wq = nrm((N_ENC, D, D))
    wk = nrm((N_ENC, D, D))
    wv = nrm((N_ENC, D, D))

    p = {
        # FeatureProjection: LayerNorm(C_IN) + Linear(C_IN, D)  (dropout = identity, inference)
        "fp_ln_g": jnp.ones((1, C_IN), _F32),
        "fp_ln_b": jnp.zeros((1, C_IN), _F32),
        "fp_w": nrm((C_IN, D)).astype(_BF16),
        "fp_b": jnp.zeros((1, D), _F32),
        # PositionalEncoding grouped conv (single deep contraction) + bias + mask constant
        "pe_w": pe_w,
        "pe_mask": pe_mask,
        "pe_b": jnp.zeros((1, D), _F32),
        # Transformer: packed QKV (columns = [Q heads | K heads | V heads]) + fused O-proj
        "wqkv": jnp.concatenate([wq, wk, wv], axis=-1).astype(_BF16),   # (L, D, 3D)
        "bqkv": jnp.zeros((N_ENC, 1, 3 * D), _F32),
        "wo": nrm((N_ENC, D, D)).astype(_BF16),
        "bo": jnp.zeros((N_ENC, 1, D), _F32),
        "ln1_g": jnp.ones((N_ENC, 1, D), _F32),
        "ln1_b": jnp.zeros((N_ENC, 1, D), _F32),
        "w1": nrm((N_ENC, D, FF)).astype(_BF16),
        "b1": jnp.zeros((N_ENC, 1, FF), _F32),
        "w2": nrm((N_ENC, FF, D)).astype(_BF16),
        "b2": jnp.zeros((N_ENC, 1, D), _F32),
        "ln2_g": jnp.ones((N_ENC, 1, D), _F32),
        "ln2_b": jnp.zeros((N_ENC, 1, D), _F32),
    }
    return p


if __name__ == "__main__":
    key = jax.random.PRNGKey(0)
    pkey, xkey = jax.random.split(key)
    params = init_params(pkey)
    # TODO(synk): dropout layers are identity (inference mode); train-mode dropout not implemented.
    x = jax.random.normal(xkey, (B, T, C_IN), dtype=jnp.float32)
    out = jax.block_until_ready(context_forward(x, params))
    assert out.shape == (B, D, T), out.shape
    assert bool(jnp.all(jnp.isfinite(out)))
    print("KERNEL_OK")
</pallas_src>

<mosaic_0001>
module attributes {stable_mosaic.version = 11 : i64} {
  func.func @_context_kernel(%arg0: memref<32x32xf32, #tpu.memory_space<vmem>>, %arg1: memref<1x32xf32, #tpu.memory_space<vmem>>, %arg2: memref<1x32xf32, #tpu.memory_space<vmem>>, %arg3: memref<32x64xbf16, #tpu.memory_space<vmem>>, %arg4: memref<1x64xf32, #tpu.memory_space<vmem>>, %arg5: memref<320x64xbf16, #tpu.memory_space<vmem>>, %arg6: memref<32x320xf32, #tpu.memory_space<vmem>>, %arg7: memref<1x64xf32, #tpu.memory_space<vmem>>, %arg8: memref<3x64x192xbf16, #tpu.memory_space<vmem>>, %arg9: memref<3x1x192xf32, #tpu.memory_space<vmem>>, %arg10: memref<3x64x64xbf16, #tpu.memory_space<vmem>>, %arg11: memref<3x1x64xf32, #tpu.memory_space<vmem>>, %arg12: memref<3x1x64xf32, #tpu.memory_space<vmem>>, %arg13: memref<3x1x64xf32, #tpu.memory_space<vmem>>, %arg14: memref<3x64x256xbf16, #tpu.memory_space<vmem>>, %arg15: memref<3x1x256xf32, #tpu.memory_space<vmem>>, %arg16: memref<3x256x64xbf16, #tpu.memory_space<vmem>>, %arg17: memref<3x1x64xf32, #tpu.memory_space<vmem>>, %arg18: memref<3x1x64xf32, #tpu.memory_space<vmem>>, %arg19: memref<3x1x64xf32, #tpu.memory_space<vmem>>, %arg20: memref<32x64xf32, #tpu.memory_space<vmem>>) attributes {dimension_semantics = [], scalar_prefetch = 0 : i64, scratch_operands = 0 : i64, tpu.core_type = #tpu.core_type<tc>} {
    %c0 = arith.constant 0 : index
    %c0_0 = arith.constant 0 : index
    %0 = vector.load %arg0[%c0, %c0_0] : memref<32x32xf32, #tpu.memory_space<vmem>>, vector<32x32xf32>
    %c0_1 = arith.constant 0 : index
    %c0_2 = arith.constant 0 : index
    %1 = vector.load %arg1[%c0_1, %c0_2] : memref<1x32xf32, #tpu.memory_space<vmem>>, vector<1x32xf32>
    %c0_3 = arith.constant 0 : index
    %c0_4 = arith.constant 0 : index
    %2 = vector.load %arg2[%c0_3, %c0_4] : memref<1x32xf32, #tpu.memory_space<vmem>>, vector<1x32xf32>
    %cst = arith.constant dense<0.000000e+00> : vector<32xf32>
    %3 = vector.multi_reduction <add>, %0, %cst [1] : vector<32x32xf32> to vector<32xf32>
    %4 = vector.shape_cast %3 : vector<32xf32> to vector<32x1xf32>
    %cst_5 = arith.constant 3.200000e+01 : f32
    %5 = vector.broadcast %cst_5 : f32 to vector<32x1xf32>
    %6 = arith.divf %4, %5 : vector<32x1xf32>
    %7 = vector.broadcast %6 : vector<32x1xf32> to vector<32x32xf32>
    %8 = arith.subf %0, %7 : vector<32x32xf32>
    %9 = arith.mulf %8, %8 : vector<32x32xf32>
    %cst_6 = arith.constant dense<0.000000e+00> : vector<32xf32>
    %10 = vector.multi_reduction <add>, %9, %cst_6 [1] : vector<32x32xf32> to vector<32xf32>
    %11 = vector.shape_cast %10 : vector<32xf32> to vector<32x1xf32>
    %cst_7 = arith.constant 3.200000e+01 : f32
    %12 = vector.broadcast %cst_7 : f32 to vector<32x1xf32>
    %13 = arith.divf %11, %12 : vector<32x1xf32>
    %14 = vector.broadcast %6 : vector<32x1xf32> to vector<32x32xf32>
    %15 = arith.subf %0, %14 : vector<32x32xf32>
    %cst_8 = arith.constant 9.99999974E-6 : f32
    %16 = vector.broadcast %cst_8 : f32 to vector<32x1xf32>
    %17 = arith.addf %13, %16 : vector<32x1xf32>
    %18 = math.rsqrt %17 : vector<32x1xf32>
    %19 = vector.broadcast %18 : vector<32x1xf32> to vector<32x32xf32>
    %20 = arith.mulf %15, %19 : vector<32x32xf32>
    %21 = vector.broadcast %1 : vector<1x32xf32> to vector<32x32xf32>
    %22 = arith.mulf %20, %21 : vector<32x32xf32>
    %23 = vector.broadcast %2 : vector<1x32xf32> to vector<32x32xf32>
    %24 = arith.addf %22, %23 : vector<32x32xf32>
    %25 = arith.truncf %24 : vector<32x32xf32> to vector<32x32xbf16>
    %c0_9 = arith.constant 0 : index
    %c0_10 = arith.constant 0 : index
    %26 = vector.load %arg3[%c0_9, %c0_10] : memref<32x64xbf16, #tpu.memory_space<vmem>>, vector<32x64xbf16>
    %cst_11 = arith.constant dense<0.000000e+00> : vector<32x64xf32>
    %27 = tpu.matmul %25, %26, %cst_11 {dimension_numbers = #tpu.dot_dimension_numbers<[1], [0], [0], [1], [0, 0, 1, 1], [], []>} : vector<32x32xbf16>, vector<32x64xbf16>, vector<32x64xf32> -> vector<32x64xf32>
    %c0_12 = arith.constant 0 : index
    %c0_13 = arith.constant 0 : index
    %28 = vector.load %arg4[%c0_12, %c0_13] : memref<1x64xf32, #tpu.memory_space<vmem>>, vector<1x64xf32>
    %29 = vector.broadcast %28 : vector<1x64xf32> to vector<32x64xf32>
    %30 = arith.addf %27, %29 : vector<32x64xf32>
    %c2_i32 = arith.constant 2 : i32
    %31 = tpu.dynamic_rotate %30 by %c2_i32 dim 0 : vector<32x64xf32>, i32 -> vector<32x64xf32>
    %c1_i32 = arith.constant 1 : i32
    %32 = tpu.dynamic_rotate %30 by %c1_i32 dim 0 : vector<32x64xf32>, i32 -> vector<32x64xf32>
    %c31_i32 = arith.constant 31 : i32
    %33 = tpu.dynamic_rotate %30 by %c31_i32 dim 0 : vector<32x64xf32>, i32 -> vector<32x64xf32>
    %c30_i32 = arith.constant 30 : i32
    %34 = tpu.dynamic_rotate %30 by %c30_i32 dim 0 : vector<32x64xf32>, i32 -> vector<32x64xf32>
    %35 = tpu.concatenate %31, %32, %30, %33, %34 in 1 : vector<32x64xf32>, vector<32x64xf32>, vector<32x64xf32>, vector<32x64xf32>, vector<32x64xf32> -> vector<32x320xf32>
    %c0_14 = arith.constant 0 : index
    %c0_15 = arith.constant 0 : index
    %36 = vector.load %arg6[%c0_14, %c0_15] : memref<32x320xf32, #tpu.memory_space<vmem>>, vector<32x320xf32>
    %37 = arith.mulf %35, %36 : vector<32x320xf32>
    %38 = arith.truncf %37 : vector<32x320xf32> to vector<32x320xbf16>
    %c0_16 = arith.constant 0 : index
    %c0_17 = arith.constant 0 : index
    %39 = vector.load %arg5[%c0_16, %c0_17] : memref<320x64xbf16, #tpu.memory_space<vmem>>, vector<320x64xbf16>
    %cst_18 = arith.constant dense<0.000000e+00> : vector<32x64xf32>
    %40 = tpu.matmul %38, %39, %cst_18 {dimension_numbers = #tpu.dot_dimension_numbers<[1], [0], [0], [1], [0, 0, 1, 1], [], []>} : vector<32x320xbf16>, vector<320x64xbf16>, vector<32x64xf32> -> vector<32x64xf32>
    %c0_19 = arith.constant 0 : index
    %c0_20 = arith.constant 0 : index
    %41 = vector.load %arg7[%c0_19, %c0_20] : memref<1x64xf32, #tpu.memory_space<vmem>>, vector<1x64xf32>
    %42 = vector.broadcast %41 : vector<1x64xf32> to vector<32x64xf32>
    %43 = arith.addf %40, %42 : vector<32x64xf32>
    %cst_21 = arith.constant 5.000000e-01 : f32
    %44 = vector.broadcast %cst_21 : f32 to vector<32x64xf32>
    %45 = arith.mulf %44, %43 : vector<32x64xf32>
    %cst_22 = arith.constant 0.707106769 : f32
    %46 = vector.broadcast %cst_22 : f32 to vector<32x64xf32>
    %47 = arith.mulf %43, %46 : vector<32x64xf32>
    %48 = math.absf %47 : vector<32x64xf32>
    %cst_23 = arith.constant 0.327591091 : f32
    %49 = vector.broadcast %cst_23 : f32 to vector<32x64xf32>
    %50 = arith.mulf %49, %48 : vector<32x64xf32>
    %cst_24 = arith.constant 1.000000e+00 : f32
    %51 = vector.broadcast %cst_24 : f32 to vector<32x64xf32>
    %52 = arith.addf %51, %50 : vector<32x64xf32>
    %cst_25 = arith.constant 1.000000e+00 : f32
    %53 = vector.broadcast %cst_25 : f32 to vector<32x64xf32>
    %54 = arith.divf %53, %52 : vector<32x64xf32>
    %cst_26 = arith.constant 1.06140542 : f32
    %55 = vector.broadcast %cst_26 : f32 to vector<32x64xf32>
    %56 = arith.mulf %55, %54 : vector<32x64xf32>
    %cst_27 = arith.constant -1.45315206 : f32
    %57 = vector.broadcast %cst_27 : f32 to vector<32x64xf32>
    %58 = arith.addf %56, %57 : vector<32x64xf32>
    %59 = arith.mulf %58, %54 : vector<32x64xf32>
    %cst_28 = arith.constant 1.42141378 : f32
    %60 = vector.broadcast %cst_28 : f32 to vector<32x64xf32>
    %61 = arith.addf %59, %60 : vector<32x64xf32>
    %62 = arith.mulf %61, %54 : vector<32x64xf32>
    %cst_29 = arith.constant -0.284496725 : f32
    %63 = vector.broadcast %cst_29 : f32 to vector<32x64xf32>
    %64 = arith.addf %62, %63 : vector<32x64xf32>
    %65 = arith.mulf %64, %54 : vector<32x64xf32>
    %cst_30 = arith.constant 0.254829586 : f32
    %66 = vector.broadcast %cst_30 : f32 to vector<32x64xf32>
    %67 = arith.addf %65, %66 : vector<32x64xf32>
    %68 = arith.mulf %67, %54 : vector<32x64xf32>
    %cst_31 = arith.constant 0.000000e+00 : f32
    %69 = vector.broadcast %cst_31 : f32 to vector<32x64xf32>
    %70 = arith.subf %69, %48 : vector<32x64xf32>
    %71 = arith.mulf %70, %48 : vector<32x64xf32>
    %72 = math.exp %71 : vector<32x64xf32>
    %73 = arith.mulf %68, %72 : vector<32x64xf32>
    %cst_32 = arith.constant 1.000000e+00 : f32
    %74 = vector.broadcast %cst_32 : f32 to vector<32x64xf32>
    %75 = arith.subf %74, %73 : vector<32x64xf32>
    %cst_33 = arith.constant 0.000000e+00 : f32
    %76 = vector.broadcast %cst_33 : f32 to vector<32x64xf32>
    %77 = arith.cmpf oge, %47, %76 : vector<32x64xf32>
    %cst_34 = arith.constant 0.000000e+00 : f32
    %78 = vector.broadcast %cst_34 : f32 to vector<32x64xf32>
    %79 = arith.subf %78, %75 : vector<32x64xf32>
    %80 = arith.select %77, %75, %79 : vector<32x64xi1>, vector<32x64xf32>
    %cst_35 = arith.constant 1.000000e+00 : f32
    %81 = vector.broadcast %cst_35 : f32 to vector<32x64xf32>
    %82 = arith.addf %81, %80 : vector<32x64xf32>
    %83 = arith.mulf %45, %82 : vector<32x64xf32>
    %84 = arith.addf %30, %83 : vector<32x64xf32>
    %85 = arith.truncf %84 : vector<32x64xf32> to vector<32x64xbf16>
    %c0_36 = arith.constant 0 : index
    %c0_37 = arith.constant 0 : index
    %c0_38 = arith.constant 0 : index
    %86 = vector.load %arg8[%c0_36, %c0_37, %c0_38] : memref<3x64x192xbf16, #tpu.memory_space<vmem>>, vector<1x64x192xbf16>
    %87 = vector.shape_cast %86 : vector<1x64x192xbf16> to vector<64x192xbf16>
    %cst_39 = arith.constant dense<0.000000e+00> : vector<32x192xf32>
    %88 = tpu.matmul %85, %87, %cst_39 {dimension_numbers = #tpu.dot_dimension_numbers<[1], [0], [0], [1], [0, 0, 1, 1], [], []>} : vector<32x64xbf16>, vector<64x192xbf16>, vector<32x192xf32> -> vector<32x192xf32>
    %c0_40 = arith.constant 0 : index
    %c0_41 = arith.constant 0 : index
    %c0_42 = arith.constant 0 : index
    %89 = vector.load %arg9[%c0_40, %c0_41, %c0_42] : memref<3x1x192xf32, #tpu.memory_space<vmem>>, vector<1x1x192xf32>
    %90 = vector.shape_cast %89 : vector<1x1x192xf32> to vector<1x192xf32>
    %91 = vector.broadcast %90 : vector<1x192xf32> to vector<32x192xf32>
    %92 = arith.addf %88, %91 : vector<32x192xf32>
    %93 = vector.extract_strided_slice %92 {offsets = [0, 0], sizes = [16, 16], strides = [1, 1]} : vector<32x192xf32> to vector<16x16xf32>
    %cst_43 = arith.constant 2.500000e-01 : f32
    %94 = vector.broadcast %cst_43 : f32 to vector<16x16xf32>
    %95 = arith.mulf %93, %94 : vector<16x16xf32>
    %96 = vector.extract_strided_slice %92 {offsets = [0, 64], sizes = [16, 16], strides = [1, 1]} : vector<32x192xf32> to vector<16x16xf32>
    %97 = vector.extract_strided_slice %92 {offsets = [0, 128], sizes = [16, 16], strides = [1, 1]} : vector<32x192xf32> to vector<16x16xf32>
    %98 = arith.truncf %95 : vector<16x16xf32> to vector<16x16xbf16>
    %99 = arith.truncf %96 : vector<16x16xf32> to vector<16x16xbf16>
    %cst_44 = arith.constant dense<0.000000e+00> : vector<16x16xf32>
    %100 = tpu.matmul %98, %99, %cst_44 {dimension_numbers = #tpu.dot_dimension_numbers<[1], [1], [0], [0], [0, 0, 1, 0], [], []>} : vector<16x16xbf16>, vector<16x16xbf16>, vector<16x16xf32> -> vector<16x16xf32>
    %cst_45 = arith.constant dense<0xFF800000> : vector<16xf32>
    %101 = vector.multi_reduction <maximumf>, %100, %cst_45 [1] : vector<16x16xf32> to vector<16xf32>
    %102 = vector.shape_cast %101 : vector<16xf32> to vector<16x1xf32>
    %103 = vector.broadcast %102 : vector<16x1xf32> to vector<16x16xf32>
    %104 = arith.subf %100, %103 : vector<16x16xf32>
    %105 = math.exp %104 : vector<16x16xf32>
    %cst_46 = arith.constant dense<0.000000e+00> : vector<16xf32>
    %106 = vector.multi_reduction <add>, %105, %cst_46 [1] : vector<16x16xf32> to vector<16xf32>
    %107 = vector.shape_cast %106 : vector<16xf32> to vector<16x1xf32>
    %108 = vector.broadcast %107 : vector<16x1xf32> to vector<16x16xf32>
    %109 = arith.divf %105, %108 : vector<16x16xf32>
    %110 = arith.truncf %109 : vector<16x16xf32> to vector<16x16xbf16>
    %111 = arith.truncf %97 : vector<16x16xf32> to vector<16x16xbf16>
    %cst_47 = arith.constant dense<0.000000e+00> : vector<16x16xf32>
    %112 = tpu.matmul %110, %111, %cst_47 {dimension_numbers = #tpu.dot_dimension_numbers<[1], [0], [0], [1], [0, 0, 1, 1], [], []>} : vector<16x16xbf16>, vector<16x16xbf16>, vector<16x16xf32> -> vector<16x16xf32>
    %113 = vector.extract_strided_slice %92 {offsets = [0, 16], sizes = [16, 16], strides = [1, 1]} : vector<32x192xf32> to vector<16x16xf32>
    %cst_48 = arith.constant 2.500000e-01 : f32
    %114 = vector.broadcast %cst_48 : f32 to vector<16x16xf32>
    %115 = arith.mulf %113, %114 : vector<16x16xf32>
    %116 = vector.extract_strided_slice %92 {offsets = [0, 80], sizes = [16, 16], strides = [1, 1]} : vector<32x192xf32> to vector<16x16xf32>
    %117 = vector.extract_strided_slice %92 {offsets = [0, 144], sizes = [16, 16], strides = [1, 1]} : vector<32x192xf32> to vector<16x16xf32>
    %118 = arith.truncf %115 : vector<16x16xf32> to vector<16x16xbf16>
    %119 = arith.truncf %116 : vector<16x16xf32> to vector<16x16xbf16>
    %cst_49 = arith.constant dense<0.000000e+00> : vector<16x16xf32>
    %120 = tpu.matmul %118, %119, %cst_49 {dimension_numbers = #tpu.dot_dimension_numbers<[1], [1], [0], [0], [0, 0, 1, 0], [], []>} : vector<16x16xbf16>, vector<16x16xbf16>, vector<16x16xf32> -> vector<16x16xf32>
    %cst_50 = arith.constant dense<0xFF800000> : vector<16xf32>
    %121 = vector.multi_reduction <maximumf>, %120, %cst_50 [1] : vector<16x16xf32> to vector<16xf32>
    %122 = vector.shape_cast %121 : vector<16xf32> to vector<16x1xf32>
    %123 = vector.broadcast %122 : vector<16x1xf32> to vector<16x16xf32>
    %124 = arith.subf %120, %123 : vector<16x16xf32>
    %125 = math.exp %124 : vector<16x16xf32>
    %cst_51 = arith.constant dense<0.000000e+00> : vector<16xf32>
    %126 = vector.multi_reduction <add>, %125, %cst_51 [1] : vector<16x16xf32> to vector<16xf32>
    %127 = vector.shape_cast %126 : vector<16xf32> to vector<16x1xf32>
    %128 = vector.broadcast %127 : vector<16x1xf32> to vector<16x16xf32>
    %129 = arith.divf %125, %128 : vector<16x16xf32>
    %130 = arith.truncf %129 : vector<16x16xf32> to vector<16x16xbf16>
    %131 = arith.truncf %117 : vector<16x16xf32> to vector<16x16xbf16>
    %cst_52 = arith.constant dense<0.000000e+00> : vector<16x16xf32>
    %132 = tpu.matmul %130, %131, %cst_52 {dimension_numbers = #tpu.dot_dimension_numbers<[1], [0], [0], [1], [0, 0, 1, 1], [], []>} : vector<16x16xbf16>, vector<16x16xbf16>, vector<16x16xf32> -> vector<16x16xf32>
    %133 = vector.extract_strided_slice %92 {offsets = [0, 32], sizes = [16, 16], strides = [1, 1]} : vector<32x192xf32> to vector<16x16xf32>
    %cst_53 = arith.constant 2.500000e-01 : f32
    %134 = vector.broadcast %cst_53 : f32 to vector<16x16xf32>
    %135 = arith.mulf %133, %134 : vector<16x16xf32>
    %136 = vector.extract_strided_slice %92 {offsets = [0, 96], sizes = [16, 16], strides = [1, 1]} : vector<32x192xf32> to vector<16x16xf32>
    %137 = vector.extract_strided_slice %92 {offsets = [0, 160], sizes = [16, 16], strides = [1, 1]} : vector<32x192xf32> to vector<16x16xf32>
    %138 = arith.truncf %135 : vector<16x16xf32> to vector<16x16xbf16>
    %139 = arith.truncf %136 : vector<16x16xf32> to vector<16x16xbf16>
    %cst_54 = arith.constant dense<0.000000e+00> : vector<16x16xf32>
    %140 = tpu.matmul %138, %139, %cst_54 {dimension_numbers = #tpu.dot_dimension_numbers<[1], [1], [0], [0], [0, 0, 1, 0], [], []>} : vector<16x16xbf16>, vector<16x16xbf16>, vector<16x16xf32> -> vector<16x16xf32>
    %cst_55 = arith.constant dense<0xFF800000> : vector<16xf32>
    %141 = vector.multi_reduction <maximumf>, %140, %cst_55 [1] : vector<16x16xf32> to vector<16xf32>
    %142 = vector.shape_cast %141 : vector<16xf32> to vector<16x1xf32>
    %143 = vector.broadcast %142 : vector<16x1xf32> to vector<16x16xf32>
    %144 = arith.subf %140, %143 : vector<16x16xf32>
    %145 = math.exp %144 : vector<16x16xf32>
    %cst_56 = arith.constant dense<0.000000e+00> : vector<16xf32>
    %146 = vector.multi_reduction <add>, %145, %cst_56 [1] : vector<16x16xf32> to vector<16xf32>
    %147 = vector.shape_cast %146 : vector<16xf32> to vector<16x1xf32>
    %148 = vector.broadcast %147 : vector<16x1xf32> to vector<16x16xf32>
    %149 = arith.divf %145, %148 : vector<16x16xf32>
    %150 = arith.truncf %149 : vector<16x16xf32> to vector<16x16xbf16>
    %151 = arith.truncf %137 : vector<16x16xf32> to vector<16x16xbf16>
    %cst_57 = arith.constant dense<0.000000e+00> : vector<16x16xf32>
    %152 = tpu.matmul %150, %151, %cst_57 {dimension_numbers = #tpu.dot_dimension_numbers<[1], [0], [0], [1], [0, 0, 1, 1], [], []>} : vector<16x16xbf16>, vector<16x16xbf16>, vector<16x16xf32> -> vector<16x16xf32>
    %153 = vector.extract_strided_slice %92 {offsets = [0, 48], sizes = [16, 16], strides = [1, 1]} : vector<32x192xf32> to vector<16x16xf32>
    %cst_58 = arith.constant 2.500000e-01 : f32
    %154 = vector.broadcast %cst_58 : f32 to vector<16x16xf32>
    %155 = arith.mulf %153, %154 : vector<16x16xf32>
    %156 = vector.extract_strided_slice %92 {offsets = [0, 112], sizes = [16, 16], strides = [1, 1]} : vector<32x192xf32> to vector<16x16xf32>
    %157 = vector.extract_strided_slice %92 {offsets = [0, 176], sizes = [16, 16], strides = [1, 1]} : vector<32x192xf32> to vector<16x16xf32>
    %158 = arith.truncf %155 : vector<16x16xf32> to vector<16x16xbf16>
    %159 = arith.truncf %156 : vector<16x16xf32> to vector<16x16xbf16>
    %cst_59 = arith.constant dense<0.000000e+00> : vector<16x16xf32>
    %160 = tpu.matmul %158, %159, %cst_59 {dimension_numbers = #tpu.dot_dimension_numbers<[1], [1], [0], [0], [0, 0, 1, 0], [], []>} : vector<16x16xbf16>, vector<16x16xbf16>, vector<16x16xf32> -> vector<16x16xf32>
    %cst_60 = arith.constant dense<0xFF800000> : vector<16xf32>
    %161 = vector.multi_reduction <maximumf>, %160, %cst_60 [1] : vector<16x16xf32> to vector<16xf32>
    %162 = vector.shape_cast %161 : vector<16xf32> to vector<16x1xf32>
    %163 = vector.broadcast %162 : vector<16x1xf32> to vector<16x16xf32>
    %164 = arith.subf %160, %163 : vector<16x16xf32>
    %165 = math.exp %164 : vector<16x16xf32>
    %cst_61 = arith.constant dense<0.000000e+00> : vector<16xf32>
    %166 = vector.multi_reduction <add>, %165, %cst_61 [1] : vector<16x16xf32> to vector<16xf32>
    %167 = vector.shape_cast %166 : vector<16xf32> to vector<16x1xf32>
    %168 = vector.broadcast %167 : vector<16x1xf32> to vector<16x16xf32>
    %169 = arith.divf %165, %168 : vector<16x16xf32>
    %170 = arith.truncf %169 : vector<16x16xf32> to vector<16x16xbf16>
    %171 = arith.truncf %157 : vector<16x16xf32> to vector<16x16xbf16>
    %cst_62 = arith.constant dense<0.000000e+00> : vector<16x16xf32>
    %172 = tpu.matmul %170, %171, %cst_62 {dimension_numbers = #tpu.dot_dimension_numbers<[1], [0], [0], [1], [0, 0, 1, 1], [], []>} : vector<16x16xbf16>, vector<16x16xbf16>, vector<16x16xf32> -> vector<16x16xf32>
    %173 = tpu.concatenate %112, %132, %152, %172 in 1 : vector<16x16xf32>, vector<16x16xf32>, vector<16x16xf32>, vector<16x16xf32> -> vector<16x64xf32>
    %174 = vector.extract_strided_slice %92 {offsets = [16, 0], sizes = [16, 16], strides = [1, 1]} : vector<32x192xf32> to vector<16x16xf32>
    %cst_63 = arith.constant 2.500000e-01 : f32
    %175 = vector.broadcast %cst_63 : f32 to vector<16x16xf32>
    %176 = arith.mulf %174, %175 : vector<16x16xf32>
    %177 = vector.extract_strided_slice %92 {offsets = [16, 64], sizes = [16, 16], strides = [1, 1]} : vector<32x192xf32> to vector<16x16xf32>
    %178 = vector.extract_strided_slice %92 {offsets = [16, 128], sizes = [16, 16], strides = [1, 1]} : vector<32x192xf32> to vector<16x16xf32>
    %179 = arith.truncf %176 : vector<16x16xf32> to vector<16x16xbf16>
    %180 = arith.truncf %177 : vector<16x16xf32> to vector<16x16xbf16>
    %cst_64 = arith.constant dense<0.000000e+00> : vector<16x16xf32>
    %181 = tpu.matmul %179, %180, %cst_64 {dimension_numbers = #tpu.dot_dimension_numbers<[1], [1], [0], [0], [0, 0, 1, 0], [], []>} : vector<16x16xbf16>, vector<16x16xbf16>, vector<16x16xf32> -> vector<16x16xf32>
    %cst_65 = arith.constant dense<0xFF800000> : vector<16xf32>
    %182 = vector.multi_reduction <maximumf>, %181, %cst_65 [1] : vector<16x16xf32> to vector<16xf32>
    %183 = vector.shape_cast %182 : vector<16xf32> to vector<16x1xf32>
    %184 = vector.broadcast %183 : vector<16x1xf32> to vector<16x16xf32>
    %185 = arith.subf %181, %184 : vector<16x16xf32>
    %186 = math.exp %185 : vector<16x16xf32>
    %cst_66 = arith.constant dense<0.000000e+00> : vector<16xf32>
    %187 = vector.multi_reduction <add>, %186, %cst_66 [1] : vector<16x16xf32> to vector<16xf32>
    %188 = vector.shape_cast %187 : vector<16xf32> to vector<16x1xf32>
    %189 = vector.broadcast %188 : vector<16x1xf32> to vector<16x16xf32>
    %190 = arith.divf %186, %189 : vector<16x16xf32>
    %191 = arith.truncf %190 : vector<16x16xf32> to vector<16x16xbf16>
    %192 = arith.truncf %178 : vector<16x16xf32> to vector<16x16xbf16>
    %cst_67 = arith.constant dense<0.000000e+00> : vector<16x16xf32>
    %193 = tpu.matmul %191, %192, %cst_67 {dimension_numbers = #tpu.dot_dimension_numbers<[1], [0], [0], [1], [0, 0, 1, 1], [], []>} : vector<16x16xbf16>, vector<16x16xbf16>, vector<16x16xf32> -> vector<16x16xf32>
    %194 = vector.extract_strided_slice %92 {offsets = [16, 16], sizes = [16, 16], strides = [1, 1]} : vector<32x192xf32> to vector<16x16xf32>
    %cst_68 = arith.constant 2.500000e-01 : f32
    %195 = vector.broadcast %cst_68 : f32 to vector<16x16xf32>
    %196 = arith.mulf %194, %195 : vector<16x16xf32>
    %197 = vector.extract_strided_slice %92 {offsets = [16, 80], sizes = [16, 16], strides = [1, 1]} : vector<32x192xf32> to vector<16x16xf32>
    %198 = vector.extract_strided_slice %92 {offsets = [16, 144], sizes = [16, 16], strides = [1, 1]} : vector<32x192xf32> to vector<16x16xf32>
    %199 = arith.truncf %196 : vector<16x16xf32> to vector<16x16xbf16>
    %200 = arith.truncf %197 : vector<16x16xf32> to vector<16x16xbf16>
    %cst_69 = arith.constant dense<0.000000e+00> : vector<16x16xf32>
    %201 = tpu.matmul %199, %200, %cst_69 {dimension_numbers = #tpu.dot_dimension_numbers<[1], [1], [0], [0], [0, 0, 1, 0], [], []>} : vector<16x16xbf16>, vector<16x16xbf16>, vector<16x16xf32> -> vector<16x16xf32>
    %cst_70 = arith.constant dense<0xFF800000> : vector<16xf32>
    %202 = vector.multi_reduction <maximumf>, %201, %cst_70 [1] : vector<16x16xf32> to vector<16xf32>
    %203 = vector.shape_cast %202 : vector<16xf32> to vector<16x1xf32>
    %204 = vector.broadcast %203 : vector<16x1xf32> to vector<16x16xf32>
    %205 = arith.subf %201, %204 : vector<16x16xf32>
    %206 = math.exp %205 : vector<16x16xf32>
    %cst_71 = arith.constant dense<0.000000e+00> : vector<16xf32>
    %207 = vector.multi_reduction <add>, %206, %cst_71 [1] : vector<16x16xf32> to vector<16xf32>
    %208 = vector.shape_cast %207 : vector<16xf32> to vector<16x1xf32>
    %209 = vector.broadcast %208 : vector<16x1xf32> to vector<16x16xf32>
    %210 = arith.divf %206, %209 : vector<16x16xf32>
    %211 = arith.truncf %210 : vector<16x16xf32> to vector<16x16xbf16>
    %212 = arith.truncf %198 : vector<16x16xf32> to vector<16x16xbf16>
    %cst_72 = arith.constant dense<0.000000e+00> : vector<16x16xf32>
    %213 = tpu.matmul %211, %212, %cst_72 {dimension_numbers = #tpu.dot_dimension_numbers<[1], [0], [0], [1], [0, 0, 1, 1], [], []>} : vector<16x16xbf16>, vector<16x16xbf16>, vector<16x16xf32> -> vector<16x16xf32>
    %214 = vector.extract_strided_slice %92 {offsets = [16, 32], sizes = [16, 16], strides = [1, 1]} : vector<32x192xf32> to vector<16x16xf32>
    %cst_73 = arith.constant 2.500000e-01 : f32
    %215 = vector.broadcast %cst_73 : f32 to vector<16x16xf32>
    %216 = arith.mulf %214, %215 : vector<16x16xf32>
    %217 = vector.extract_strided_slice %92 {offsets = [16, 96], sizes = [16, 16], strides = [1, 1]} : vector<32x192xf32> to vector<16x16xf32>
    %218 = vector.extract_strided_slice %92 {offsets = [16, 160], sizes = [16, 16], strides = [1, 1]} : vector<32x192xf32> to vector<16x16xf32>
    %219 = arith.truncf %216 : vector<16x16xf32> to vector<16x16xbf16>
    %220 = arith.truncf %217 : vector<16x16xf32> to vector<16x16xbf16>
    %cst_74 = arith.constant dense<0.000000e+00> : vector<16x16xf32>
    %221 = tpu.matmul %219, %220, %cst_74 {dimension_numbers = #tpu.dot_dimension_numbers<[1], [1], [0], [0], [0, 0, 1, 0], [], []>} : vector<16x16xbf16>, vector<16x16xbf16>, vector<16x16xf32> -> vector<16x16xf32>
    %cst_75 = arith.constant dense<0xFF800000> : vector<16xf32>
    %222 = vector.multi_reduction <maximumf>, %221, %cst_75 [1] : vector<16x16xf32> to vector<16xf32>
    %223 = vector.shape_cast %222 : vector<16xf32> to vector<16x1xf32>
    %224 = vector.broadcast %223 : vector<16x1xf32> to vector<16x16xf32>
    %225 = arith.subf %221, %224 : vector<16x16xf32>
    %226 = math.exp %225 : vector<16x16xf32>
    %cst_76 = arith.constant dense<0.000000e+00> : vector<16xf32>
    %227 = vector.multi_reduction <add>, %226, %cst_76 [1] : vector<16x16xf32> to vector<16xf32>
    %228 = vector.shape_cast %227 : vector<16xf32> to vector<16x1xf32>
    %229 = vector.broadcast %228 : vector<16x1xf32> to vector<16x16xf32>
    %230 = arith.divf %226, %229 : vector<16x16xf32>
    %231 = arith.truncf %230 : vector<16x16xf32> to vector<16x16xbf16>
    %232 = arith.truncf %218 : vector<16x16xf32> to vector<16x16xbf16>
    %cst_77 = arith.constant dense<0.000000e+00> : vector<16x16xf32>
    %233 = tpu.matmul %231, %232, %cst_77 {dimension_numbers = #tpu.dot_dimension_numbers<[1], [0], [0], [1], [0, 0, 1, 1], [], []>} : vector<16x16xbf16>, vector<16x16xbf16>, vector<16x16xf32> -> vector<16x16xf32>
    %234 = vector.extract_strided_slice %92 {offsets = [16, 48], sizes = [16, 16], strides = [1, 1]} : vector<32x192xf32> to vector<16x16xf32>
    %cst_78 = arith.constant 2.500000e-01 : f32
    %235 = vector.broadcast %cst_78 : f32 to vector<16x16xf32>
    %236 = arith.mulf %234, %235 : vector<16x16xf32>
    %237 = vector.extract_strided_slice %92 {offsets = [16, 112], sizes = [16, 16], strides = [1, 1]} : vector<32x192xf32> to vector<16x16xf32>
    %238 = vector.extract_strided_slice %92 {offsets = [16, 176], sizes = [16, 16], strides = [1, 1]} : vector<32x192xf32> to vector<16x16xf32>
    %239 = arith.truncf %236 : vector<16x16xf32> to vector<16x16xbf16>
    %240 = arith.truncf %237 : vector<16x16xf32> to vector<16x16xbf16>
    %cst_79 = arith.constant dense<0.000000e+00> : vector<16x16xf32>
    %241 = tpu.matmul %239, %240, %cst_79 {dimension_numbers = #tpu.dot_dimension_numbers<[1], [1], [0], [0], [0, 0, 1, 0], [], []>} : vector<16x16xbf16>, vector<16x16xbf16>, vector<16x16xf32> -> vector<16x16xf32>
    %cst_80 = arith.constant dense<0xFF800000> : vector<16xf32>
    %242 = vector.multi_reduction <maximumf>, %241, %cst_80 [1] : vector<16x16xf32> to vector<16xf32>
    %243 = vector.shape_cast %242 : vector<16xf32> to vector<16x1xf32>
    %244 = vector.broadcast %243 : vector<16x1xf32> to vector<16x16xf32>
    %245 = arith.subf %241, %244 : vector<16x16xf32>
    %246 = math.exp %245 : vector<16x16xf32>
    %cst_81 = arith.constant dense<0.000000e+00> : vector<16xf32>
    %247 = vector.multi_reduction <add>, %246, %cst_81 [1] : vector<16x16xf32> to vector<16xf32>
    %248 = vector.shape_cast %247 : vector<16xf32> to vector<16x1xf32>
    %249 = vector.broadcast %248 : vector<16x1xf32> to vector<16x16xf32>
    %250 = arith.divf %246, %249 : vector<16x16xf32>
    %251 = arith.truncf %250 : vector<16x16xf32> to vector<16x16xbf16>
    %252 = arith.truncf %238 : vector<16x16xf32> to vector<16x16xbf16>
    %cst_82 = arith.constant dense<0.000000e+00> : vector<16x16xf32>
    %253 = tpu.matmul %251, %252, %cst_82 {dimension_numbers = #tpu.dot_dimension_numbers<[1], [0], [0], [1], [0, 0, 1, 1], [], []>} : vector<16x16xbf16>, vector<16x16xbf16>, vector<16x16xf32> -> vector<16x16xf32>
    %254 = tpu.concatenate %193, %213, %233, %253 in 1 : vector<16x16xf32>, vector<16x16xf32>, vector<16x16xf32>, vector<16x16xf32> -> vector<16x64xf32>
    %255 = tpu.concatenate %173, %254 in 0 : vector<16x64xf32>, vector<16x64xf32> -> vector<32x64xf32>
    %256 = arith.truncf %255 : vector<32x64xf32> to vector<32x64xbf16>
    %c0_83 = arith.constant 0 : index
    %c0_84 = arith.constant 0 : index
    %c0_85 = arith.constant 0 : index
    %257 = vector.load %arg10[%c0_83, %c0_84, %c0_85] : memref<3x64x64xbf16, #tpu.memory_space<vmem>>, vector<1x64x64xbf16>
    %258 = vector.shape_cast %257 : vector<1x64x64xbf16> to vector<64x64xbf16>
    %cst_86 = arith.constant dense<0.000000e+00> : vector<32x64xf32>
    %259 = tpu.matmul %256, %258, %cst_86 {dimension_numbers = #tpu.dot_dimension_numbers<[1], [0], [0], [1], [0, 0, 1, 1], [], []>} : vector<32x64xbf16>, vector<64x64xbf16>, vector<32x64xf32> -> vector<32x64xf32>
    %c0_87 = arith.constant 0 : index
    %c0_88 = arith.constant 0 : index
    %c0_89 = arith.constant 0 : index
    %260 = vector.load %arg11[%c0_87, %c0_88, %c0_89] : memref<3x1x64xf32, #tpu.memory_space<vmem>>, vector<1x1x64xf32>
    %261 = vector.shape_cast %260 : vector<1x1x64xf32> to vector<1x64xf32>
    %262 = vector.broadcast %261 : vector<1x64xf32> to vector<32x64xf32>
    %263 = arith.addf %259, %262 : vector<32x64xf32>
    %264 = arith.addf %84, %263 : vector<32x64xf32>
    %c0_90 = arith.constant 0 : index
    %c0_91 = arith.constant 0 : index
    %c0_92 = arith.constant 0 : index
    %265 = vector.load %arg12[%c0_90, %c0_91, %c0_92] : memref<3x1x64xf32, #tpu.memory_space<vmem>>, vector<1x1x64xf32>
    %266 = vector.shape_cast %265 : vector<1x1x64xf32> to vector<1x64xf32>
    %c0_93 = arith.constant 0 : index
    %c0_94 = arith.constant 0 : index
    %c0_95 = arith.constant 0 : index
    %267 = vector.load %arg13[%c0_93, %c0_94, %c0_95] : memref<3x1x64xf32, #tpu.memory_space<vmem>>, vector<1x1x64xf32>
    %268 = vector.shape_cast %267 : vector<1x1x64xf32> to vector<1x64xf32>
    %cst_96 = arith.constant dense<0.000000e+00> : vector<32xf32>
    %269 = vector.multi_reduction <add>, %264, %cst_96 [1] : vector<32x64xf32> to vector<32xf32>
    %270 = vector.shape_cast %269 : vector<32xf32> to vector<32x1xf32>
    %cst_97 = arith.constant 6.400000e+01 : f32
    %271 = vector.broadcast %cst_97 : f32 to vector<32x1xf32>
    %272 = arith.divf %270, %271 : vector<32x1xf32>
    %273 = vector.broadcast %272 : vector<32x1xf32> to vector<32x64xf32>
    %274 = arith.subf %264, %273 : vector<32x64xf32>
    %275 = arith.mulf %274, %274 : vector<32x64xf32>
    %cst_98 = arith.constant dense<0.000000e+00> : vector<32xf32>
    %276 = vector.multi_reduction <add>, %275, %cst_98 [1] : vector<32x64xf32> to vector<32xf32>
    %277 = vector.shape_cast %276 : vector<32xf32> to vector<32x1xf32>
    %cst_99 = arith.constant 6.400000e+01 : f32
    %278 = vector.broadcast %cst_99 : f32 to vector<32x1xf32>
    %279 = arith.divf %277, %278 : vector<32x1xf32>
    %280 = vector.broadcast %272 : vector<32x1xf32> to vector<32x64xf32>
    %281 = arith.subf %264, %280 : vector<32x64xf32>
    %cst_100 = arith.constant 9.99999974E-6 : f32
    %282 = vector.broadcast %cst_100 : f32 to vector<32x1xf32>
    %283 = arith.addf %279, %282 : vector<32x1xf32>
    %284 = math.rsqrt %283 : vector<32x1xf32>
    %285 = vector.broadcast %284 : vector<32x1xf32> to vector<32x64xf32>
    %286 = arith.mulf %281, %285 : vector<32x64xf32>
    %287 = vector.broadcast %266 : vector<1x64xf32> to vector<32x64xf32>
    %288 = arith.mulf %286, %287 : vector<32x64xf32>
    %289 = vector.broadcast %268 : vector<1x64xf32> to vector<32x64xf32>
    %290 = arith.addf %288, %289 : vector<32x64xf32>
    %291 = arith.truncf %290 : vector<32x64xf32> to vector<32x64xbf16>
    %c0_101 = arith.constant 0 : index
    %c0_102 = arith.constant 0 : index
    %c0_103 = arith.constant 0 : index
    %292 = vector.load %arg14[%c0_101, %c0_102, %c0_103] : memref<3x64x256xbf16, #tpu.memory_space<vmem>>, vector<1x64x256xbf16>
    %293 = vector.shape_cast %292 : vector<1x64x256xbf16> to vector<64x256xbf16>
    %cst_104 = arith.constant dense<0.000000e+00> : vector<32x256xf32>
    %294 = tpu.matmul %291, %293, %cst_104 {dimension_numbers = #tpu.dot_dimension_numbers<[1], [0], [0], [1], [0, 0, 1, 1], [], []>} : vector<32x64xbf16>, vector<64x256xbf16>, vector<32x256xf32> -> vector<32x256xf32>
    %c0_105 = arith.constant 0 : index
    %c0_106 = arith.constant 0 : index
    %c0_107 = arith.constant 0 : index
    %295 = vector.load %arg15[%c0_105, %c0_106, %c0_107] : memref<3x1x256xf32, #tpu.memory_space<vmem>>, vector<1x1x256xf32>
    %296 = vector.shape_cast %295 : vector<1x1x256xf32> to vector<1x256xf32>
    %297 = vector.broadcast %296 : vector<1x256xf32> to vector<32x256xf32>
    %298 = arith.addf %294, %297 : vector<32x256xf32>
    %cst_108 = arith.constant 0.000000e+00 : f32
    %299 = vector.broadcast %cst_108 : f32 to vector<32x256xf32>
    %300 = arith.maximumf %298, %299 : vector<32x256xf32>
    %301 = arith.truncf %300 : vector<32x256xf32> to vector<32x256xbf16>
    %c0_109 = arith.constant 0 : index
    %c0_110 = arith.constant 0 : index
    %c0_111 = arith.constant 0 : index
    %302 = vector.load %arg16[%c0_109, %c0_110, %c0_111] : memref<3x256x64xbf16, #tpu.memory_space<vmem>>, vector<1x256x64xbf16>
    %303 = vector.shape_cast %302 : vector<1x256x64xbf16> to vector<256x64xbf16>
    %cst_112 = arith.constant dense<0.000000e+00> : vector<32x64xf32>
    %304 = tpu.matmul %301, %303, %cst_112 {dimension_numbers = #tpu.dot_dimension_numbers<[1], [0], [0], [1], [0, 0, 1, 1], [], []>} : vector<32x256xbf16>, vector<256x64xbf16>, vector<32x64xf32> -> vector<32x64xf32>
    %c0_113 = arith.constant 0 : index
    %c0_114 = arith.constant 0 : index
    %c0_115 = arith.constant 0 : index
    %305 = vector.load %arg17[%c0_113, %c0_114, %c0_115] : memref<3x1x64xf32, #tpu.memory_space<vmem>>, vector<1x1x64xf32>
    %306 = vector.shape_cast %305 : vector<1x1x64xf32> to vector<1x64xf32>
    %307 = vector.broadcast %306 : vector<1x64xf32> to vector<32x64xf32>
    %308 = arith.addf %304, %307 : vector<32x64xf32>
    %309 = arith.addf %290, %308 : vector<32x64xf32>
    %c0_116 = arith.constant 0 : index
    %c0_117 = arith.constant 0 : index
    %c0_118 = arith.constant 0 : index
    %310 = vector.load %arg18[%c0_116, %c0_117, %c0_118] : memref<3x1x64xf32, #tpu.memory_space<vmem>>, vector<1x1x64xf32>
    %311 = vector.shape_cast %310 : vector<1x1x64xf32> to vector<1x64xf32>
    %c0_119 = arith.constant 0 : index
    %c0_120 = arith.constant 0 : index
    %c0_121 = arith.constant 0 : index
    %312 = vector.load %arg19[%c0_119, %c0_120, %c0_121] : memref<3x1x64xf32, #tpu.memory_space<vmem>>, vector<1x1x64xf32>
    %313 = vector.shape_cast %312 : vector<1x1x64xf32> to vector<1x64xf32>
    %cst_122 = arith.constant dense<0.000000e+00> : vector<32xf32>
    %314 = vector.multi_reduction <add>, %309, %cst_122 [1] : vector<32x64xf32> to vector<32xf32>
    %315 = vector.shape_cast %314 : vector<32xf32> to vector<32x1xf32>
    %cst_123 = arith.constant 6.400000e+01 : f32
    %316 = vector.broadcast %cst_123 : f32 to vector<32x1xf32>
    %317 = arith.divf %315, %316 : vector<32x1xf32>
    %318 = vector.broadcast %317 : vector<32x1xf32> to vector<32x64xf32>
    %319 = arith.subf %309, %318 : vector<32x64xf32>
    %320 = arith.mulf %319, %319 : vector<32x64xf32>
    %cst_124 = arith.constant dense<0.000000e+00> : vector<32xf32>
    %321 = vector.multi_reduction <add>, %320, %cst_124 [1] : vector<32x64xf32> to vector<32xf32>
    %322 = vector.shape_cast %321 : vector<32xf32> to vector<32x1xf32>
    %cst_125 = arith.constant 6.400000e+01 : f32
    %323 = vector.broadcast %cst_125 : f32 to vector<32x1xf32>
    %324 = arith.divf %322, %323 : vector<32x1xf32>
    %325 = vector.broadcast %317 : vector<32x1xf32> to vector<32x64xf32>
    %326 = arith.subf %309, %325 : vector<32x64xf32>
    %cst_126 = arith.constant 9.99999974E-6 : f32
    %327 = vector.broadcast %cst_126 : f32 to vector<32x1xf32>
    %328 = arith.addf %324, %327 : vector<32x1xf32>
    %329 = math.rsqrt %328 : vector<32x1xf32>
    %330 = vector.broadcast %329 : vector<32x1xf32> to vector<32x64xf32>
    %331 = arith.mulf %326, %330 : vector<32x64xf32>
    %332 = vector.broadcast %311 : vector<1x64xf32> to vector<32x64xf32>
    %333 = arith.mulf %331, %332 : vector<32x64xf32>
    %334 = vector.broadcast %313 : vector<1x64xf32> to vector<32x64xf32>
    %335 = arith.addf %333, %334 : vector<32x64xf32>
    %336 = arith.truncf %335 : vector<32x64xf32> to vector<32x64xbf16>
    %c1 = arith.constant 1 : index
    %c0_127 = arith.constant 0 : index
    %c0_128 = arith.constant 0 : index
    %337 = vector.load %arg8[%c1, %c0_127, %c0_128] : memref<3x64x192xbf16, #tpu.memory_space<vmem>>, vector<1x64x192xbf16>
    %338 = vector.shape_cast %337 : vector<1x64x192xbf16> to vector<64x192xbf16>
    %cst_129 = arith.constant dense<0.000000e+00> : vector<32x192xf32>
    %339 = tpu.matmul %336, %338, %cst_129 {dimension_numbers = #tpu.dot_dimension_numbers<[1], [0], [0], [1], [0, 0, 1, 1], [], []>} : vector<32x64xbf16>, vector<64x192xbf16>, vector<32x192xf32> -> vector<32x192xf32>
    %c1_130 = arith.constant 1 : index
    %c0_131 = arith.constant 0 : index
    %c0_132 = arith.constant 0 : index
    %340 = vector.load %arg9[%c1_130, %c0_131, %c0_132] : memref<3x1x192xf32, #tpu.memory_space<vmem>>, vector<1x1x192xf32>
    %341 = vector.shape_cast %340 : vector<1x1x192xf32> to vector<1x192xf32>
    %342 = vector.broadcast %341 : vector<1x192xf32> to vector<32x192xf32>
    %343 = arith.addf %339, %342 : vector<32x192xf32>
    %344 = vector.extract_strided_slice %343 {offsets = [0, 0], sizes = [16, 16], strides = [1, 1]} : vector<32x192xf32> to vector<16x16xf32>
    %cst_133 = arith.constant 2.500000e-01 : f32
    %345 = vector.broadcast %cst_133 : f32 to vector<16x16xf32>
    %346 = arith.mulf %344, %345 : vector<16x16xf32>
    %347 = vector.extract_strided_slice %343 {offsets = [0, 64], sizes = [16, 16], strides = [1, 1]} : vector<32x192xf32> to vector<16x16xf32>
    %348 = vector.extract_strided_slice %343 {offsets = [0, 128], sizes = [16, 16], strides = [1, 1]} : vector<32x192xf32> to vector<16x16xf32>
    %349 = arith.truncf %346 : vector<16x16xf32> to vector<16x16xbf16>
    %350 = arith.truncf %347 : vector<16x16xf32> to vector<16x16xbf16>
    %cst_134 = arith.constant dense<0.000000e+00> : vector<16x16xf32>
    %351 = tpu.matmul %349, %350, %cst_134 {dimension_numbers = #tpu.dot_dimension_numbers<[1], [1], [0], [0], [0, 0, 1, 0], [], []>} : vector<16x16xbf16>, vector<16x16xbf16>, vector<16x16xf32> -> vector<16x16xf32>
    %cst_135 = arith.constant dense<0xFF800000> : vector<16xf32>
    %352 = vector.multi_reduction <maximumf>, %351, %cst_135 [1] : vector<16x16xf32> to vector<16xf32>
    %353 = vector.shape_cast %352 : vector<16xf32> to vector<16x1xf32>
    %354 = vector.broadcast %353 : vector<16x1xf32> to vector<16x16xf32>
    %355 = arith.subf %351, %354 : vector<16x16xf32>
    %356 = math.exp %355 : vector<16x16xf32>
    %cst_136 = arith.constant dense<0.000000e+00> : vector<16xf32>
    %357 = vector.multi_reduction <add>, %356, %cst_136 [1] : vector<16x16xf32> to vector<16xf32>
    %358 = vector.shape_cast %357 : vector<16xf32> to vector<16x1xf32>
    %359 = vector.broadcast %358 : vector<16x1xf32> to vector<16x16xf32>
    %360 = arith.divf %356, %359 : vector<16x16xf32>
    %361 = arith.truncf %360 : vector<16x16xf32> to vector<16x16xbf16>
    %362 = arith.truncf %348 : vector<16x16xf32> to vector<16x16xbf16>
    %cst_137 = arith.constant dense<0.000000e+00> : vector<16x16xf32>
    %363 = tpu.matmul %361, %362, %cst_137 {dimension_numbers = #tpu.dot_dimension_numbers<[1], [0], [0], [1], [0, 0, 1, 1], [], []>} : vector<16x16xbf16>, vector<16x16xbf16>, vector<16x16xf32> -> vector<16x16xf32>
    %364 = vector.extract_strided_slice %343 {offsets = [0, 16], sizes = [16, 16], strides = [1, 1]} : vector<32x192xf32> to vector<16x16xf32>
    %cst_138 = arith.constant 2.500000e-01 : f32
    %365 = vector.broadcast %cst_138 : f32 to vector<16x16xf32>
    %366 = arith.mulf %364, %365 : vector<16x16xf32>
    %367 = vector.extract_strided_slice %343 {offsets = [0, 80], sizes = [16, 16], strides = [1, 1]} : vector<32x192xf32> to vector<16x16xf32>
    %368 = vector.extract_strided_slice %343 {offsets = [0, 144], sizes = [16, 16], strides = [1, 1]} : vector<32x192xf32> to vector<16x16xf32>
    %369 = arith.truncf %366 : vector<16x16xf32> to vector<16x16xbf16>
    %370 = arith.truncf %367 : vector<16x16xf32> to vector<16x16xbf16>
    %cst_139 = arith.constant dense<0.000000e+00> : vector<16x16xf32>
    %371 = tpu.matmul %369, %370, %cst_139 {dimension_numbers = #tpu.dot_dimension_numbers<[1], [1], [0], [0], [0, 0, 1, 0], [], []>} : vector<16x16xbf16>, vector<16x16xbf16>, vector<16x16xf32> -> vector<16x16xf32>
    %cst_140 = arith.constant dense<0xFF800000> : vector<16xf32>
    %372 = vector.multi_reduction <maximumf>, %371, %cst_140 [1] : vector<16x16xf32> to vector<16xf32>
    %373 = vector.shape_cast %372 : vector<16xf32> to vector<16x1xf32>
    %374 = vector.broadcast %373 : vector<16x1xf32> to vector<16x16xf32>
    %375 = arith.subf %371, %374 : vector<16x16xf32>
    %376 = math.exp %375 : vector<16x16xf32>
    %cst_141 = arith.constant dense<0.000000e+00> : vector<16xf32>
    %377 = vector.multi_reduction <add>, %376, %cst_141 [1] : vector<16x16xf32> to vector<16xf32>
    %378 = vector.shape_cast %377 : vector<16xf32> to vector<16x1xf32>
    %379 = vector.broadcast %378 : vector<16x1xf32> to vector<16x16xf32>
    %380 = arith.divf %376, %379 : vector<16x16xf32>
    %381 = arith.truncf %380 : vector<16x16xf32> to vector<16x16xbf16>
    %382 = arith.truncf %368 : vector<16x16xf32> to vector<16x16xbf16>
    %cst_142 = arith.constant dense<0.000000e+00> : vector<16x16xf32>
    %383 = tpu.matmul %381, %382, %cst_142 {dimension_numbers = #tpu.dot_dimension_numbers<[1], [0], [0], [1], [0, 0, 1, 1], [], []>} : vector<16x16xbf16>, vector<16x16xbf16>, vector<16x16xf32> -> vector<16x16xf32>
    %384 = vector.extract_strided_slice %343 {offsets = [0, 32], sizes = [16, 16], strides = [1, 1]} : vector<32x192xf32> to vector<16x16xf32>
    %cst_143 = arith.constant 2.500000e-01 : f32
    %385 = vector.broadcast %cst_143 : f32 to vector<16x16xf32>
    %386 = arith.mulf %384, %385 : vector<16x16xf32>
    %387 = vector.extract_strided_slice %343 {offsets = [0, 96], sizes = [16, 16], strides = [1, 1]} : vector<32x192xf32> to vector<16x16xf32>
    %388 = vector.extract_strided_slice %343 {offsets = [0, 160], sizes = [16, 16], strides = [1, 1]} : vector<32x192xf32> to vector<16x16xf32>
    %389 = arith.truncf %386 : vector<16x16xf32> to vector<16x16xbf16>
    %390 = arith.truncf %387 : vector<16x16xf32> to vector<16x16xbf16>
    %cst_144 = arith.constant dense<0.000000e+00> : vector<16x16xf32>
    %391 = tpu.matmul %389, %390, %cst_144 {dimension_numbers = #tpu.dot_dimension_numbers<[1], [1], [0], [0], [0, 0, 1, 0], [], []>} : vector<16x16xbf16>, vector<16x16xbf16>, vector<16x16xf32> -> vector<16x16xf32>
    %cst_145 = arith.constant dense<0xFF800000> : vector<16xf32>
    %392 = vector.multi_reduction <maximumf>, %391, %cst_145 [1] : vector<16x16xf32> to vector<16xf32>
    %393 = vector.shape_cast %392 : vector<16xf32> to vector<16x1xf32>
    %394 = vector.broadcast %393 : vector<16x1xf32> to vector<16x16xf32>
    %395 = arith.subf %391, %394 : vector<16x16xf32>
    %396 = math.exp %395 : vector<16x16xf32>
    %cst_146 = arith.constant dense<0.000000e+00> : vector<16xf32>
    %397 = vector.multi_reduction <add>, %396, %cst_146 [1] : vector<16x16xf32> to vector<16xf32>
    %398 = vector.shape_cast %397 : vector<16xf32> to vector<16x1xf32>
    %399 = vector.broadcast %398 : vector<16x1xf32> to vector<16x16xf32>
    %400 = arith.divf %396, %399 : vector<16x16xf32>
    %401 = arith.truncf %400 : vector<16x16xf32> to vector<16x16xbf16>
    %402 = arith.truncf %388 : vector<16x16xf32> to vector<16x16xbf16>
    %cst_147 = arith.constant dense<0.000000e+00> : vector<16x16xf32>
    %403 = tpu.matmul %401, %402, %cst_147 {dimension_numbers = #tpu.dot_dimension_numbers<[1], [0], [0], [1], [0, 0, 1, 1], [], []>} : vector<16x16xbf16>, vector<16x16xbf16>, vector<16x16xf32> -> vector<16x16xf32>
    %404 = vector.extract_strided_slice %343 {offsets = [0, 48], sizes = [16, 16], strides = [1, 1]} : vector<32x192xf32> to vector<16x16xf32>
    %cst_148 = arith.constant 2.500000e-01 : f32
    %405 = vector.broadcast %cst_148 : f32 to vector<16x16xf32>
    %406 = arith.mulf %404, %405 : vector<16x16xf32>
    %407 = vector.extract_strided_slice %343 {offsets = [0, 112], sizes = [16, 16], strides = [1, 1]} : vector<32x192xf32> to vector<16x16xf32>
    %408 = vector.extract_strided_slice %343 {offsets = [0, 176], sizes = [16, 16], strides = [1, 1]} : vector<32x192xf32> to vector<16x16xf32>
    %409 = arith.truncf %406 : vector<16x16xf32> to vector<16x16xbf16>
    %410 = arith.truncf %407 : vector<16x16xf32> to vector<16x16xbf16>
    %cst_149 = arith.constant dense<0.000000e+00> : vector<16x16xf32>
    %411 = tpu.matmul %409, %410, %cst_149 {dimension_numbers = #tpu.dot_dimension_numbers<[1], [1], [0], [0], [0, 0, 1, 0], [], []>} : vector<16x16xbf16>, vector<16x16xbf16>, vector<16x16xf32> -> vector<16x16xf32>
    %cst_150 = arith.constant dense<0xFF800000> : vector<16xf32>
    %412 = vector.multi_reduction <maximumf>, %411, %cst_150 [1] : vector<16x16xf32> to vector<16xf32>
    %413 = vector.shape_cast %412 : vector<16xf32> to vector<16x1xf32>
    %414 = vector.broadcast %413 : vector<16x1xf32> to vector<16x16xf32>
    %415 = arith.subf %411, %414 : vector<16x16xf32>
    %416 = math.exp %415 : vector<16x16xf32>
    %cst_151 = arith.constant dense<0.000000e+00> : vector<16xf32>
    %417 = vector.multi_reduction <add>, %416, %cst_151 [1] : vector<16x16xf32> to vector<16xf32>
    %418 = vector.shape_cast %417 : vector<16xf32> to vector<16x1xf32>
    %419 = vector.broadcast %418 : vector<16x1xf32> to vector<16x16xf32>
    %420 = arith.divf %416, %419 : vector<16x16xf32>
    %421 = arith.truncf %420 : vector<16x16xf32> to vector<16x16xbf16>
    %422 = arith.truncf %408 : vector<16x16xf32> to vector<16x16xbf16>
    %cst_152 = arith.constant dense<0.000000e+00> : vector<16x16xf32>
    %423 = tpu.matmul %421, %422, %cst_152 {dimension_numbers = #tpu.dot_dimension_numbers<[1], [0], [0], [1], [0, 0, 1, 1], [], []>} : vector<16x16xbf16>, vector<16x16xbf16>, vector<16x16xf32> -> vector<16x16xf32>
    %424 = tpu.concatenate %363, %383, %403, %423 in 1 : vector<16x16xf32>, vector<16x16xf32>, vector<16x16xf32>, vector<16x16xf32> -> vector<16x64xf32>
    %425 = vector.extract_strided_slice %343 {offsets = [16, 0], sizes = [16, 16], strides = [1, 1]} : vector<32x192xf32> to vector<16x16xf32>
    %cst_153 = arith.constant 2.500000e-01 : f32
    %426 = vector.broadcast %cst_153 : f32 to vector<16x16xf32>
    %427 = arith.mulf %425, %426 : vector<16x16xf32>
    %428 = vector.extract_strided_slice %343 {offsets = [16, 64], sizes = [16, 16], strides = [1, 1]} : vector<32x192xf32> to vector<16x16xf32>
    %429 = vector.extract_strided_slice %343 {offsets = [16, 128], sizes = [16, 16], strides = [1, 1]} : vector<32x192xf32> to vector<16x16xf32>
    %430 = arith.truncf %427 : vector<16x16xf32> to vector<16x16xbf16>
    %431 = arith.truncf %428 : vector<16x16xf32> to vector<16x16xbf16>
    %cst_154 = arith.constant dense<0.000000e+00> : vector<16x16xf32>
    %432 = tpu.matmul %430, %431, %cst_154 {dimension_numbers = #tpu.dot_dimension_numbers<[1], [1], [0], [0], [0, 0, 1, 0], [], []>} : vector<16x16xbf16>, vector<16x16xbf16>, vector<16x16xf32> -> vector<16x16xf32>
    %cst_155 = arith.constant dense<0xFF800000> : vector<16xf32>
    %433 = vector.multi_reduction <maximumf>, %432, %cst_155 [1] : vector<16x16xf32> to vector<16xf32>
    %434 = vector.shape_cast %433 : vector<16xf32> to vector<16x1xf32>
    %435 = vector.broadcast %434 : vector<16x1xf32> to vector<16x16xf32>
    %436 = arith.subf %432, %435 : vector<16x16xf32>
    %437 = math.exp %436 : vector<16x16xf32>
    %cst_156 = arith.constant dense<0.000000e+00> : vector<16xf32>
    %438 = vector.multi_reduction <add>, %437, %cst_156 [1] : vector<16x16xf32> to vector<16xf32>
    %439 = vector.shape_cast %438 : vector<16xf32> to vector<16x1xf32>
    %440 = vector.broadcast %439 : vector<16x1xf32> to vector<16x16xf32>
    %441 = arith.divf %437, %440 : vector<16x16xf32>
    %442 = arith.truncf %441 : vector<16x16xf32> to vector<16x16xbf16>
    %443 = arith.truncf %429 : vector<16x16xf32> to vector<16x16xbf16>
    %cst_157 = arith.constant dense<0.000000e+00> : vector<16x16xf32>
    %444 = tpu.matmul %442, %443, %cst_157 {dimension_numbers = #tpu.dot_dimension_numbers<[1], [0], [0], [1], [0, 0, 1, 1], [], []>} : vector<16x16xbf16>, vector<16x16xbf16>, vector<16x16xf32> -> vector<16x16xf32>
    %445 = vector.extract_strided_slice %343 {offsets = [16, 16], sizes = [16, 16], strides = [1, 1]} : vector<32x192xf32> to vector<16x16xf32>
    %cst_158 = arith.constant 2.500000e-01 : f32
    %446 = vector.broadcast %cst_158 : f32 to vector<16x16xf32>
    %447 = arith.mulf %445, %446 : vector<16x16xf32>
    %448 = vector.extract_strided_slice %343 {offsets = [16, 80], sizes = [16, 16], strides = [1, 1]} : vector<32x192xf32> to vector<16x16xf32>
    %449 = vector.extract_strided_slice %343 {offsets = [16, 144], sizes = [16, 16], strides = [1, 1]} : vector<32x192xf32> to vector<16x16xf32>
    %450 = arith.truncf %447 : vector<16x16xf32> to vector<16x16xbf16>
    %451 = arith.truncf %448 : vector<16x16xf32> to vector<16x16xbf16>
    %cst_159 = arith.constant dense<0.000000e+00> : vector<16x16xf32>
    %452 = tpu.matmul %450, %451, %cst_159 {dimension_numbers = #tpu.dot_dimension_numbers<[1], [1], [0], [0], [0, 0, 1, 0], [], []>} : vector<16x16xbf16>, vector<16x16xbf16>, vector<16x16xf32> -> vector<16x16xf32>
    %cst_160 = arith.constant dense<0xFF800000> : vector<16xf32>
    %453 = vector.multi_reduction <maximumf>, %452, %cst_160 [1] : vector<16x16xf32> to vector<16xf32>
    %454 = vector.shape_cast %453 : vector<16xf32> to vector<16x1xf32>
    %455 = vector.broadcast %454 : vector<16x1xf32> to vector<16x16xf32>
    %456 = arith.subf %452, %455 : vector<16x16xf32>
    %457 = math.exp %456 : vector<16x16xf32>
    %cst_161 = arith.constant dense<0.000000e+00> : vector<16xf32>
    %458 = vector.multi_reduction <add>, %457, %cst_161 [1] : vector<16x16xf32> to vector<16xf32>
    %459 = vector.shape_cast %458 : vector<16xf32> to vector<16x1xf32>
    %460 = vector.broadcast %459 : vector<16x1xf32> to vector<16x16xf32>
    %461 = arith.divf %457, %460 : vector<16x16xf32>
    %462 = arith.truncf %461 : vector<16x16xf32> to vector<16x16xbf16>
    %463 = arith.truncf %449 : vector<16x16xf32> to vector<16x16xbf16>
    %cst_162 = arith.constant dense<0.000000e+00> : vector<16x16xf32>
    %464 = tpu.matmul %462, %463, %cst_162 {dimension_numbers = #tpu.dot_dimension_numbers<[1], [0], [0], [1], [0, 0, 1, 1], [], []>} : vector<16x16xbf16>, vector<16x16xbf16>, vector<16x16xf32> -> vector<16x16xf32>
    %465 = vector.extract_strided_slice %343 {offsets = [16, 32], sizes = [16, 16], strides = [1, 1]} : vector<32x192xf32> to vector<16x16xf32>
    %cst_163 = arith.constant 2.500000e-01 : f32
    %466 = vector.broadcast %cst_163 : f32 to vector<16x16xf32>
    %467 = arith.mulf %465, %466 : vector<16x16xf32>
    %468 = vector.extract_strided_slice %343 {offsets = [16, 96], sizes = [16, 16], strides = [1, 1]} : vector<32x192xf32> to vector<16x16xf32>
    %469 = vector.extract_strided_slice %343 {offsets = [16, 160], sizes = [16, 16], strides = [1, 1]} : vector<32x192xf32> to vector<16x16xf32>
    %470 = arith.truncf %467 : vector<16x16xf32> to vector<16x16xbf16>
    %471 = arith.truncf %468 : vector<16x16xf32> to vector<16x16xbf16>
    %cst_164 = arith.constant dense<0.000000e+00> : vector<16x16xf32>
    %472 = tpu.matmul %470, %471, %cst_164 {dimension_numbers = #tpu.dot_dimension_numbers<[1], [1], [0], [0], [0, 0, 1, 0], [], []>} : vector<16x16xbf16>, vector<16x16xbf16>, vector<16x16xf32> -> vector<16x16xf32>
    %cst_165 = arith.constant dense<0xFF800000> : vector<16xf32>
    %473 = vector.multi_reduction <maximumf>, %472, %cst_165 [1] : vector<16x16xf32> to vector<16xf32>
    %474 = vector.shape_cast %473 : vector<16xf32> to vector<16x1xf32>
    %475 = vector.broadcast %474 : vector<16x1xf32> to vector<16x16xf32>
    %476 = arith.subf %472, %475 : vector<16x16xf32>
    %477 = math.exp %476 : vector<16x16xf32>
    %cst_166 = arith.constant dense<0.000000e+00> : vector<16xf32>
    %478 = vector.multi_reduction <add>, %477, %cst_166 [1] : vector<16x16xf32> to vector<16xf32>
    %479 = vector.shape_cast %478 : vector<16xf32> to vector<16x1xf32>
    %480 = vector.broadcast %479 : vector<16x1xf32> to vector<16x16xf32>
    %481 = arith.divf %477, %480 : vector<16x16xf32>
    %482 = arith.truncf %481 : vector<16x16xf32> to vector<16x16xbf16>
    %483 = arith.truncf %469 : vector<16x16xf32> to vector<16x16xbf16>
    %cst_167 = arith.constant dense<0.000000e+00> : vector<16x16xf32>
    %484 = tpu.matmul %482, %483, %cst_167 {dimension_numbers = #tpu.dot_dimension_numbers<[1], [0], [0], [1], [0, 0, 1, 1], [], []>} : vector<16x16xbf16>, vector<16x16xbf16>, vector<16x16xf32> -> vector<16x16xf32>
    %485 = vector.extract_strided_slice %343 {offsets = [16, 48], sizes = [16, 16], strides = [1, 1]} : vector<32x192xf32> to vector<16x16xf32>
    %cst_168 = arith.constant 2.500000e-01 : f32
    %486 = vector.broadcast %cst_168 : f32 to vector<16x16xf32>
    %487 = arith.mulf %485, %486 : vector<16x16xf32>
    %488 = vector.extract_strided_slice %343 {offsets = [16, 112], sizes = [16, 16], strides = [1, 1]} : vector<32x192xf32> to vector<16x16xf32>
    %489 = vector.extract_strided_slice %343 {offsets = [16, 176], sizes = [16, 16], strides = [1, 1]} : vector<32x192xf32> to vector<16x16xf32>
    %490 = arith.truncf %487 : vector<16x16xf32> to vector<16x16xbf16>
    %491 = arith.truncf %488 : vector<16x16xf32> to vector<16x16xbf16>
    %cst_169 = arith.constant dense<0.000000e+00> : vector<16x16xf32>
    %492 = tpu.matmul %490, %491, %cst_169 {dimension_numbers = #tpu.dot_dimension_numbers<[1], [1], [0], [0], [0, 0, 1, 0], [], []>} : vector<16x16xbf16>, vector<16x16xbf16>, vector<16x16xf32> -> vector<16x16xf32>
    %cst_170 = arith.constant dense<0xFF800000> : vector<16xf32>
    %493 = vector.multi_reduction <maximumf>, %492, %cst_170 [1] : vector<16x16xf32> to vector<16xf32>
    %494 = vector.shape_cast %493 : vector<16xf32> to vector<16x1xf32>
    %495 = vector.broadcast %494 : vector<16x1xf32> to vector<16x16xf32>
    %496 = arith.subf %492, %495 : vector<16x16xf32>
    %497 = math.exp %496 : vector<16x16xf32>
    %cst_171 = arith.constant dense<0.000000e+00> : vector<16xf32>
    %498 = vector.multi_reduction <add>, %497, %cst_171 [1] : vector<16x16xf32> to vector<16xf32>
    %499 = vector.shape_cast %498 : vector<16xf32> to vector<16x1xf32>
    %500 = vector.broadcast %499 : vector<16x1xf32> to vector<16x16xf32>
    %501 = arith.divf %497, %500 : vector<16x16xf32>
    %502 = arith.truncf %501 : vector<16x16xf32> to vector<16x16xbf16>
    %503 = arith.truncf %489 : vector<16x16xf32> to vector<16x16xbf16>
    %cst_172 = arith.constant dense<0.000000e+00> : vector<16x16xf32>
    %504 = tpu.matmul %502, %503, %cst_172 {dimension_numbers = #tpu.dot_dimension_numbers<[1], [0], [0], [1], [0, 0, 1, 1], [], []>} : vector<16x16xbf16>, vector<16x16xbf16>, vector<16x16xf32> -> vector<16x16xf32>
    %505 = tpu.concatenate %444, %464, %484, %504 in 1 : vector<16x16xf32>, vector<16x16xf32>, vector<16x16xf32>, vector<16x16xf32> -> vector<16x64xf32>
    %506 = tpu.concatenate %424, %505 in 0 : vector<16x64xf32>, vector<16x64xf32> -> vector<32x64xf32>
    %507 = arith.truncf %506 : vector<32x64xf32> to vector<32x64xbf16>
    %c1_173 = arith.constant 1 : index
    %c0_174 = arith.constant 0 : index
    %c0_175 = arith.constant 0 : index
    %508 = vector.load %arg10[%c1_173, %c0_174, %c0_175] : memref<3x64x64xbf16, #tpu.memory_space<vmem>>, vector<1x64x64xbf16>
    %509 = vector.shape_cast %508 : vector<1x64x64xbf16> to vector<64x64xbf16>
    %cst_176 = arith.constant dense<0.000000e+00> : vector<32x64xf32>
    %510 = tpu.matmul %507, %509, %cst_176 {dimension_numbers = #tpu.dot_dimension_numbers<[1], [0], [0], [1], [0, 0, 1, 1], [], []>} : vector<32x64xbf16>, vector<64x64xbf16>, vector<32x64xf32> -> vector<32x64xf32>
    %c1_177 = arith.constant 1 : index
    %c0_178 = arith.constant 0 : index
    %c0_179 = arith.constant 0 : index
    %511 = vector.load %arg11[%c1_177, %c0_178, %c0_179] : memref<3x1x64xf32, #tpu.memory_space<vmem>>, vector<1x1x64xf32>
    %512 = vector.shape_cast %511 : vector<1x1x64xf32> to vector<1x64xf32>
    %513 = vector.broadcast %512 : vector<1x64xf32> to vector<32x64xf32>
    %514 = arith.addf %510, %513 : vector<32x64xf32>
    %515 = arith.addf %335, %514 : vector<32x64xf32>
    %c1_180 = arith.constant 1 : index
    %c0_181 = arith.constant 0 : index
    %c0_182 = arith.constant 0 : index
    %516 = vector.load %arg12[%c1_180, %c0_181, %c0_182] : memref<3x1x64xf32, #tpu.memory_space<vmem>>, vector<1x1x64xf32>
    %517 = vector.shape_cast %516 : vector<1x1x64xf32> to vector<1x64xf32>
    %c1_183 = arith.constant 1 : index
    %c0_184 = arith.constant 0 : index
    %c0_185 = arith.constant 0 : index
    %518 = vector.load %arg13[%c1_183, %c0_184, %c0_185] : memref<3x1x64xf32, #tpu.memory_space<vmem>>, vector<1x1x64xf32>
    %519 = vector.shape_cast %518 : vector<1x1x64xf32> to vector<1x64xf32>
    %cst_186 = arith.constant dense<0.000000e+00> : vector<32xf32>
    %520 = vector.multi_reduction <add>, %515, %cst_186 [1] : vector<32x64xf32> to vector<32xf32>
    %521 = vector.shape_cast %520 : vector<32xf32> to vector<32x1xf32>
    %cst_187 = arith.constant 6.400000e+01 : f32
    %522 = vector.broadcast %cst_187 : f32 to vector<32x1xf32>
    %523 = arith.divf %521, %522 : vector<32x1xf32>
    %524 = vector.broadcast %523 : vector<32x1xf32> to vector<32x64xf32>
    %525 = arith.subf %515, %524 : vector<32x64xf32>
    %526 = arith.mulf %525, %525 : vector<32x64xf32>
    %cst_188 = arith.constant dense<0.000000e+00> : vector<32xf32>
    %527 = vector.multi_reduction <add>, %526, %cst_188 [1] : vector<32x64xf32> to vector<32xf32>
    %528 = vector.shape_cast %527 : vector<32xf32> to vector<32x1xf32>
    %cst_189 = arith.constant 6.400000e+01 : f32
    %529 = vector.broadcast %cst_189 : f32 to vector<32x1xf32>
    %530 = arith.divf %528, %529 : vector<32x1xf32>
    %531 = vector.broadcast %523 : vector<32x1xf32> to vector<32x64xf32>
    %532 = arith.subf %515, %531 : vector<32x64xf32>
    %cst_190 = arith.constant 9.99999974E-6 : f32
    %533 = vector.broadcast %cst_190 : f32 to vector<32x1xf32>
    %534 = arith.addf %530, %533 : vector<32x1xf32>
    %535 = math.rsqrt %534 : vector<32x1xf32>
    %536 = vector.broadcast %535 : vector<32x1xf32> to vector<32x64xf32>
    %537 = arith.mulf %532, %536 : vector<32x64xf32>
    %538 = vector.broadcast %517 : vector<1x64xf32> to vector<32x64xf32>
    %539 = arith.mulf %537, %538 : vector<32x64xf32>
    %540 = vector.broadcast %519 : vector<1x64xf32> to vector<32x64xf32>
    %541 = arith.addf %539, %540 : vector<32x64xf32>
    %542 = arith.truncf %541 : vector<32x64xf32> to vector<32x64xbf16>
    %c1_191 = arith.constant 1 : index
    %c0_192 = arith.constant 0 : index
    %c0_193 = arith.constant 0 : index
    %543 = vector.load %arg14[%c1_191, %c0_192, %c0_193] : memref<3x64x256xbf16, #tpu.memory_space<vmem>>, vector<1x64x256xbf16>
    %544 = vector.shape_cast %543 : vector<1x64x256xbf16> to vector<64x256xbf16>
    %cst_194 = arith.constant dense<0.000000e+00> : vector<32x256xf32>
    %545 = tpu.matmul %542, %544, %cst_194 {dimension_numbers = #tpu.dot_dimension_numbers<[1], [0], [0], [1], [0, 0, 1, 1], [], []>} : vector<32x64xbf16>, vector<64x256xbf16>, vector<32x256xf32> -> vector<32x256xf32>
    %c1_195 = arith.constant 1 : index
    %c0_196 = arith.constant 0 : index
    %c0_197 = arith.constant 0 : index
    %546 = vector.load %arg15[%c1_195, %c0_196, %c0_197] : memref<3x1x256xf32, #tpu.memory_space<vmem>>, vector<1x1x256xf32>
    %547 = vector.shape_cast %546 : vector<1x1x256xf32> to vector<1x256xf32>
    %548 = vector.broadcast %547 : vector<1x256xf32> to vector<32x256xf32>
    %549 = arith.addf %545, %548 : vector<32x256xf32>
    %cst_198 = arith.constant 0.000000e+00 : f32
    %550 = vector.broadcast %cst_198 : f32 to vector<32x256xf32>
    %551 = arith.maximumf %549, %550 : vector<32x256xf32>
    %552 = arith.truncf %551 : vector<32x256xf32> to vector<32x256xbf16>
    %c1_199 = arith.constant 1 : index
    %c0_200 = arith.constant 0 : index
    %c0_201 = arith.constant 0 : index
    %553 = vector.load %arg16[%c1_199, %c0_200, %c0_201] : memref<3x256x64xbf16, #tpu.memory_space<vmem>>, vector<1x256x64xbf16>
    %554 = vector.shape_cast %553 : vector<1x256x64xbf16> to vector<256x64xbf16>
    %cst_202 = arith.constant dense<0.000000e+00> : vector<32x64xf32>
    %555 = tpu.matmul %552, %554, %cst_202 {dimension_numbers = #tpu.dot_dimension_numbers<[1], [0], [0], [1], [0, 0, 1, 1], [], []>} : vector<32x256xbf16>, vector<256x64xbf16>, vector<32x64xf32> -> vector<32x64xf32>
    %c1_203 = arith.constant 1 : index
    %c0_204 = arith.constant 0 : index
    %c0_205 = arith.constant 0 : index
    %556 = vector.load %arg17[%c1_203, %c0_204, %c0_205] : memref<3x1x64xf32, #tpu.memory_space<vmem>>, vector<1x1x64xf32>
    %557 = vector.shape_cast %556 : vector<1x1x64xf32> to vector<1x64xf32>
    %558 = vector.broadcast %557 : vector<1x64xf32> to vector<32x64xf32>
    %559 = arith.addf %555, %558 : vector<32x64xf32>
    %560 = arith.addf %541, %559 : vector<32x64xf32>
    %c1_206 = arith.constant 1 : index
    %c0_207 = arith.constant 0 : index
    %c0_208 = arith.constant 0 : index
    %561 = vector.load %arg18[%c1_206, %c0_207, %c0_208] : memref<3x1x64xf32, #tpu.memory_space<vmem>>, vector<1x1x64xf32>
    %562 = vector.shape_cast %561 : vector<1x1x64xf32> to vector<1x64xf32>
    %c1_209 = arith.constant 1 : index
    %c0_210 = arith.constant 0 : index
    %c0_211 = arith.constant 0 : index
    %563 = vector.load %arg19[%c1_209, %c0_210, %c0_211] : memref<3x1x64xf32, #tpu.memory_space<vmem>>, vector<1x1x64xf32>
    %564 = vector.shape_cast %563 : vector<1x1x64xf32> to vector<1x64xf32>
    %cst_212 = arith.constant dense<0.000000e+00> : vector<32xf32>
    %565 = vector.multi_reduction <add>, %560, %cst_212 [1] : vector<32x64xf32> to vector<32xf32>
    %566 = vector.shape_cast %565 : vector<32xf32> to vector<32x1xf32>
    %cst_213 = arith.constant 6.400000e+01 : f32
    %567 = vector.broadcast %cst_213 : f32 to vector<32x1xf32>
    %568 = arith.divf %566, %567 : vector<32x1xf32>
    %569 = vector.broadcast %568 : vector<32x1xf32> to vector<32x64xf32>
    %570 = arith.subf %560, %569 : vector<32x64xf32>
    %571 = arith.mulf %570, %570 : vector<32x64xf32>
    %cst_214 = arith.constant dense<0.000000e+00> : vector<32xf32>
    %572 = vector.multi_reduction <add>, %571, %cst_214 [1] : vector<32x64xf32> to vector<32xf32>
    %573 = vector.shape_cast %572 : vector<32xf32> to vector<32x1xf32>
    %cst_215 = arith.constant 6.400000e+01 : f32
    %574 = vector.broadcast %cst_215 : f32 to vector<32x1xf32>
    %575 = arith.divf %573, %574 : vector<32x1xf32>
    %576 = vector.broadcast %568 : vector<32x1xf32> to vector<32x64xf32>
    %577 = arith.subf %560, %576 : vector<32x64xf32>
    %cst_216 = arith.constant 9.99999974E-6 : f32
    %578 = vector.broadcast %cst_216 : f32 to vector<32x1xf32>
    %579 = arith.addf %575, %578 : vector<32x1xf32>
    %580 = math.rsqrt %579 : vector<32x1xf32>
    %581 = vector.broadcast %580 : vector<32x1xf32> to vector<32x64xf32>
    %582 = arith.mulf %577, %581 : vector<32x64xf32>
    %583 = vector.broadcast %562 : vector<1x64xf32> to vector<32x64xf32>
    %584 = arith.mulf %582, %583 : vector<32x64xf32>
    %585 = vector.broadcast %564 : vector<1x64xf32> to vector<32x64xf32>
    %586 = arith.addf %584, %585 : vector<32x64xf32>
    %587 = arith.truncf %586 : vector<32x64xf32> to vector<32x64xbf16>
    %c2 = arith.constant 2 : index
    %c0_217 = arith.constant 0 : index
    %c0_218 = arith.constant 0 : index
    %588 = vector.load %arg8[%c2, %c0_217, %c0_218] : memref<3x64x192xbf16, #tpu.memory_space<vmem>>, vector<1x64x192xbf16>
    %589 = vector.shape_cast %588 : vector<1x64x192xbf16> to vector<64x192xbf16>
    %cst_219 = arith.constant dense<0.000000e+00> : vector<32x192xf32>
    %590 = tpu.matmul %587, %589, %cst_219 {dimension_numbers = #tpu.dot_dimension_numbers<[1], [0], [0], [1], [0, 0, 1, 1], [], []>} : vector<32x64xbf16>, vector<64x192xbf16>, vector<32x192xf32> -> vector<32x192xf32>
    %c2_220 = arith.constant 2 : index
    %c0_221 = arith.constant 0 : index
    %c0_222 = arith.constant 0 : index
    %591 = vector.load %arg9[%c2_220, %c0_221, %c0_222] : memref<3x1x192xf32, #tpu.memory_space<vmem>>, vector<1x1x192xf32>
    %592 = vector.shape_cast %591 : vector<1x1x192xf32> to vector<1x192xf32>
    %593 = vector.broadcast %592 : vector<1x192xf32> to vector<32x192xf32>
    %594 = arith.addf %590, %593 : vector<32x192xf32>
    %595 = vector.extract_strided_slice %594 {offsets = [0, 0], sizes = [16, 16], strides = [1, 1]} : vector<32x192xf32> to vector<16x16xf32>
    %cst_223 = arith.constant 2.500000e-01 : f32
    %596 = vector.broadcast %cst_223 : f32 to vector<16x16xf32>
    %597 = arith.mulf %595, %596 : vector<16x16xf32>
    %598 = vector.extract_strided_slice %594 {offsets = [0, 64], sizes = [16, 16], strides = [1, 1]} : vector<32x192xf32> to vector<16x16xf32>
    %599 = vector.extract_strided_slice %594 {offsets = [0, 128], sizes = [16, 16], strides = [1, 1]} : vector<32x192xf32> to vector<16x16xf32>
    %600 = arith.truncf %597 : vector<16x16xf32> to vector<16x16xbf16>
    %601 = arith.truncf %598 : vector<16x16xf32> to vector<16x16xbf16>
    %cst_224 = arith.constant dense<0.000000e+00> : vector<16x16xf32>
    %602 = tpu.matmul %600, %601, %cst_224 {dimension_numbers = #tpu.dot_dimension_numbers<[1], [1], [0], [0], [0, 0, 1, 0], [], []>} : vector<16x16xbf16>, vector<16x16xbf16>, vector<16x16xf32> -> vector<16x16xf32>
    %cst_225 = arith.constant dense<0xFF800000> : vector<16xf32>
    %603 = vector.multi_reduction <maximumf>, %602, %cst_225 [1] : vector<16x16xf32> to vector<16xf32>
    %604 = vector.shape_cast %603 : vector<16xf32> to vector<16x1xf32>
    %605 = vector.broadcast %604 : vector<16x1xf32> to vector<16x16xf32>
    %606 = arith.subf %602, %605 : vector<16x16xf32>
    %607 = math.exp %606 : vector<16x16xf32>
    %cst_226 = arith.constant dense<0.000000e+00> : vector<16xf32>
    %608 = vector.multi_reduction <add>, %607, %cst_226 [1] : vector<16x16xf32> to vector<16xf32>
    %609 = vector.shape_cast %608 : vector<16xf32> to vector<16x1xf32>
    %610 = vector.broadcast %609 : vector<16x1xf32> to vector<16x16xf32>
    %611 = arith.divf %607, %610 : vector<16x16xf32>
    %612 = arith.truncf %611 : vector<16x16xf32> to vector<16x16xbf16>
    %613 = arith.truncf %599 : vector<16x16xf32> to vector<16x16xbf16>
    %cst_227 = arith.constant dense<0.000000e+00> : vector<16x16xf32>
    %614 = tpu.matmul %612, %613, %cst_227 {dimension_numbers = #tpu.dot_dimension_numbers<[1], [0], [0], [1], [0, 0, 1, 1], [], []>} : vector<16x16xbf16>, vector<16x16xbf16>, vector<16x16xf32> -> vector<16x16xf32>
    %615 = vector.extract_strided_slice %594 {offsets = [0, 16], sizes = [16, 16], strides = [1, 1]} : vector<32x192xf32> to vector<16x16xf32>
    %cst_228 = arith.constant 2.500000e-01 : f32
    %616 = vector.broadcast %cst_228 : f32 to vector<16x16xf32>
    %617 = arith.mulf %615, %616 : vector<16x16xf32>
    %618 = vector.extract_strided_slice %594 {offsets = [0, 80], sizes = [16, 16], strides = [1, 1]} : vector<32x192xf32> to vector<16x16xf32>
    %619 = vector.extract_strided_slice %594 {offsets = [0, 144], sizes = [16, 16], strides = [1, 1]} : vector<32x192xf32> to vector<16x16xf32>
    %620 = arith.truncf %617 : vector<16x16xf32> to vector<16x16xbf16>
    %621 = arith.truncf %618 : vector<16x16xf32> to vector<16x16xbf16>
    %cst_229 = arith.constant dense<0.000000e+00> : vector<16x16xf32>
    %622 = tpu.matmul %620, %621, %cst_229 {dimension_numbers = #tpu.dot_dimension_numbers<[1], [1], [0], [0], [0, 0, 1, 0], [], []>} : vector<16x16xbf16>, vector<16x16xbf16>, vector<16x16xf32> -> vector<16x16xf32>
    %cst_230 = arith.constant dense<0xFF800000> : vector<16xf32>
    %623 = vector.multi_reduction <maximumf>, %622, %cst_230 [1] : vector<16x16xf32> to vector<16xf32>
    %624 = vector.shape_cast %623 : vector<16xf32> to vector<16x1xf32>
    %625 = vector.broadcast %624 : vector<16x1xf32> to vector<16x16xf32>
    %626 = arith.subf %622, %625 : vector<16x16xf32>
    %627 = math.exp %626 : vector<16x16xf32>
    %cst_231 = arith.constant dense<0.000000e+00> : vector<16xf32>
    %628 = vector.multi_reduction <add>, %627, %cst_231 [1] : vector<16x16xf32> to vector<16xf32>
    %629 = vector.shape_cast %628 : vector<16xf32> to vector<16x1xf32>
    %630 = vector.broadcast %629 : vector<16x1xf32> to vector<16x16xf32>
    %631 = arith.divf %627, %630 : vector<16x16xf32>
    %632 = arith.truncf %631 : vector<16x16xf32> to vector<16x16xbf16>
    %633 = arith.truncf %619 : vector<16x16xf32> to vector<16x16xbf16>
    %cst_232 = arith.constant dense<0.000000e+00> : vector<16x16xf32>
    %634 = tpu.matmul %632, %633, %cst_232 {dimension_numbers = #tpu.dot_dimension_numbers<[1], [0], [0], [1], [0, 0, 1, 1], [], []>} : vector<16x16xbf16>, vector<16x16xbf16>, vector<16x16xf32> -> vector<16x16xf32>
    %635 = vector.extract_strided_slice %594 {offsets = [0, 32], sizes = [16, 16], strides = [1, 1]} : vector<32x192xf32> to vector<16x16xf32>
    %cst_233 = arith.constant 2.500000e-01 : f32
    %636 = vector.broadcast %cst_233 : f32 to vector<16x16xf32>
    %637 = arith.mulf %635, %636 : vector<16x16xf32>
    %638 = vector.extract_strided_slice %594 {offsets = [0, 96], sizes = [16, 16], strides = [1, 1]} : vector<32x192xf32> to vector<16x16xf32>
    %639 = vector.extract_strided_slice %594 {offsets = [0, 160], sizes = [16, 16], strides = [1, 1]} : vector<32x192xf32> to vector<16x16xf32>
    %640 = arith.truncf %637 : vector<16x16xf32> to vector<16x16xbf16>
    %641 = arith.truncf %638 : vector<16x16xf32> to vector<16x16xbf16>
    %cst_234 = arith.constant dense<0.000000e+00> : vector<16x16xf32>
    %642 = tpu.matmul %640, %641, %cst_234 {dimension_numbers = #tpu.dot_dimension_numbers<[1], [1], [0], [0], [0, 0, 1, 0], [], []>} : vector<16x16xbf16>, vector<16x16xbf16>, vector<16x16xf32> -> vector<16x16xf32>
    %cst_235 = arith.constant dense<0xFF800000> : vector<16xf32>
    %643 = vector.multi_reduction <maximumf>, %642, %cst_235 [1] : vector<16x16xf32> to vector<16xf32>
    %644 = vector.shape_cast %643 : vector<16xf32> to vector<16x1xf32>
    %645 = vector.broadcast %644 : vector<16x1xf32> to vector<16x16xf32>
    %646 = arith.subf %642, %645 : vector<16x16xf32>
    %647 = math.exp %646 : vector<16x16xf32>
    %cst_236 = arith.constant dense<0.000000e+00> : vector<16xf32>
    %648 = vector.multi_reduction <add>, %647, %cst_236 [1] : vector<16x16xf32> to vector<16xf32>
    %649 = vector.shape_cast %648 : vector<16xf32> to vector<16x1xf32>
    %650 = vector.broadcast %649 : vector<16x1xf32> to vector<16x16xf32>
    %651 = arith.divf %647, %650 : vector<16x16xf32>
    %652 = arith.truncf %651 : vector<16x16xf32> to vector<16x16xbf16>
    %653 = arith.truncf %639 : vector<16x16xf32> to vector<16x16xbf16>
    %cst_237 = arith.constant dense<0.000000e+00> : vector<16x16xf32>
    %654 = tpu.matmul %652, %653, %cst_237 {dimension_numbers = #tpu.dot_dimension_numbers<[1], [0], [0], [1], [0, 0, 1, 1], [], []>} : vector<16x16xbf16>, vector<16x16xbf16>, vector<16x16xf32> -> vector<16x16xf32>
    %655 = vector.extract_strided_slice %594 {offsets = [0, 48], sizes = [16, 16], strides = [1, 1]} : vector<32x192xf32> to vector<16x16xf32>
    %cst_238 = arith.constant 2.500000e-01 : f32
    %656 = vector.broadcast %cst_238 : f32 to vector<16x16xf32>
    %657 = arith.mulf %655, %656 : vector<16x16xf32>
    %658 = vector.extract_strided_slice %594 {offsets = [0, 112], sizes = [16, 16], strides = [1, 1]} : vector<32x192xf32> to vector<16x16xf32>
    %659 = vector.extract_strided_slice %594 {offsets = [0, 176], sizes = [16, 16], strides = [1, 1]} : vector<32x192xf32> to vector<16x16xf32>
    %660 = arith.truncf %657 : vector<16x16xf32> to vector<16x16xbf16>
    %661 = arith.truncf %658 : vector<16x16xf32> to vector<16x16xbf16>
    %cst_239 = arith.constant dense<0.000000e+00> : vector<16x16xf32>
    %662 = tpu.matmul %660, %661, %cst_239 {dimension_numbers = #tpu.dot_dimension_numbers<[1], [1], [0], [0], [0, 0, 1, 0], [], []>} : vector<16x16xbf16>, vector<16x16xbf16>, vector<16x16xf32> -> vector<16x16xf32>
    %cst_240 = arith.constant dense<0xFF800000> : vector<16xf32>
    %663 = vector.multi_reduction <maximumf>, %662, %cst_240 [1] : vector<16x16xf32> to vector<16xf32>
    %664 = vector.shape_cast %663 : vector<16xf32> to vector<16x1xf32>
    %665 = vector.broadcast %664 : vector<16x1xf32> to vector<16x16xf32>
    %666 = arith.subf %662, %665 : vector<16x16xf32>
    %667 = math.exp %666 : vector<16x16xf32>
    %cst_241 = arith.constant dense<0.000000e+00> : vector<16xf32>
    %668 = vector.multi_reduction <add>, %667, %cst_241 [1] : vector<16x16xf32> to vector<16xf32>
    %669 = vector.shape_cast %668 : vector<16xf32> to vector<16x1xf32>
    %670 = vector.broadcast %669 : vector<16x1xf32> to vector<16x16xf32>
    %671 = arith.divf %667, %670 : vector<16x16xf32>
    %672 = arith.truncf %671 : vector<16x16xf32> to vector<16x16xbf16>
    %673 = arith.truncf %659 : vector<16x16xf32> to vector<16x16xbf16>
    %cst_242 = arith.constant dense<0.000000e+00> : vector<16x16xf32>
    %674 = tpu.matmul %672, %673, %cst_242 {dimension_numbers = #tpu.dot_dimension_numbers<[1], [0], [0], [1], [0, 0, 1, 1], [], []>} : vector<16x16xbf16>, vector<16x16xbf16>, vector<16x16xf32> -> vector<16x16xf32>
    %675 = tpu.concatenate %614, %634, %654, %674 in 1 : vector<16x16xf32>, vector<16x16xf32>, vector<16x16xf32>, vector<16x16xf32> -> vector<16x64xf32>
    %676 = vector.extract_strided_slice %594 {offsets = [16, 0], sizes = [16, 16], strides = [1, 1]} : vector<32x192xf32> to vector<16x16xf32>
    %cst_243 = arith.constant 2.500000e-01 : f32
    %677 = vector.broadcast %cst_243 : f32 to vector<16x16xf32>
    %678 = arith.mulf %676, %677 : vector<16x16xf32>
    %679 = vector.extract_strided_slice %594 {offsets = [16, 64], sizes = [16, 16], strides = [1, 1]} : vector<32x192xf32> to vector<16x16xf32>
    %680 = vector.extract_strided_slice %594 {offsets = [16, 128], sizes = [16, 16], strides = [1, 1]} : vector<32x192xf32> to vector<16x16xf32>
    %681 = arith.truncf %678 : vector<16x16xf32> to vector<16x16xbf16>
    %682 = arith.truncf %679 : vector<16x16xf32> to vector<16x16xbf16>
    %cst_244 = arith.constant dense<0.000000e+00> : vector<16x16xf32>
    %683 = tpu.matmul %681, %682, %cst_244 {dimension_numbers = #tpu.dot_dimension_numbers<[1], [1], [0], [0], [0, 0, 1, 0], [], []>} : vector<16x16xbf16>, vector<16x16xbf16>, vector<16x16xf32> -> vector<16x16xf32>
    %cst_245 = arith.constant dense<0xFF800000> : vector<16xf32>
    %684 = vector.multi_reduction <maximumf>, %683, %cst_245 [1] : vector<16x16xf32> to vector<16xf32>
    %685 = vector.shape_cast %684 : vector<16xf32> to vector<16x1xf32>
    %686 = vector.broadcast %685 : vector<16x1xf32> to vector<16x16xf32>
    %687 = arith.subf %683, %686 : vector<16x16xf32>
    %688 = math.exp %687 : vector<16x16xf32>
    %cst_246 = arith.constant dense<0.000000e+00> : vector<16xf32>
    %689 = vector.multi_reduction <add>, %688, %cst_246 [1] : vector<16x16xf32> to vector<16xf32>
    %690 = vector.shape_cast %689 : vector<16xf32> to vector<16x1xf32>
    %691 = vector.broadcast %690 : vector<16x1xf32> to vector<16x16xf32>
    %692 = arith.divf %688, %691 : vector<16x16xf32>
    %693 = arith.truncf %692 : vector<16x16xf32> to vector<16x16xbf16>
    %694 = arith.truncf %680 : vector<16x16xf32> to vector<16x16xbf16>
    %cst_247 = arith.constant dense<0.000000e+00> : vector<16x16xf32>
    %695 = tpu.matmul %693, %694, %cst_247 {dimension_numbers = #tpu.dot_dimension_numbers<[1], [0], [0], [1], [0, 0, 1, 1], [], []>} : vector<16x16xbf16>, vector<16x16xbf16>, vector<16x16xf32> -> vector<16x16xf32>
    %696 = vector.extract_strided_slice %594 {offsets = [16, 16], sizes = [16, 16], strides = [1, 1]} : vector<32x192xf32> to vector<16x16xf32>
    %cst_248 = arith.constant 2.500000e-01 : f32
    %697 = vector.broadcast %cst_248 : f32 to vector<16x16xf32>
    %698 = arith.mulf %696, %697 : vector<16x16xf32>
    %699 = vector.extract_strided_slice %594 {offsets = [16, 80], sizes = [16, 16], strides = [1, 1]} : vector<32x192xf32> to vector<16x16xf32>
    %700 = vector.extract_strided_slice %594 {offsets = [16, 144], sizes = [16, 16], strides = [1, 1]} : vector<32x192xf32> to vector<16x16xf32>
    %701 = arith.truncf %698 : vector<16x16xf32> to vector<16x16xbf16>
    %702 = arith.truncf %699 : vector<16x16xf32> to vector<16x16xbf16>
    %cst_249 = arith.constant dense<0.000000e+00> : vector<16x16xf32>
    %703 = tpu.matmul %701, %702, %cst_249 {dimension_numbers = #tpu.dot_dimension_numbers<[1], [1], [0], [0], [0, 0, 1, 0], [], []>} : vector<16x16xbf16>, vector<16x16xbf16>, vector<16x16xf32> -> vector<16x16xf32>
    %cst_250 = arith.constant dense<0xFF800000> : vector<16xf32>
    %704 = vector.multi_reduction <maximumf>, %703, %cst_250 [1] : vector<16x16xf32> to vector<16xf32>
    %705 = vector.shape_cast %704 : vector<16xf32> to vector<16x1xf32>
    %706 = vector.broadcast %705 : vector<16x1xf32> to vector<16x16xf32>
    %707 = arith.subf %703, %706 : vector<16x16xf32>
    %708 = math.exp %707 : vector<16x16xf32>
    %cst_251 = arith.constant dense<0.000000e+00> : vector<16xf32>
    %709 = vector.multi_reduction <add>, %708, %cst_251 [1] : vector<16x16xf32> to vector<16xf32>
    %710 = vector.shape_cast %709 : vector<16xf32> to vector<16x1xf32>
    %711 = vector.broadcast %710 : vector<16x1xf32> to vector<16x16xf32>
    %712 = arith.divf %708, %711 : vector<16x16xf32>
    %713 = arith.truncf %712 : vector<16x16xf32> to vector<16x16xbf16>
    %714 = arith.truncf %700 : vector<16x16xf32> to vector<16x16xbf16>
    %cst_252 = arith.constant dense<0.000000e+00> : vector<16x16xf32>
    %715 = tpu.matmul %713, %714, %cst_252 {dimension_numbers = #tpu.dot_dimension_numbers<[1], [0], [0], [1], [0, 0, 1, 1], [], []>} : vector<16x16xbf16>, vector<16x16xbf16>, vector<16x16xf32> -> vector<16x16xf32>
    %716 = vector.extract_strided_slice %594 {offsets = [16, 32], sizes = [16, 16], strides = [1, 1]} : vector<32x192xf32> to vector<16x16xf32>
    %cst_253 = arith.constant 2.500000e-01 : f32
    %717 = vector.broadcast %cst_253 : f32 to vector<16x16xf32>
    %718 = arith.mulf %716, %717 : vector<16x16xf32>
    %719 = vector.extract_strided_slice %594 {offsets = [16, 96], sizes = [16, 16], strides = [1, 1]} : vector<32x192xf32> to vector<16x16xf32>
    %720 = vector.extract_strided_slice %594 {offsets = [16, 160], sizes = [16, 16], strides = [1, 1]} : vector<32x192xf32> to vector<16x16xf32>
    %721 = arith.truncf %718 : vector<16x16xf32> to vector<16x16xbf16>
    %722 = arith.truncf %719 : vector<16x16xf32> to vector<16x16xbf16>
    %cst_254 = arith.constant dense<0.000000e+00> : vector<16x16xf32>
    %723 = tpu.matmul %721, %722, %cst_254 {dimension_numbers = #tpu.dot_dimension_numbers<[1], [1], [0], [0], [0, 0, 1, 0], [], []>} : vector<16x16xbf16>, vector<16x16xbf16>, vector<16x16xf32> -> vector<16x16xf32>
    %cst_255 = arith.constant dense<0xFF800000> : vector<16xf32>
    %724 = vector.multi_reduction <maximumf>, %723, %cst_255 [1] : vector<16x16xf32> to vector<16xf32>
    %725 = vector.shape_cast %724 : vector<16xf32> to vector<16x1xf32>
    %726 = vector.broadcast %725 : vector<16x1xf32> to vector<16x16xf32>
    %727 = arith.subf %723, %726 : vector<16x16xf32>
    %728 = math.exp %727 : vector<16x16xf32>
    %cst_256 = arith.constant dense<0.000000e+00> : vector<16xf32>
    %729 = vector.multi_reduction <add>, %728, %cst_256 [1] : vector<16x16xf32> to vector<16xf32>
    %730 = vector.shape_cast %729 : vector<16xf32> to vector<16x1xf32>
    %731 = vector.broadcast %730 : vector<16x1xf32> to vector<16x16xf32>
    %732 = arith.divf %728, %731 : vector<16x16xf32>
    %733 = arith.truncf %732 : vector<16x16xf32> to vector<16x16xbf16>
    %734 = arith.truncf %720 : vector<16x16xf32> to vector<16x16xbf16>
    %cst_257 = arith.constant dense<0.000000e+00> : vector<16x16xf32>
    %735 = tpu.matmul %733, %734, %cst_257 {dimension_numbers = #tpu.dot_dimension_numbers<[1], [0], [0], [1], [0, 0, 1, 1], [], []>} : vector<16x16xbf16>, vector<16x16xbf16>, vector<16x16xf32> -> vector<16x16xf32>
    %736 = vector.extract_strided_slice %594 {offsets = [16, 48], sizes = [16, 16], strides = [1, 1]} : vector<32x192xf32> to vector<16x16xf32>
    %cst_258 = arith.constant 2.500000e-01 : f32
    %737 = vector.broadcast %cst_258 : f32 to vector<16x16xf32>
    %738 = arith.mulf %736, %737 : vector<16x16xf32>
    %739 = vector.extract_strided_slice %594 {offsets = [16, 112], sizes = [16, 16], strides = [1, 1]} : vector<32x192xf32> to vector<16x16xf32>
    %740 = vector.extract_strided_slice %594 {offsets = [16, 176], sizes = [16, 16], strides = [1, 1]} : vector<32x192xf32> to vector<16x16xf32>
    %741 = arith.truncf %738 : vector<16x16xf32> to vector<16x16xbf16>
    %742 = arith.truncf %739 : vector<16x16xf32> to vector<16x16xbf16>
    %cst_259 = arith.constant dense<0.000000e+00> : vector<16x16xf32>
    %743 = tpu.matmul %741, %742, %cst_259 {dimension_numbers = #tpu.dot_dimension_numbers<[1], [1], [0], [0], [0, 0, 1, 0], [], []>} : vector<16x16xbf16>, vector<16x16xbf16>, vector<16x16xf32> -> vector<16x16xf32>
    %cst_260 = arith.constant dense<0xFF800000> : vector<16xf32>
    %744 = vector.multi_reduction <maximumf>, %743, %cst_260 [1] : vector<16x16xf32> to vector<16xf32>
    %745 = vector.shape_cast %744 : vector<16xf32> to vector<16x1xf32>
    %746 = vector.broadcast %745 : vector<16x1xf32> to vector<16x16xf32>
    %747 = arith.subf %743, %746 : vector<16x16xf32>
    %748 = math.exp %747 : vector<16x16xf32>
    %cst_261 = arith.constant dense<0.000000e+00> : vector<16xf32>
    %749 = vector.multi_reduction <add>, %748, %cst_261 [1] : vector<16x16xf32> to vector<16xf32>
    %750 = vector.shape_cast %749 : vector<16xf32> to vector<16x1xf32>
    %751 = vector.broadcast %750 : vector<16x1xf32> to vector<16x16xf32>
    %752 = arith.divf %748, %751 : vector<16x16xf32>
    %753 = arith.truncf %752 : vector<16x16xf32> to vector<16x16xbf16>
    %754 = arith.truncf %740 : vector<16x16xf32> to vector<16x16xbf16>
    %cst_262 = arith.constant dense<0.000000e+00> : vector<16x16xf32>
    %755 = tpu.matmul %753, %754, %cst_262 {dimension_numbers = #tpu.dot_dimension_numbers<[1], [0], [0], [1], [0, 0, 1, 1], [], []>} : vector<16x16xbf16>, vector<16x16xbf16>, vector<16x16xf32> -> vector<16x16xf32>
    %756 = tpu.concatenate %695, %715, %735, %755 in 1 : vector<16x16xf32>, vector<16x16xf32>, vector<16x16xf32>, vector<16x16xf32> -> vector<16x64xf32>
    %757 = tpu.concatenate %675, %756 in 0 : vector<16x64xf32>, vector<16x64xf32> -> vector<32x64xf32>
    %758 = arith.truncf %757 : vector<32x64xf32> to vector<32x64xbf16>
    %c2_263 = arith.constant 2 : index
    %c0_264 = arith.constant 0 : index
    %c0_265 = arith.constant 0 : index
    %759 = vector.load %arg10[%c2_263, %c0_264, %c0_265] : memref<3x64x64xbf16, #tpu.memory_space<vmem>>, vector<1x64x64xbf16>
    %760 = vector.shape_cast %759 : vector<1x64x64xbf16> to vector<64x64xbf16>
    %cst_266 = arith.constant dense<0.000000e+00> : vector<32x64xf32>
    %761 = tpu.matmul %758, %760, %cst_266 {dimension_numbers = #tpu.dot_dimension_numbers<[1], [0], [0], [1], [0, 0, 1, 1], [], []>} : vector<32x64xbf16>, vector<64x64xbf16>, vector<32x64xf32> -> vector<32x64xf32>
    %c2_267 = arith.constant 2 : index
    %c0_268 = arith.constant 0 : index
    %c0_269 = arith.constant 0 : index
    %762 = vector.load %arg11[%c2_267, %c0_268, %c0_269] : memref<3x1x64xf32, #tpu.memory_space<vmem>>, vector<1x1x64xf32>
    %763 = vector.shape_cast %762 : vector<1x1x64xf32> to vector<1x64xf32>
    %764 = vector.broadcast %763 : vector<1x64xf32> to vector<32x64xf32>
    %765 = arith.addf %761, %764 : vector<32x64xf32>
    %766 = arith.addf %586, %765 : vector<32x64xf32>
    %c2_270 = arith.constant 2 : index
    %c0_271 = arith.constant 0 : index
    %c0_272 = arith.constant 0 : index
    %767 = vector.load %arg12[%c2_270, %c0_271, %c0_272] : memref<3x1x64xf32, #tpu.memory_space<vmem>>, vector<1x1x64xf32>
    %768 = vector.shape_cast %767 : vector<1x1x64xf32> to vector<1x64xf32>
    %c2_273 = arith.constant 2 : index
    %c0_274 = arith.constant 0 : index
    %c0_275 = arith.constant 0 : index
    %769 = vector.load %arg13[%c2_273, %c0_274, %c0_275] : memref<3x1x64xf32, #tpu.memory_space<vmem>>, vector<1x1x64xf32>
    %770 = vector.shape_cast %769 : vector<1x1x64xf32> to vector<1x64xf32>
    %cst_276 = arith.constant dense<0.000000e+00> : vector<32xf32>
    %771 = vector.multi_reduction <add>, %766, %cst_276 [1] : vector<32x64xf32> to vector<32xf32>
    %772 = vector.shape_cast %771 : vector<32xf32> to vector<32x1xf32>
    %cst_277 = arith.constant 6.400000e+01 : f32
    %773 = vector.broadcast %cst_277 : f32 to vector<32x1xf32>
    %774 = arith.divf %772, %773 : vector<32x1xf32>
    %775 = vector.broadcast %774 : vector<32x1xf32> to vector<32x64xf32>
    %776 = arith.subf %766, %775 : vector<32x64xf32>
    %777 = arith.mulf %776, %776 : vector<32x64xf32>
    %cst_278 = arith.constant dense<0.000000e+00> : vector<32xf32>
    %778 = vector.multi_reduction <add>, %777, %cst_278 [1] : vector<32x64xf32> to vector<32xf32>
    %779 = vector.shape_cast %778 : vector<32xf32> to vector<32x1xf32>
    %cst_279 = arith.constant 6.400000e+01 : f32
    %780 = vector.broadcast %cst_279 : f32 to vector<32x1xf32>
    %781 = arith.divf %779, %780 : vector<32x1xf32>
    %782 = vector.broadcast %774 : vector<32x1xf32> to vector<32x64xf32>
    %783 = arith.subf %766, %782 : vector<32x64xf32>
    %cst_280 = arith.constant 9.99999974E-6 : f32
    %784 = vector.broadcast %cst_280 : f32 to vector<32x1xf32>
    %785 = arith.addf %781, %784 : vector<32x1xf32>
    %786 = math.rsqrt %785 : vector<32x1xf32>
    %787 = vector.broadcast %786 : vector<32x1xf32> to vector<32x64xf32>
    %788 = arith.mulf %783, %787 : vector<32x64xf32>
    %789 = vector.broadcast %768 : vector<1x64xf32> to vector<32x64xf32>
    %790 = arith.mulf %788, %789 : vector<32x64xf32>
    %791 = vector.broadcast %770 : vector<1x64xf32> to vector<32x64xf32>
    %792 = arith.addf %790, %791 : vector<32x64xf32>
    %793 = arith.truncf %792 : vector<32x64xf32> to vector<32x64xbf16>
    %c2_281 = arith.constant 2 : index
    %c0_282 = arith.constant 0 : index
    %c0_283 = arith.constant 0 : index
    %794 = vector.load %arg14[%c2_281, %c0_282, %c0_283] : memref<3x64x256xbf16, #tpu.memory_space<vmem>>, vector<1x64x256xbf16>
    %795 = vector.shape_cast %794 : vector<1x64x256xbf16> to vector<64x256xbf16>
    %cst_284 = arith.constant dense<0.000000e+00> : vector<32x256xf32>
    %796 = tpu.matmul %793, %795, %cst_284 {dimension_numbers = #tpu.dot_dimension_numbers<[1], [0], [0], [1], [0, 0, 1, 1], [], []>} : vector<32x64xbf16>, vector<64x256xbf16>, vector<32x256xf32> -> vector<32x256xf32>
    %c2_285 = arith.constant 2 : index
    %c0_286 = arith.constant 0 : index
    %c0_287 = arith.constant 0 : index
    %797 = vector.load %arg15[%c2_285, %c0_286, %c0_287] : memref<3x1x256xf32, #tpu.memory_space<vmem>>, vector<1x1x256xf32>
    %798 = vector.shape_cast %797 : vector<1x1x256xf32> to vector<1x256xf32>
    %799 = vector.broadcast %798 : vector<1x256xf32> to vector<32x256xf32>
    %800 = arith.addf %796, %799 : vector<32x256xf32>
    %cst_288 = arith.constant 0.000000e+00 : f32
    %801 = vector.broadcast %cst_288 : f32 to vector<32x256xf32>
    %802 = arith.maximumf %800, %801 : vector<32x256xf32>
    %803 = arith.truncf %802 : vector<32x256xf32> to vector<32x256xbf16>
    %c2_289 = arith.constant 2 : index
    %c0_290 = arith.constant 0 : index
    %c0_291 = arith.constant 0 : index
    %804 = vector.load %arg16[%c2_289, %c0_290, %c0_291] : memref<3x256x64xbf16, #tpu.memory_space<vmem>>, vector<1x256x64xbf16>
    %805 = vector.shape_cast %804 : vector<1x256x64xbf16> to vector<256x64xbf16>
    %cst_292 = arith.constant dense<0.000000e+00> : vector<32x64xf32>
    %806 = tpu.matmul %803, %805, %cst_292 {dimension_numbers = #tpu.dot_dimension_numbers<[1], [0], [0], [1], [0, 0, 1, 1], [], []>} : vector<32x256xbf16>, vector<256x64xbf16>, vector<32x64xf32> -> vector<32x64xf32>
    %c2_293 = arith.constant 2 : index
    %c0_294 = arith.constant 0 : index
    %c0_295 = arith.constant 0 : index
    %807 = vector.load %arg17[%c2_293, %c0_294, %c0_295] : memref<3x1x64xf32, #tpu.memory_space<vmem>>, vector<1x1x64xf32>
    %808 = vector.shape_cast %807 : vector<1x1x64xf32> to vector<1x64xf32>
    %809 = vector.broadcast %808 : vector<1x64xf32> to vector<32x64xf32>
    %810 = arith.addf %806, %809 : vector<32x64xf32>
    %811 = arith.addf %792, %810 : vector<32x64xf32>
    %c2_296 = arith.constant 2 : index
    %c0_297 = arith.constant 0 : index
    %c0_298 = arith.constant 0 : index
    %812 = vector.load %arg18[%c2_296, %c0_297, %c0_298] : memref<3x1x64xf32, #tpu.memory_space<vmem>>, vector<1x1x64xf32>
    %813 = vector.shape_cast %812 : vector<1x1x64xf32> to vector<1x64xf32>
    %c2_299 = arith.constant 2 : index
    %c0_300 = arith.constant 0 : index
    %c0_301 = arith.constant 0 : index
    %814 = vector.load %arg19[%c2_299, %c0_300, %c0_301] : memref<3x1x64xf32, #tpu.memory_space<vmem>>, vector<1x1x64xf32>
    %815 = vector.shape_cast %814 : vector<1x1x64xf32> to vector<1x64xf32>
    %cst_302 = arith.constant dense<0.000000e+00> : vector<32xf32>
    %816 = vector.multi_reduction <add>, %811, %cst_302 [1] : vector<32x64xf32> to vector<32xf32>
    %817 = vector.shape_cast %816 : vector<32xf32> to vector<32x1xf32>
    %cst_303 = arith.constant 6.400000e+01 : f32
    %818 = vector.broadcast %cst_303 : f32 to vector<32x1xf32>
    %819 = arith.divf %817, %818 : vector<32x1xf32>
    %820 = vector.broadcast %819 : vector<32x1xf32> to vector<32x64xf32>
    %821 = arith.subf %811, %820 : vector<32x64xf32>
    %822 = arith.mulf %821, %821 : vector<32x64xf32>
    %cst_304 = arith.constant dense<0.000000e+00> : vector<32xf32>
    %823 = vector.multi_reduction <add>, %822, %cst_304 [1] : vector<32x64xf32> to vector<32xf32>
    %824 = vector.shape_cast %823 : vector<32xf32> to vector<32x1xf32>
    %cst_305 = arith.constant 6.400000e+01 : f32
    %825 = vector.broadcast %cst_305 : f32 to vector<32x1xf32>
    %826 = arith.divf %824, %825 : vector<32x1xf32>
    %827 = vector.broadcast %819 : vector<32x1xf32> to vector<32x64xf32>
    %828 = arith.subf %811, %827 : vector<32x64xf32>
    %cst_306 = arith.constant 9.99999974E-6 : f32
    %829 = vector.broadcast %cst_306 : f32 to vector<32x1xf32>
    %830 = arith.addf %826, %829 : vector<32x1xf32>
    %831 = math.rsqrt %830 : vector<32x1xf32>
    %832 = vector.broadcast %831 : vector<32x1xf32> to vector<32x64xf32>
    %833 = arith.mulf %828, %832 : vector<32x64xf32>
    %834 = vector.broadcast %813 : vector<1x64xf32> to vector<32x64xf32>
    %835 = arith.mulf %833, %834 : vector<32x64xf32>
    %836 = vector.broadcast %815 : vector<1x64xf32> to vector<32x64xf32>
    %837 = arith.addf %835, %836 : vector<32x64xf32>
    %c0_307 = arith.constant 0 : index
    %c0_308 = arith.constant 0 : index
    %838 = vector.load %arg20[%c0_307, %c0_308] : memref<32x64xf32, #tpu.memory_space<vmem>>, vector<32x64xf32>
    tpu.vector_store %arg20[%c0_307, %c0_308], %837 {strides = array<i32>} : memref<32x64xf32, #tpu.memory_space<vmem>>, vector<32x64xf32>,
    return
  }
}

</mosaic_0001>

<bundles_post_ra>
// kernel: context_forward.1
= control target key start
LH: loop header
LB: loop body
LE: loop exit
PB: predicated region body
PF: predicated region fallthrough
CT: control target
= control target key end

     0   :  { %s9298_s0 = inlined_call_operand.vmem [shape: f32[32,32], index: 0, kind: input, shape index: {}]   ;;  %s9299_s1 = inlined_call_operand.vmem [shape: f32[1,32], index: 1, kind: input, shape index: {}]   ;;  %s9300_s2 = inlined_call_operand.vmem [shape: f32[1,32], index: 2, kind: input, shape index: {}]   ;;  %s9301_s3 = inlined_call_operand.vmem [shape: bf16[32,64], index: 3, kind: input, shape index: {}]   ;;  %s9302_s4 = inlined_call_operand.vmem [shape: f32[1,64], index: 4, kind: input, shape index: {}]   ;;  %s9303_s5 = inlined_call_operand.vmem [shape: bf16[320,64], index: 5, kind: input, shape index: {}]   ;;  %s9304_s6 = inlined_call_operand.vmem [shape: f32[32,320], index: 6, kind: input, shape index: {}]   ;;  %s9305_s7 = inlined_call_operand.vmem [shape: f32[1,64], index: 7, kind: input, shape index: {}]   ;;  %s9306_s8 = inlined_call_operand.vmem [shape: bf16[3,64,192], index: 8, kind: input, shape index: {}]   ;;  %s9307_s9 = inlined_call_operand.vmem [shape: f32[3,1,192], index: 9, kind: input, shape index: {}]   ;;  %s9308_s10 = inlined_call_operand.vmem [shape: bf16[3,64,64], index: 10, kind: input, shape index: {}]   ;;  %s9309_s11 = inlined_call_operand.vmem [shape: f32[3,1,64], index: 11, kind: input, shape index: {}]   ;;  %s9310_s12 = inlined_call_operand.vmem [shape: f32[3,1,64], index: 12, kind: input, shape index: {}]   ;;  %s9311_s13 = inlined_call_operand.vmem [shape: f32[3,1,64], index: 13, kind: input, shape index: {}]   ;;  %s9312_s14 = inlined_call_operand.vmem [shape: bf16[3,64,256], index: 14, kind: input, shape index: {}]   ;;  %s9313_s15 = inlined_call_operand.vmem [shape: f32[3,1,256], index: 15, kind: input, shape index: {}]   ;;  %s9314_s16 = inlined_call_operand.vmem [shape: bf16[3,256,64], index: 16, kind: input, shape index: {}]   ;;  %s9315_s17 = inlined_call_operand.vmem [shape: f32[3,1,64], index: 17, kind: input, shape index: {}]   ;;  %s9316_s18 = inlined_call_operand.vmem [shape: f32[3,1,64], index: 18, kind: input, shape index: {}]   ;;  %s9317_s19 = inlined_call_operand.vmem [shape: f32[3,1,64], index: 19, kind: input, shape index: {}]   ;;  %s9318_s20 = inlined_call_operand.hbm [shape: f32[32,64], index: 20, kind: output, shape index: {}]  }
   0x1   :  { %9321 = sst [smem:[#allocation5_spill]] %s9298_s0 }
   0x2   :  { %9322 = sst [smem:[#allocation6_spill]] %s9299_s1 }
   0x3   :  { %9323 = sst [smem:[#allocation7_spill]] %s9300_s2 }
   0x4   :  { %9324 = sst [smem:[#allocation8_spill]] %s9301_s3 }
   0x5   :  { %9325 = sst [smem:[#allocation9_spill]] %s9302_s4 }
   0x6   :  { %s9326_s23 = sld [smem:[#allocation5_spill]]  ;;  %vm73_vm0 = vcmask 261120  }
   0xc   :  { %v67_v0 = vld [vmem:[%s9326_s23] sm:$0xff]  ;;  %v69_v1 = vld [vmem:[%s9326_s23 + $0x10] sm:$0xff]  ;;  %v68_v2 = vld [vmem:[%s9326_s23 + $0x8] sm:$0xff] }
   0xd   :  { %v74_v3 = vsel %vm73_vm0, %v67_v0, 0.0  ;;  %v80_v4 = vsel %vm73_vm0, %v69_v1, 0.0  ;;  %v77_v5 = vsel %vm73_vm0, %v68_v2, 0.0  ;;  %v70_v6 = vld [vmem:[%s9326_s23 + $0x18] sm:$0xff] }
   0xe   :  { %75 = vadd.xlane.f32.xlu0 %v74_v3  ;;  %81 = vadd.xlane.f32.xlu1 %v80_v4  ;;  %v83_v7 = vsel %vm73_vm0, %v70_v6, 0.0 }
  0x12   :  { %78 = vadd.xlane.f32.xlu0 %v77_v5  ;;  %84 = vadd.xlane.f32.xlu1 %v83_v7 }
  0x13   :  { %25 = vsyncpa [#allocation3], 0  ;;  %s9327_s29 = sld [smem:[#allocation8_spill]]  ;;  %v6973_v62 = vld [vmem:[%s9303_s5 + $0x98] sm:$0xff]   ;;  %v6974_v63 = vld [vmem:[%s9303_s5 + $0x90] sm:$0xff]   ;;  %vm297_vm4 = vcmask 523264  }
  0x14   :  { %s9328_s22 = sld [smem:[#allocation6_spill]]  ;;  %v6978_v3 = vld [vmem:[%s9303_s5 + $0x38] sm:$0xff]   ;;  %v6979_v4 = vld [vmem:[%s9303_s5 + $0x70] sm:$0xff]   ;;  %v6982_v7 = vld [vmem:[%s9303_s5 + $0x28] sm:$0xff]   ;;  %vm7414_vm10 = vmmov 0   ;;  %s7415_s1 = smov 48  }
  0x15   :  { %s9329_s2 = sld [smem:[#allocation7_spill]]  ;;  %v6980_v5 = vld [vmem:[%s9303_s5 + $0x30] sm:$0xff]   ;;  %s7418_s23 = smov 16   ;;  %vm847_vm11 = vcmask 130048   ;;  %vm1356_vm12 = vcmask 392192  }
  0x16   :  { %s9330_s28 = sld [smem:[#allocation9_spill]]  ;;  %s7419_s24 = smov 96  }
  0x19   :  { %v6971_v28 = vld [vmem:[%s9327_s29 + $0x8] sm:$0xff]   ;;  %v6972_v29 = vld [vmem:[%s9327_s29] sm:$0xff]  }
  0x1a   :  { %6524 = vmatprep.subr.bf16.mxu0 %v6971_v28  ;;  %v5938_v44 = vld [vmem:[%s9328_s22] ss:$0 sm:$0xff]  ;;  %s7417_s22 = smov 112  }
  0x1b   :  { %6525 = vmatpush3.bf16.msra.mxu0 %v6971_v28  ;;  %v5939_v49 = vld [vmem:[%s9329_s2] ss:$0 sm:$0xff]  ;;  %s7420_s2 = smov 80  }
  0x1c   :  { %6526 = vmatprep.subr.bf16.mxu0 %v6972_v29 }
  0x1f   :  { %6527 = vmatpush3.bf16.msra.mxu0 %v6972_v29 }
  0x20   :  { %6532 = vmatprep.subr.bf16.mxu0 %v6973_v62 }
  0x97   :  { %v76_v8 = vpop.xlane.xlu0 %75  ;;  %v82_v9 = vpop.xlane.xlu1 %81 }
  0x98   :  { %v87_v10 = vmul.f32 0.03125, %v76_v8  ;;  %v89_v11 = vmul.f32 0.03125, %v82_v9  ;;  %v6983_v8 = vld [vmem:[%s9303_s5 + $0x60] sm:$0xff]  }
  0x99   :  { %v6984_v9 = vld [vmem:[%s9303_s5 + $0x20] sm:$0xff]  }
  0x9a   :  { %v91_v12 = vsub.f32 %v67_v0, %v87_v10  ;;  %v93_v13 = vsub.f32 %v69_v1, %v89_v11  ;;  %v6975_v0 = vld [vmem:[%s9303_s5 + $0x88] sm:$0xff]   ;;  %v6976_v1 = vld [vmem:[%s9303_s5 + $0x80] sm:$0xff]   ;;  %v6985_v10 = vld [vmem:[%s9303_s5 + $0x58] sm:$0xff]  }
  0x9b   :  { %v79_v14 = vpop.xlane.xlu0 %78  ;;  %v85_v15 = vpop.xlane.xlu1 %84  ;;  %v6986_v11 = vld [vmem:[%s9303_s5 + $0x18] sm:$0xff]  }
  0x9c   :  { %v88_v16 = vmul.f32 0.03125, %v79_v14  ;;  %v90_v17 = vmul.f32 0.03125, %v85_v15  ;;  %v95_v18 = vmul.f32 %v91_v12, %v91_v12  ;;  %v97_v19 = vmul.f32 %v93_v13, %v93_v13  ;;  %v6988_v14 = vld [vmem:[%s9303_s5 + $0x10] sm:$0xff]  }
  0x9e   :  { %v92_v20 = vsub.f32 %v68_v2, %v88_v16  ;;  %v94_v21 = vsub.f32 %v70_v6, %v90_v17  ;;  %v99_v22 = vsel %vm73_vm0, %v95_v18, 0.0  ;;  %v105_v23 = vsel %vm73_vm0, %v97_v19, 0.0  ;;  %v6977_v2 = vld [vmem:[%s9303_s5 + $0x78] sm:$0xff]   ;;  %v6981_v6 = vld [vmem:[%s9303_s5 + $0x68] sm:$0xff]   ;;  %v5940_v16 = vld [vmem:[%s9330_s28] ss:$0 sm:$0xff] }
  0x9f   :  { %100 = vadd.xlane.f32.xlu0 %v99_v22  ;;  %6292 = vmatprep.subr.bf16.mxu1 %v6977_v2  ;;  %v6989_v17 = vld [vmem:[%s9303_s5 + $0x48] sm:$0xff]  }
  0xa0   :  { %v96_v24 = vmul.f32 %v92_v20, %v92_v20  ;;  %v98_v25 = vmul.f32 %v94_v21, %v94_v21  ;;  %6293 = vmatpush3.bf16.msra.mxu1 %v6978_v3  ;;  %v307_v3 = vld [vmem:[%s9304_s6 + $0x8] sm:$0xff] }
  0xa1   :  { %6294 = vmatprep.subr.bf16.mxu1 %v6979_v4  ;;  %v310_v4 = vld [vmem:[%s9304_s6 + $0x20] sm:$0xff] }
  0xa2   :  { %v102_v26 = vsel %vm73_vm0, %v96_v24, 0.0  ;;  %v108_v27 = vsel %vm73_vm0, %v98_v25, 0.0 }
  0xa3   :  { %106 = vadd.xlane.f32.xlu0 %v105_v23  ;;  %103 = vadd.xlane.f32.xlu1 %v102_v26  ;;  %v6990_v23 = vld [vmem:[%s9303_s5 + $0x8] sm:$0xff]   ;;  %v6991_v26 = vld [vmem:[%s9303_s5 + $0x40] sm:$0xff]  }
  0xa4   :  { %6295 = vmatpush3.bf16.msra.mxu1 %v6980_v5 }
  0xa5   :  { %6296 = vmatprep.subr.bf16.mxu1 %v6981_v6 }
  0xa7   :  { %109 = vadd.xlane.f32.xlu1 %v108_v27 }
  0xa8   :  { %6297 = vmatpush3.bf16.msra.mxu1 %v6982_v7 }
  0xa9   :  { %6298 = vmatprep.subr.bf16.mxu1 %v6983_v8 }
  0xac   :  { %6299 = vmatpush3.bf16.msra.mxu1 %v6984_v9 }
  0xad   :  { %6300 = vmatprep.subr.bf16.mxu1 %v6985_v10 }
  0xb0   :  { %6301 = vmatpush3.bf16.msra.mxu1 %v6986_v11 }
 0x128   :  { %v101_v30 = vpop.xlane.xlu0 %100 }
 0x129   :  { %v111_v31 = vmul.f32 0.03125, %v101_v30 }
 0x12b   :  { %v115_v32 = vadd.f32 1e-05, %v111_v31 }
 0x12c   :  { %v104_v33 = vpop.xlane.xlu1 %103  ;;  %v107_v34 = vpop.xlane.xlu0 %106 }
 0x12d   :  { %7125 = vrsqrt.f32 %v115_v32  ;;  %v112_v35 = vmul.f32 0.03125, %v104_v33  ;;  %v113_v36 = vmul.f32 0.03125, %v107_v34  ;;  %v314_v33 = vld [vmem:[%s9304_s6 + $0x40] sm:$0xff] }
 0x12e   :  { %v6992_v34 = vld [vmem:[%s9303_s5] sm:$0xff]  }
 0x12f   :  { %v116_v37 = vadd.f32 1e-05, %v112_v35  ;;  %v117_v38 = vadd.f32 1e-05, %v113_v36 }
 0x130   :  { %v110_v39 = vpop.xlane.xlu1 %109 }
 0x131   :  { %7127 = vrsqrt.f32 %v116_v37  ;;  %v114_v40 = vmul.f32 0.03125, %v110_v39  ;;  %v308_v39 = vld [vmem:[%s9304_s6 + $0x10] sm:$0xff] }
 0x132   :  { %7129 = vrsqrt.f32 %v117_v38 }
 0x133   :  { %v118_v41 = vadd.f32 1e-05, %v114_v40  ;;  %v311_v40 = vld [vmem:[%s9304_s6 + $0x28] sm:$0xff] }
 0x135   :  { %7131 = vrsqrt.f32 %v118_v41  ;;  %v317_v41 = vld [vmem:[%s9304_s6 + $0x58] sm:$0xff] }
 0x13a   :  { %v7126_v42 = vpop.eup %7125 }
 0x13b   :  { %v123_v43 = vmul.f32 %v7126_v42, %v91_v12  ;;  %v231_v12 = vlaneseq }
 0x13d   :  { %v133_v48 = vmul.f32 %v5938_v44, %v123_v43  ;;  %v7617_v19 = vshrl.u32 %v231_v12, 7 }
 0x13e   :  { %v7128_v45 = vpop.eup %7127 }
 0x13f   :  { %v7130_v46 = vpop.eup %7129  ;;  %v124_v47 = vmul.f32 %v7128_v45, %v92_v20  ;;  %v143_v53 = vadd.f32 %v5939_v49, %v133_v48  ;;  %vm242_vm1 = vcmp.lt.s32.totalorder %v7617_v19, 1  ;;  %vm260_vm2 = vcmp.lt.s32.totalorder %v7617_v19, 6 }
 0x140   :  { %v125_v50 = vmul.f32 %v7130_v46, %v93_v13  ;;  %v6987_v13 = vld [vmem:[%s9303_s5 + $0x50] sm:$0xff]   ;;  %s7411_s5 = smov 64   ;;  %vm251_vm3 = vcmp.lt.s32.totalorder %v7617_v19, 7  ;;  %vm233_vm5 = vcmp.lt.s32.totalorder %v7617_v19, 2 }
 0x141   :  { %v134_v51 = vmul.f32 %v5938_v44, %v124_v47  ;;  %6302 = vmatprep.subr.bf16.mxu1 %v6987_v13  ;;  %v306_v13 = vld [vmem:[%s9304_s6] sm:$0xff] }
 0x142   :  { %v7132_v52 = vpop.eup %7131  ;;  %v135_v56 = vmul.f32 %v5938_v44, %v125_v50  ;;  %6303 = vmatpush3.bf16.msra.mxu1 %v6988_v14 }
 0x143   :  { %v144_v54 = vadd.f32 %v5939_v49, %v134_v51  ;;  %v126_v55 = vmul.f32 %v7132_v52, %v94_v21  ;;  %6304 = vmatprep.subr.bf16.mxu1 %v6989_v17 }
 0x144   :  { %v145_v59 = vadd.f32 %v5939_v49, %v135_v56 }
 0x145   :  { %v147_v57 = vpack.c.bf16 %v144_v54, %v143_v53  ;;  %v136_v58 = vmul.f32 %v5938_v44, %v126_v55 }
 0x146   :  { %6305 = vmatpush3.bf16.msra.mxu1 %v6990_v23 }
 0x147   :  { %6528 = vmatprep.mubr.msk.bf16.mxu0 %vm73_vm0, %v147_v57  ;;  %v146_v60 = vadd.f32 %v5939_v49, %v136_v58  ;;  %6306 = vmatprep.subr.bf16.mxu1 %v6991_v26  ;;  %v313_v26 = vld [vmem:[%s9304_s6 + $0x38] sm:$0xff] }
 0x149   :  { %v148_v61 = vpack.c.bf16 %v146_v60, %v145_v59 }
 0x14a   :  { %6307 = vmatpush3.bf16.msra.mxu1 %v6992_v34 }
 0x14b   :  { %6529 = vmatmul.mubr.msk.bf16.vlgmr.msra.gmra.mxu0 %vm73_vm0, %v148_v61 }
 0x14c   :  { %6533 = vmatpush3.bf16.msra.mxu0 %v6973_v62 }
 0x14d   :  { %6534 = vmatprep.subr.bf16.mxu0 %v6974_v63 }
 0x150   :  { %6535 = vmatpush3.bf16.msra.mxu0 %v6974_v63 }
 0x151   :  { %6536 = vmatprep.subr.bf16.mxu0 %v6975_v0 }
 0x154   :  { %6537 = vmatpush3.bf16.msra.mxu0 %v6975_v0 }
 0x155   :  { %6538 = vmatprep.subr.bf16.mxu0 %v6976_v1 }
 0x158   :  { %6539 = vmatpush3.bf16.msra.mxu0 %v6976_v1 }
 0x20b   :  { %v6530_v15 = vpop.f32.mrf.mxu0 }
 0x20c   :  { %v7621_v21 = vadd.f32 %v6530_v15, %v5940_v16  ;;  %v309_v15 = vld [vmem:[%s9304_s6 + $0x18] sm:$0xff] }
 0x20d   :  { %v212_v18 = vpop.f32.mrf.mxu0 }
 0x20e   :  { %v7619_v20 = vadd.f32 %v5940_v16, %v212_v18  ;;  %v258_v32 = vrot.slane %v7621_v21, 2  ;;  %v249_v42 = vrot.slane %v7621_v21, 1  ;;  %v240_v59 = vrot.slane %v7621_v21, 7 }
 0x20f   :  { %v6531_v22 = vpop.f32.mrf.mxu0 }
 0x210   :  { %v7626_v24 = vadd.f32 %v6531_v22, %v5940_v16  ;;  %v238_v29 = vrot.slane %v7619_v20, 7  ;;  %v256_v31 = vrot.slane %v7619_v20, 2  ;;  %v247_v36 = vrot.slane %v7619_v20, 1 }
 0x211   :  { %v215_v25 = vpop.f32.mrf.mxu0  ;;  %v227_v5 = vrot.slane %v7619_v20, 6 }
 0x212   :  { %v259_v27 = vrot.slane %v7626_v24, 2  ;;  %v7634_v28 = vadd.f32 %v5940_v16, %v215_v25  ;;  %v241_v30 = vrot.slane %v7626_v24, 7  ;;  %v250_v48 = vrot.slane %v7626_v24, 1 }
 0x213   :  { %v230_v0 = vrot.slane %v7626_v24, 6 }
 0x214   :  { %v246_v35 = vsel %vm242_vm1, %v241_v30, %v238_v29  ;;  %v248_v37 = vrot.slane %v7634_v28, 1  ;;  %v257_v38 = vrot.slane %v7634_v28, 2  ;;  %v261_v43 = vsel %vm260_vm2, %v258_v32, %v259_v27 }
 0x215   :  { %269 = vrot.lane.b32.xlu1 %v246_v35, %s7411_s5  ;;  %v264_v44 = vsel %vm260_vm2, %v259_v27, %v256_v31  ;;  %v326_v51 = vmul.f32 %v314_v33, %v261_v43  ;;  %v239_v54 = vrot.slane %v7634_v28, 7  ;;  %v252_v56 = vsel %vm251_vm3, %v249_v42, %v250_v48 }
 0x216   :  { %v254_v45 = vsel %vm251_vm3, %v247_v36, %v248_v37  ;;  %v262_v46 = vsel %vm260_vm2, %v257_v38, %v258_v32  ;;  %v263_v47 = vsel %vm260_vm2, %v256_v31, %v257_v38  ;;  %v329_v52 = vmul.f32 %v317_v41, %v264_v44  ;;  %v312_v38 = vld [vmem:[%s9304_s6 + $0x30] sm:$0xff] }
 0x217   :  { %285 = vrot.lane.b32.xlu0 %v254_v45, %s7411_s5  ;;  %v320_v49 = vmul.f32 %v308_v39, %v263_v47  ;;  %v323_v50 = vmul.f32 %v311_v40, %v262_v46  ;;  %v253_v53 = vsel %vm251_vm3, %v248_v37, %v249_v42  ;;  %v245_v58 = vsel %vm242_vm1, %v238_v29, %v239_v54  ;;  %v316_v29 = vld [vmem:[%s9304_s6 + $0x50] sm:$0xff]  ;;  %v315_v40 = vld [vmem:[%s9304_s6 + $0x48] sm:$0xff]  ;;  %s7416_s6 = smov 32  }
 0x218   :  { %v335_v57 = vpack.c.bf16 %v329_v52, %v326_v51  ;;  %v244_v60 = vsel %vm242_vm1, %v239_v54, %v240_v59  ;;  %v255_v61 = vsel %vm251_vm3, %v250_v48, %v247_v36  ;;  %v243_v62 = vsel %vm242_vm1, %v240_v59, %v241_v30  ;;  %v6995_v48 = vld [vmem:[%s9306_s8 + $0x34] ss:$8 sps:$4 sm:$0xff]   ;;  %v6996_v51 = vld [vmem:[%s9306_s8 + $0x20] ss:$8 sps:$4 sm:$0xff]   ;;  %v7004_v54 = vld [vmem:[%s9306_s8 + $0x4] ss:$8 sps:$4 sm:$0xff]  }
 0x219   :  { %287 = vrot.lane.b32.xlu1 %v253_v53, %s7411_s5  ;;  %v332_v55 = vpack.c.bf16 %v323_v50, %v320_v49  ;;  %v228_v7 = vrot.slane %v7634_v28, 6  ;;  %v237_v9 = vsel %vm233_vm5, %v230_v0, %v227_v5  ;;  %v229_v30 = vrot.slane %v7621_v21, 6  ;;  %v6993_v49 = vld [vmem:[%s9306_s8 + $0x30] ss:$8 sps:$4 sm:$0xff]   ;;  %795 = vmatprep.subr.bf16.mxu0 %v6995_v48  ;;  %v6998_v50 = vld [vmem:[%s9306_s8 + $0x24] ss:$8 sps:$4 sm:$0xff]  }
 0x21a   :  { %v7001_v52 = vld [vmem:[%s9306_s8 + $0x14] ss:$8 sps:$4 sm:$0xff]   ;;  %v6999_v53 = vld [vmem:[%s9306_s8 + $0x10] ss:$8 sps:$4 sm:$0xff]  }
 0x21b   :  { %6540 = vmatprep.mubr.msk.bf16.mxu0 %vm297_vm4, %v332_v55  ;;  %289 = vrot.lane.b32.xlu0 %v252_v56, %s7411_s5  ;;  %v236_v17 = vsel %vm233_vm5, %v227_v5, %v228_v7  ;;  %v235_v36 = vsel %vm233_vm5, %v228_v7, %v229_v30  ;;  %v234_v41 = vsel %vm233_vm5, %v229_v30, %v230_v0  ;;  %v7002_v55 = vld [vmem:[%s9306_s8] ss:$8 sps:$4 sm:$0xff]   ;;  %v7412_v56 = vmov 0  }
 0x21c   :  { %6541 = vmatmul.mubr.msk.bf16.vlgmr.msra.gmra.mxu0 %vm297_vm4, %v335_v57 }
 0x21d   :  { %271 = vrot.lane.b32.xlu1 %v245_v58, %s7411_s5  ;;  %796 = vmatpush1.bf16.msra.mxu0 %v6993_v49 }
 0x21e   :  { %797 = vmatprep.subr.bf16.mxu0 %v6998_v50  ;;  %819 = vmatprep.mubr.bf16.mxu0 %v7412_v56 }
 0x21f   :  { %273 = vrot.lane.b32.xlu0 %v244_v60, %s7411_s5  ;;  %v5945_v60 = vld [vmem:[%s9305_s7] ss:$0 sm:$0xff] }
 0x221   :  { %291 = vrot.lane.b32.xlu1 %v255_v61, %s7411_s5  ;;  %798 = vmatpush1.bf16.msra.mxu0 %v6996_v51 }
 0x222   :  { %799 = vmatprep.subr.bf16.mxu0 %v7001_v52 }
 0x225   :  { %275 = vrot.lane.b32.xlu1 %v243_v62, %s7411_s5  ;;  %800 = vmatpush1.bf16.msra.mxu0 %v6999_v53 }
 0x226   :  { %801 = vmatprep.subr.bf16.mxu0 %v7004_v54 }
 0x229   :  { %802 = vmatpush1.bf16.msra.mxu0 %v7002_v55 }
 0x287   :  { %v270_v63 = vpop.permute.xlu1 %269 }
 0x288   :  { %v298_v14 = vsel %vm297_vm4, %v237_v9, %v270_v63 }
 0x289   :  { %v286_v1 = vpop.permute.xlu0 %285  ;;  %v318_v23 = vmul.f32 %v306_v13, %v298_v14 }
 0x28a   :  { %v302_v2 = vsel %vm297_vm4, %v7619_v20, %v286_v1 }
 0x28b   :  { %v288_v6 = vpop.permute.xlu1 %287  ;;  %v319_v11 = vmul.f32 %v307_v3, %v302_v2 }
 0x28c   :  { %v303_v8 = vsel %vm297_vm4, %v7634_v28, %v288_v6 }
 0x28d   :  { %v290_v10 = vpop.permute.xlu0 %289  ;;  %v322_v12 = vmul.f32 %v310_v4, %v303_v8 }
 0x28e   :  { %v304_v27 = vsel %vm297_vm4, %v7621_v21, %v290_v10 }
 0x28f   :  { %v272_v16 = vpop.permute.xlu1 %271  ;;  %v331_v18 = vpack.c.bf16 %v322_v12, %v319_v11  ;;  %v325_v35 = vmul.f32 %v313_v26, %v304_v27 }
 0x290   :  { %v299_v22 = vsel %vm297_vm4, %v236_v17, %v272_v16 }
 0x291   :  { %v321_v25 = vmul.f32 %v309_v15, %v299_v22  ;;  %541 = vmatprep.mubr.bf16.mxu1 %v331_v18  ;;  %v274_v31 = vpop.permute.xlu0 %273 }
 0x292   :  { %v300_v39 = vsel %vm297_vm4, %v235_v36, %v274_v31 }
 0x293   :  { %v292_v32 = vpop.permute.xlu1 %291  ;;  %v330_v33 = vpack.c.bf16 %v321_v25, %v318_v23  ;;  %v324_v45 = vmul.f32 %v312_v38, %v300_v39 }
 0x294   :  { %v305_v34 = vsel %vm297_vm4, %v7626_v24, %v292_v32 }
 0x295   :  { %v328_v37 = vmul.f32 %v316_v29, %v305_v34  ;;  %542 = vmatmul.mubr.bf16.vlgmr.msra.gmra.mxu1 %v330_v33 }
 0x297   :  { %v276_v42 = vpop.permute.xlu1 %275  ;;  %v334_v43 = vpack.c.bf16 %v328_v37, %v325_v35 }
 0x298   :  { %v301_v44 = vsel %vm297_vm4, %v234_v41, %v276_v42 }
 0x299   :  { %v327_v46 = vmul.f32 %v315_v40, %v301_v44  ;;  %549 = vmatprep.mubr.bf16.mxu1 %v334_v43 }
 0x29b   :  { %v333_v47 = vpack.c.bf16 %v327_v46, %v324_v45 }
 0x29d   :  { %550 = vmatmul.mubr.bf16.gmra.mxu1 %v333_v47 }
 0x2dc   :  { %v6542_v57 = vpop.f32.mrf.mxu0 }
 0x2de   :  { %v592_v59 = vpop.f32.mrf.mxu0 }
 0x2e0   :  { %v6543_v1 = vpop.f32.mrf.mxu0 }
 0x2e2   :  { %v595_v8 = vpop.f32.mrf.mxu0 }
 0x355   :  { %v6308_v58 = vpop.f32.mrf.mxu1 }
 0x357   :  { %v6309_v61 = vpop.f32.mrf.mxu1 }
 0x358   :  { %v6310_v62 = vadd.f32 %v6309_v61, %v6308_v58 }
 0x359   :  { %v6311_v63 = vpop.f32.mrf.mxu1 }
 0x35a   :  { %v544_v0 = vadd.f32 %v6310_v62, %v5945_v60 }
 0x35b   :  { %v6312_v2 = vpop.f32.mrf.mxu1 }
 0x35c   :  { %v7774_v3 = vadd.f32 %v592_v59, %v544_v0  ;;  %v6313_v4 = vadd.f32 %v6312_v2, %v6311_v63 }
 0x35d   :  { %v6314_v5 = vpop.f32.mrf.mxu1 }
 0x35e   :  { %v7777_v6 = vmul.f32 0.70710677, %v7774_v3  ;;  %v547_v7 = vadd.f32 %v6313_v4, %v5945_v60 }
 0x35f   :  { %v6315_v9 = vpop.f32.mrf.mxu1 }
 0x360   :  { %v615_v10 = vand.u32 2147483647, %v7777_v6  ;;  %v7780_v11 = vadd.f32 %v595_v8, %v547_v7  ;;  %v6316_v12 = vadd.f32 %v6315_v9, %v6314_v5  ;;  %vm695_vm6 = vcmp.ge.f32.partialorder %v7777_v6, 0.0 }
 0x361   :  { %v6317_v13 = vpop.f32.mrf.mxu1 }
 0x362   :  { %v619_v14 = vmul.f32 0.3275911, %v615_v10  ;;  %v7783_v15 = vmul.f32 0.70710677, %v7780_v11  ;;  %v552_v16 = vadd.f32 %v6316_v12, %v5945_v60  ;;  %v671_v35 = vsub.f32 0.0, %v615_v10 }
 0x363   :  { %v6318_v17 = vpop.f32.mrf.mxu1 }
 0x364   :  { %v623_v18 = vadd.f32 1.0, %v619_v14  ;;  %v616_v22 = vand.u32 2147483647, %v7783_v15  ;;  %v7786_v23 = vadd.f32 %v6542_v57, %v552_v16  ;;  %v6319_v25 = vadd.f32 %v6318_v17, %v6317_v13 }
 0x365   :  { %v675_v39 = vmul.f32 %v671_v35, %v615_v10  ;;  %vm696_vm7 = vcmp.ge.f32.partialorder %v7783_v15, 0.0 }
 0x366   :  { %7133 = vrcp.f32 %v623_v18  ;;  %v620_v26 = vmul.f32 0.3275911, %v616_v22  ;;  %v7789_v27 = vmul.f32 0.70710677, %v7786_v23  ;;  %v555_v29 = vadd.f32 %v6319_v25, %v5945_v60 }
 0x367   :  { %v672_v40 = vsub.f32 0.0, %v616_v22  ;;  %v679_v44 = vmul.f32 1.442695, %v675_v39 }
 0x368   :  { %v624_v30 = vadd.f32 1.0, %v620_v26  ;;  %v617_v31 = vand.u32 2147483647, %v7789_v27  ;;  %v7792_v32 = vadd.f32 %v6543_v1, %v555_v29  ;;  %vm697_vm8 = vcmp.ge.f32.partialorder %v7789_v27, 0.0 }
 0x369   :  { %v676_v45 = vmul.f32 %v672_v40, %v616_v22 }
 0x36a   :  { %7135 = vrcp.f32 %v624_v30  ;;  %v621_v33 = vmul.f32 0.3275911, %v617_v31  ;;  %v7795_v34 = vmul.f32 0.70710677, %v7792_v32  ;;  %v673_v46 = vsub.f32 0.0, %v617_v31 }
 0x36b   :  { %v681_v51 = vmul.f32 1.442695, %v676_v45 }
 0x36c   :  { %v625_v36 = vadd.f32 1.0, %v621_v33  ;;  %v618_v37 = vand.u32 2147483647, %v7795_v34  ;;  %v677_v52 = vmul.f32 %v673_v46, %v617_v31  ;;  %vm698_vm9 = vcmp.ge.f32.partialorder %v7795_v34, 0.0 }
 0x36d   :  { %v7826_v34 = vsub.s32 0, %v7617_v19 }
 0x36e   :  { %7137 = vrcp.f32 %v625_v36  ;;  %v622_v38 = vmul.f32 0.3275911, %v618_v37  ;;  %v674_v53 = vsub.f32 0.0, %v618_v37  ;;  %v683_v61 = vmul.f32 1.442695, %v677_v52 }
 0x370   :  { %v626_v41 = vadd.f32 1.0, %v622_v38  ;;  %v678_v62 = vmul.f32 %v674_v53, %v618_v37  ;;  %v608_v53 = vmul.f32 0.5, %v7780_v11 }
 0x372   :  { %7139 = vrcp.f32 %v626_v41  ;;  %v685_v9 = vmul.f32 1.442695, %v678_v62 }
 0x373   :  { %v7134_v42 = vpop.eup %7133  ;;  %7141 = vpow2.f32 %v679_v44 }
 0x374   :  { %v635_v43 = vmul.f32 1.0614054, %v7134_v42  ;;  %7143 = vpow2.f32 %v681_v51  ;;  %v607_v51 = vmul.f32 0.5, %v7774_v3 }
 0x375   :  { %7145 = vpow2.f32 %v683_v61 }
 0x376   :  { %v639_v47 = vadd.f32 -1.4531521, %v635_v43  ;;  %7147 = vpow2.f32 %v685_v9 }
 0x377   :  { %v7136_v48 = vpop.eup %7135 }
 0x378   :  { %v643_v49 = vmul.f32 %v7134_v42, %v639_v47  ;;  %v636_v50 = vmul.f32 1.0614054, %v7136_v48 }
 0x37a   :  { %v647_v54 = vadd.f32 1.4214138, %v643_v49  ;;  %v640_v55 = vadd.f32 -1.4531521, %v636_v50 }
 0x37b   :  { %v7138_v57 = vpop.eup %7137 }
 0x37c   :  { %v651_v58 = vmul.f32 %v7134_v42, %v647_v54  ;;  %v644_v59 = vmul.f32 %v7136_v48, %v640_v55  ;;  %v637_v60 = vmul.f32 1.0614054, %v7138_v57 }
 0x37e   :  { %v655_v63 = vadd.f32 -0.28449672, %v651_v58  ;;  %v648_v0 = vadd.f32 1.4214138, %v644_v59  ;;  %v641_v1 = vadd.f32 -1.4531521, %v637_v60 }
 0x37f   :  { %v7140_v2 = vpop.eup %7139 }
 0x380   :  { %v659_v4 = vmul.f32 %v7134_v42, %v655_v63  ;;  %v652_v5 = vmul.f32 %v7136_v48, %v648_v0  ;;  %v645_v7 = vmul.f32 %v7138_v57, %v641_v1  ;;  %v638_v8 = vmul.f32 1.0614054, %v7140_v2  ;;  %v7142_v18 = vpop.eup %7141 }
 0x381   :  { %v7144_v36 = vpop.eup %7143 }
 0x382   :  { %v663_v10 = vadd.f32 0.2548296, %v659_v4  ;;  %v656_v12 = vadd.f32 -0.28449672, %v652_v5  ;;  %v649_v13 = vadd.f32 1.4214138, %v645_v7  ;;  %v7146_v49 = vpop.eup %7145 }
 0x383   :  { %v642_v14 = vadd.f32 -1.4531521, %v638_v8  ;;  %v7148_v60 = vpop.eup %7147 }
 0x384   :  { %v667_v16 = vmul.f32 %v7134_v42, %v663_v10  ;;  %v660_v17 = vmul.f32 %v7136_v48, %v656_v12  ;;  %v653_v22 = vmul.f32 %v7138_v57, %v649_v13  ;;  %v7413_v10 = vmov 0.0  }
 0x385   :  { %v646_v25 = vmul.f32 %v7140_v2, %v642_v14  ;;  %6544 = vmatprep.subr.bf16.mxu0 %v7413_v10  ;;  %6556 = vmatprep.subr.bf16.mxu1 %v7413_v10 }
 0x386   :  { %v687_v26 = vmul.f32 %v7142_v18, %v667_v16  ;;  %v664_v29 = vadd.f32 0.2548296, %v660_v17  ;;  %v657_v30 = vadd.f32 -0.28449672, %v653_v22  ;;  %6558 = vmatprep.mubr.msk.bf16.mxu1 %vm7414_vm10, %v7413_v10  ;;  %v7839_v17 = vsub.s32 1, %v7617_v19 }
 0x387   :  { %v650_v31 = vadd.f32 1.4214138, %v646_v25 }
 0x388   :  { %v691_v33 = vsub.f32 1.0, %v687_v26  ;;  %v668_v35 = vmul.f32 %v7136_v48, %v664_v29  ;;  %v661_v37 = vmul.f32 %v7138_v57, %v657_v30 }
 0x389   :  { %v654_v38 = vmul.f32 %v7140_v2, %v650_v31 }
 0x38a   :  { %v699_v39 = vsub.f32 0.0, %v691_v33  ;;  %v688_v40 = vmul.f32 %v7144_v36, %v668_v35  ;;  %v665_v41 = vadd.f32 0.2548296, %v661_v37 }
 0x38b   :  { %v658_v42 = vadd.f32 -0.28449672, %v654_v38 }
 0x38c   :  { %v703_v43 = vsel %vm695_vm6, %v691_v33, %v699_v39  ;;  %v692_v44 = vsub.f32 1.0, %v688_v40  ;;  %v669_v46 = vmul.f32 %v7138_v57, %v665_v41 }
 0x38d   :  { %v707_v45 = vadd.f32 1.0, %v703_v43  ;;  %v662_v47 = vmul.f32 %v7140_v2, %v658_v42 }
 0x38e   :  { %v700_v50 = vsub.f32 0.0, %v692_v44  ;;  %v689_v48 = vmul.f32 %v7146_v49, %v669_v46 }
 0x38f   :  { %v666_v52 = vadd.f32 0.2548296, %v662_v47  ;;  %v711_v55 = vmul.f32 %v707_v45, %v607_v51 }
 0x390   :  { %v704_v54 = vsel %vm696_vm7, %v692_v44, %v700_v50  ;;  %v693_v58 = vsub.f32 1.0, %v689_v48 }
 0x391   :  { %v708_v6 = vadd.f32 1.0, %v704_v54  ;;  %v670_v59 = vmul.f32 %v7140_v2, %v666_v52  ;;  %v7804_v63 = vadd.f32 %v711_v55, %v7619_v20  ;;  %v609_v2 = vmul.f32 0.5, %v7786_v23 }
 0x392   :  { %v701_v62 = vsub.f32 0.0, %v693_v58  ;;  %v610_v20 = vmul.f32 0.5, %v7792_v32 }
 0x393   :  { %v712_v61 = vmul.f32 %v708_v6, %v608_v53  ;;  %v690_v57 = vmul.f32 %v7148_v60, %v670_v59 }
 0x394   :  { %v705_v15 = vsel %vm697_vm8, %v693_v58, %v701_v62 }
 0x395   :  { %v7807_v3 = vadd.f32 %v712_v61, %v7634_v28  ;;  %v694_v0 = vsub.f32 1.0, %v690_v57  ;;  %v709_v11 = vadd.f32 1.0, %v705_v15 }
 0x397   :  { %v702_v1 = vsub.f32 0.0, %v694_v0  ;;  %v719_v4 = vpack.c.bf16 %v7807_v3, %v7804_v63  ;;  %v713_v27 = vmul.f32 %v709_v11, %v609_v2 }
 0x399   :  { %v706_v5 = vsel %vm698_vm9, %v694_v0, %v702_v1  ;;  %5976 = vmatmul.mubr.msk.bf16.vlgmr.msra.gmra.mxu0 %vm297_vm4, %v719_v4  ;;  %v7817_v8 = vadd.f32 %v713_v27, %v7621_v21  ;;  %v729_v21 = vld [vmem:[%s9307_s9] sm:$0x3] }
 0x39a   :  { %v710_v7 = vadd.f32 1.0, %v706_v5  ;;  %829 = vmatprep.mubr.bf16.mxu0 %v7412_v56  ;;  %v738_v30 = vrot.slane %v729_v21, %v7839_v17 }
 0x39c   :  { %v714_v28 = vmul.f32 %v710_v7, %v610_v20 }
 0x39e   :  { %v7820_v9 = vadd.f32 %v714_v28, %v7626_v24  ;;  %v734_v24 = vrot.slane %v729_v21, %v7826_v34 }
 0x3a0   :  { %v720_v23 = vpack.c.bf16 %v7820_v9, %v7817_v8 }
 0x3a2   :  { %5977 = vmatmul.mubr.msk.bf16.gmra.mxu0 %vm297_vm4, %v720_v23 }
 0x3a3   :  { %6546 = vmatprep.mubr.msk.bf16.mxu0 %vm7414_vm10, %v7413_v10 }
 0x459   :  { %v821_v32 = vpop.f32.mrf.mxu0 }
 0x45a   :  { %v822_v14 = vadd.f32 %v821_v32, %v734_v24 }
 0x45b   :  { %v823_v12 = vpop.f32.mrf.mxu0 }
 0x45c   :  { %v840_v26 = vmul.f32 0.25, %v822_v14  ;;  %v824_v51 = vadd.f32 %v823_v12, %v738_v30 }
 0x45d   :  { %v825_v13 = vpop.f32.mrf.mxu0 }
 0x45e   :  { %v826_v16 = vadd.f32 %v825_v13, %v734_v24 }
 0x45f   :  { %v827_v18 = vpop.f32.mrf.mxu0 }
 0x460   :  { %v841_v22 = vmul.f32 0.25, %v826_v16  ;;  %v843_v25 = vpack.c.bf16 %v826_v16, %v822_v14  ;;  %v828_v50 = vadd.f32 %v827_v18, %v738_v30 }
 0x462   :  { %v831_v29 = vpop.f32.mrf.mxu0  ;;  %966 = vrot.lane.b32.xlu1 %v843_v25, %s7415_s1  ;;  %845 = vrot.lane.b32.xlu0 %v843_v25, %s7411_s5  ;;  %v842_v31 = vpack.c.bf16 %v841_v22, %v840_v26  ;;  %v7862_v52 = vpack.c.bf16 %v828_v50, %v824_v51 }
 0x463   :  { %v832_v39 = vadd.f32 %v831_v29, %v734_v24 }
 0x464   :  { %v833_v33 = vpop.f32.mrf.mxu0 }
 0x465   :  { %v834_v35 = vadd.f32 %v833_v33, %v738_v30  ;;  %v1359_v43 = vmul.f32 0.25, %v832_v39 }
 0x466   :  { %v835_v36 = vpop.f32.mrf.mxu0  ;;  %1088 = vrot.lane.b32.xlu1 %v843_v25, %s7416_s6  ;;  %964 = vrot.lane.b32.xlu0 %v842_v31, %s7417_s22 }
 0x467   :  { %v836_v19 = vadd.f32 %v835_v36, %v734_v24 }
 0x468   :  { %v837_v37 = vpop.f32.mrf.mxu0 }
 0x469   :  { %v838_v38 = vadd.f32 %v837_v37, %v738_v30  ;;  %v1360_v41 = vmul.f32 0.25, %v836_v19  ;;  %v1362_v42 = vpack.c.bf16 %v836_v19, %v832_v39 }
 0x46a   :  { %1209 = vrot.lane.b32.xlu1 %v843_v25, %s7418_s23  ;;  %1086 = vrot.lane.b32.xlu0 %v842_v31, %s7419_s24 }
 0x46b   :  { %v7848_v40 = vpack.c.bf16 %v838_v38, %v834_v35  ;;  %v1361_v44 = vpack.c.bf16 %v1360_v41, %v1359_v43 }
 0x46e   :  { %1364 = vrot.lane.b32.xlu1 %v1362_v42, %s7411_s5  ;;  %1207 = vrot.lane.b32.xlu0 %v842_v31, %s7420_s2 }
 0x472   :  { %1482 = vrot.lane.b32.xlu1 %v1361_v44, %s7417_s22  ;;  %1484 = vrot.lane.b32.xlu0 %v1362_v42, %s7415_s1 }
 0x476   :  { %1604 = vrot.lane.b32.xlu1 %v1361_v44, %s7419_s24  ;;  %1606 = vrot.lane.b32.xlu0 %v1362_v42, %s7416_s6 }
 0x47a   :  { %1725 = vrot.lane.b32.xlu1 %v1361_v44, %s7420_s2  ;;  %1727 = vrot.lane.b32.xlu0 %v1362_v42, %s7418_s23 }
 0x4d4   :  { %v967_v45 = vpop.permute.xlu1 %966  ;;  %v846_v46 = vpop.permute.xlu0 %845 }
 0x4d5   :  { %v972_v47 = vsel %vm847_vm11, %v967_v45, 0  ;;  %v852_v49 = vsel %vm847_vm11, %v846_v46, 0 }
 0x4d6   :  { %6545 = vmatpush3.bf16.xpose.msra.mxu0 %v852_v49  ;;  %6557 = vmatpush3.bf16.xpose.msra.mxu1 %v972_v47 }
 0x4d7   :  { %6550 = vmatprep.subr.bf16.mxu0 %v7413_v10  ;;  %6568 = vmatprep.subr.bf16.mxu1 %v7413_v10 }
 0x4d8   :  { %v1089_v48 = vpop.permute.xlu1 %1088  ;;  %v965_v53 = vpop.permute.xlu0 %964 }
 0x4d9   :  { %v1094_v54 = vsel %vm847_vm11, %v1089_v48, 0 }
 0x4dc   :  { %v1210_v55 = vpop.permute.xlu1 %1209  ;;  %v1087_v6 = vpop.permute.xlu0 %1086 }
 0x4dd   :  { %6547 = vmatmul.mubr.msk.bf16.vlgmr.msra.gmra.mxu0 %vm847_vm11, %v842_v31  ;;  %6559 = vmatmul.mubr.msk.bf16.vlgmr.msra.gmra.mxu1 %vm847_vm11, %v965_v53  ;;  %v1215_v58 = vsel %vm847_vm11, %v1210_v55, 0 }
 0x4de   :  { %6551 = vmatpush3.bf16.msra.mxu0 %v7862_v52  ;;  %6569 = vmatpush3.bf16.xpose.msra.mxu1 %v1094_v54 }
 0x4df   :  { %6570 = vmatprep.mubr.msk.bf16.mxu1 %vm7414_vm10, %v7413_v10  ;;  %6580 = vmatprep.subr.bf16.mxu1 %v7413_v10 }
 0x4e0   :  { %6552 = vmatprep.mubr.msk.bf16.mxu0 %vm7414_vm10, %v7413_v10  ;;  %6562 = vmatprep.subr.bf16.mxu0 %v7413_v10  ;;  %v1365_v59 = vpop.permute.xlu1 %1364  ;;  %v1208_v60 = vpop.permute.xlu0 %1207 }
 0x4e1   :  { %v1370_v61 = vsel %vm847_vm11, %v1365_v59, 0 }
 0x4e4   :  { %v1485_v62 = vpop.permute.xlu0 %1484  ;;  %v1483_v0 = vpop.permute.xlu1 %1482 }
 0x4e5   :  { %6571 = vmatmul.mubr.msk.bf16.vlgmr.msra.gmra.mxu1 %vm847_vm11, %v1087_v6  ;;  %v1490_v57 = vsel %vm847_vm11, %v1485_v62, 0 }
 0x4e6   :  { %6581 = vmatpush3.bf16.xpose.msra.mxu1 %v1215_v58  ;;  %6582 = vmatprep.mubr.msk.bf16.mxu1 %vm7414_vm10, %v7413_v10 }
 0x4e7   :  { %6592 = vmatprep.subr.bf16.mxu1 %v7413_v10 }
 0x4e8   :  { %v1607_v15 = vpop.permute.xlu0 %1606  ;;  %v1605_v4 = vpop.permute.xlu1 %1604 }
 0x4e9   :  { %v1612_v11 = vsel %vm847_vm11, %v1607_v15, 0 }
 0x4ec   :  { %v1728_v1 = vpop.permute.xlu0 %1727  ;;  %v1726_v5 = vpop.permute.xlu1 %1725 }
 0x4ed   :  { %6583 = vmatmul.mubr.msk.bf16.vlgmr.msra.gmra.mxu1 %vm847_vm11, %v1208_v60  ;;  %v1733_v2 = vsel %vm847_vm11, %v1728_v1, 0 }
 0x4ee   :  { %6593 = vmatpush3.bf16.xpose.msra.mxu1 %v1370_v61  ;;  %6594 = vmatprep.mubr.msk.bf16.mxu1 %vm7414_vm10, %v7413_v10 }
 0x4ef   :  { %6604 = vmatprep.subr.bf16.mxu1 %v7413_v10 }
 0x4f5   :  { %6595 = vmatmul.mubr.msk.bf16.vlgmr.msra.gmra.mxu1 %vm847_vm11, %v1361_v44 }
 0x4f6   :  { %6605 = vmatpush3.bf16.xpose.msra.mxu1 %v1490_v57  ;;  %6606 = vmatprep.mubr.msk.bf16.mxu1 %vm7414_vm10, %v7413_v10 }
 0x4f7   :  { %6616 = vmatprep.subr.bf16.mxu1 %v7413_v10 }
 0x4fd   :  { %6607 = vmatmul.mubr.msk.bf16.vlgmr.msra.gmra.mxu1 %vm847_vm11, %v1483_v0 }
 0x4fe   :  { %6617 = vmatpush3.bf16.xpose.msra.mxu1 %v1612_v11  ;;  %6618 = vmatprep.mubr.msk.bf16.mxu1 %vm7414_vm10, %v7413_v10 }
 0x4ff   :  { %6628 = vmatprep.subr.bf16.mxu1 %v7413_v10 }
 0x505   :  { %6619 = vmatmul.mubr.msk.bf16.vlgmr.msra.gmra.mxu1 %vm847_vm11, %v1605_v4 }
 0x506   :  { %6629 = vmatpush3.bf16.xpose.msra.mxu1 %v1733_v2  ;;  %6630 = vmatprep.mubr.msk.bf16.mxu1 %vm7414_vm10, %v7413_v10 }
 0x50d   :  { %6631 = vmatmul.mubr.msk.bf16.vlgmr.msra.gmra.mxu1 %vm847_vm11, %v1726_v5 }
 0x59d   :  { %v7899_v27 = vpop.f32.mrf.mxu0  ;;  %v7901_v20 = vpop.f32.mrf.mxu1 }
 0x59e   :  { %v895_v7 = vsel %vm847_vm11, %v7899_v27, -inf  ;;  %v1015_v24 = vsel %vm847_vm11, %v7901_v20, -inf }
 0x59f   :  { %v6560_v28 = vpop.f32.mrf.mxu1  ;;  %896 = vmax.xlane.f32.xlu0 %v895_v7  ;;  %v6548_v23 = vpop.f32.mrf.mxu0 }
 0x5a1   :  { %v7905_v21 = vpop.f32.mrf.mxu0  ;;  %v7907_v32 = vpop.f32.mrf.mxu1 }
 0x5a2   :  { %v898_v12 = vsel %vm847_vm11, %v7905_v21, -inf  ;;  %v1018_v18 = vsel %vm847_vm11, %v7907_v32, -inf }
 0x5a3   :  { %v6561_v13 = vpop.f32.mrf.mxu1  ;;  %1016 = vmax.xlane.f32.xlu0 %v1015_v24  ;;  %899 = vmax.xlane.f32.xlu1 %v898_v12  ;;  %v6549_v14 = vpop.f32.mrf.mxu0 }
 0x5a5   :  { %v7913_v16 = vpop.f32.mrf.mxu1 }
 0x5a6   :  { %v1137_v26 = vsel %vm847_vm11, %v7913_v16, -inf }
 0x5a7   :  { %v6572_v22 = vpop.f32.mrf.mxu1  ;;  %1019 = vmax.xlane.f32.xlu0 %v1018_v18 }
 0x5a9   :  { %v7917_v25 = vpop.f32.mrf.mxu1 }
 0x5aa   :  { %v1140_v29 = vsel %vm847_vm11, %v7917_v25, -inf }
 0x5ab   :  { %v6573_v30 = vpop.f32.mrf.mxu1  ;;  %1138 = vmax.xlane.f32.xlu0 %v1137_v26  ;;  %1141 = vmax.xlane.f32.xlu1 %v1140_v29 }
 0x5ad   :  { %v7923_v31 = vpop.f32.mrf.mxu1 }
 0x5ae   :  { %v1258_v33 = vsel %vm847_vm11, %v7923_v31, -inf }
 0x5af   :  { %v6584_v35 = vpop.f32.mrf.mxu1  ;;  %1259 = vmax.xlane.f32.xlu0 %v1258_v33 }
 0x5b1   :  { %v7927_v36 = vpop.f32.mrf.mxu1 }
 0x5b2   :  { %v1261_v19 = vsel %vm847_vm11, %v7927_v36, -inf }
 0x5b3   :  { %v6585_v37 = vpop.f32.mrf.mxu1  ;;  %1262 = vmax.xlane.f32.xlu1 %v1261_v19 }
 0x5b5   :  { %v7931_v38 = vpop.f32.mrf.mxu1 }
 0x5b6   :  { %v1413_v39 = vsel %vm847_vm11, %v7931_v38, -inf }
 0x5b7   :  { %v6596_v41 = vpop.f32.mrf.mxu1  ;;  %1414 = vmax.xlane.f32.xlu0 %v1413_v39 }
 0x5b9   :  { %v7935_v42 = vpop.f32.mrf.mxu1 }
 0x5ba   :  { %v1416_v43 = vsel %vm847_vm11, %v7935_v42, -inf }
 0x5bb   :  { %v6597_v44 = vpop.f32.mrf.mxu1  ;;  %1417 = vmax.xlane.f32.xlu1 %v1416_v43 }
 0x5bd   :  { %v7939_v45 = vpop.f32.mrf.mxu1 }
 0x5be   :  { %v1533_v46 = vsel %vm847_vm11, %v7939_v45, -inf }
 0x5bf   :  { %v6608_v47 = vpop.f32.mrf.mxu1  ;;  %1534 = vmax.xlane.f32.xlu0 %v1533_v46 }
 0x5c1   :  { %v7943_v49 = vpop.f32.mrf.mxu1 }
 0x5c2   :  { %v1536_v50 = vsel %vm847_vm11, %v7943_v49, -inf }
 0x5c3   :  { %v6609_v51 = vpop.f32.mrf.mxu1  ;;  %1537 = vmax.xlane.f32.xlu1 %v1536_v50 }
 0x5c5   :  { %v7947_v48 = vpop.f32.mrf.mxu1 }
 0x5c6   :  { %v1655_v53 = vsel %vm847_vm11, %v7947_v48, -inf }
 0x5c7   :  { %v6620_v54 = vpop.f32.mrf.mxu1  ;;  %1656 = vmax.xlane.f32.xlu0 %v1655_v53 }
 0x5c9   :  { %v7951_v55 = vpop.f32.mrf.mxu1 }
 0x5ca   :  { %v1658_v6 = vsel %vm847_vm11, %v7951_v55, -inf }
 0x5cb   :  { %v6621_v58 = vpop.f32.mrf.mxu1  ;;  %1659 = vmax.xlane.f32.xlu1 %v1658_v6 }
 0x5cd   :  { %v7955_v59 = vpop.f32.mrf.mxu1 }
 0x5ce   :  { %v1776_v60 = vsel %vm847_vm11, %v7955_v59, -inf }
 0x5cf   :  { %v6632_v61 = vpop.f32.mrf.mxu1  ;;  %1777 = vmax.xlane.f32.xlu0 %v1776_v60 }
 0x5d1   :  { %v7959_v62 = vpop.f32.mrf.mxu1 }
 0x5d2   :  { %v1779_v57 = vsel %vm847_vm11, %v7959_v62, -inf }
 0x5d3   :  { %v6633_v15 = vpop.f32.mrf.mxu1  ;;  %1780 = vmax.xlane.f32.xlu1 %v1779_v57 }
 0x5e4   :  { %1160 = vrot.lane.b32.xlu1 %v7862_v52, %s7419_s24 }
 0x5e5   :  { %1039 = vrot.lane.b32.xlu0 %v7862_v52, %s7417_s22 }
 0x628   :  { %v897_v0 = vpop.xlane.xlu0 %896 }
 0x629   :  { %v901_v11 = vsub.f32 %v7899_v27, %v897_v0 }
 0x62b   :  { %v903_v1 = vmul.f32 1.442695, %v901_v11 }
 0x62c   :  { %v1017_v4 = vpop.xlane.xlu0 %1016  ;;  %v900_v2 = vpop.xlane.xlu1 %899 }
 0x62d   :  { %7149 = vpow2.f32 %v903_v1  ;;  %v1021_v5 = vsub.f32 %v7901_v20, %v1017_v4  ;;  %v902_v7 = vsub.f32 %v7905_v21, %v900_v2 }
 0x62f   :  { %v1023_v28 = vmul.f32 1.442695, %v1021_v5  ;;  %v905_v23 = vmul.f32 1.442695, %v902_v7 }
 0x630   :  { %v1020_v24 = vpop.xlane.xlu0 %1019 }
 0x631   :  { %7151 = vpow2.f32 %v1023_v28  ;;  %v1022_v12 = vsub.f32 %v7907_v32, %v1020_v24 }
 0x632   :  { %7153 = vpow2.f32 %v905_v23 }
 0x633   :  { %v1025_v13 = vmul.f32 1.442695, %v1022_v12 }
 0x634   :  { %v1139_v14 = vpop.xlane.xlu0 %1138  ;;  %v1142_v18 = vpop.xlane.xlu1 %1141 }
 0x635   :  { %7155 = vpow2.f32 %v1025_v13  ;;  %v1143_v27 = vsub.f32 %v7913_v16, %v1139_v14  ;;  %v1144_v22 = vsub.f32 %v7917_v25, %v1142_v18 }
 0x637   :  { %v1145_v26 = vmul.f32 1.442695, %v1143_v27  ;;  %v1147_v29 = vmul.f32 1.442695, %v1144_v22 }
 0x638   :  { %v1260_v20 = vpop.xlane.xlu0 %1259 }
 0x639   :  { %7157 = vpow2.f32 %v1145_v26  ;;  %v1264_v21 = vsub.f32 %v7923_v31, %v1260_v20 }
 0x63a   :  { %v7974_v30 = vpop.eup %7149  ;;  %7159 = vpow2.f32 %v1147_v29 }
 0x63b   :  { %v1266_v33 = vmul.f32 1.442695, %v1264_v21  ;;  %v907_v32 = vsel %vm847_vm11, %v7974_v30, 0.0 }
 0x63c   :  { %908 = vadd.xlane.f32.xlu0 %v907_v32  ;;  %v1263_v35 = vpop.xlane.xlu1 %1262 }
 0x63d   :  { %7161 = vpow2.f32 %v1266_v33  ;;  %v1265_v16 = vsub.f32 %v7927_v36, %v1263_v35 }
 0x63e   :  { %v7979_v19 = vpop.eup %7151 }
 0x63f   :  { %v7981_v25 = vpop.eup %7153  ;;  %v1268_v37 = vmul.f32 1.442695, %v1265_v16  ;;  %v1027_v31 = vsel %vm847_vm11, %v7979_v19, 0.0 }
 0x640   :  { %1028 = vadd.xlane.f32.xlu0 %v1027_v31  ;;  %v1415_v39 = vpop.xlane.xlu0 %1414  ;;  %v910_v41 = vsel %vm847_vm11, %v7981_v25, 0.0 }
 0x641   :  { %7163 = vpow2.f32 %v1268_v37  ;;  %v1419_v43 = vsub.f32 %v7931_v38, %v1415_v39  ;;  %911 = vadd.xlane.f32.xlu1 %v910_v41 }
 0x642   :  { %v7988_v44 = vpop.eup %7155 }
 0x643   :  { %v1421_v36 = vmul.f32 1.442695, %v1419_v43  ;;  %v1030_v46 = vsel %vm847_vm11, %v7988_v44, 0.0 }
 0x644   :  { %v1418_v47 = vpop.xlane.xlu1 %1417 }
 0x645   :  { %7165 = vpow2.f32 %v1421_v36  ;;  %1031 = vadd.xlane.f32.xlu1 %v1030_v46  ;;  %v1420_v50 = vsub.f32 %v7935_v42, %v1418_v47 }
 0x646   :  { %v7993_v51 = vpop.eup %7157 }
 0x647   :  { %v7995_v53 = vpop.eup %7159  ;;  %v1423_v54 = vmul.f32 1.442695, %v1420_v50  ;;  %v1149_v38 = vsel %vm847_vm11, %v7993_v51, 0.0 }
 0x648   :  { %1150 = vadd.xlane.f32.xlu0 %v1149_v38  ;;  %v1535_v6 = vpop.xlane.xlu0 %1534  ;;  %v1152_v58 = vsel %vm847_vm11, %v7995_v53, 0.0 }
 0x649   :  { %7167 = vpow2.f32 %v1423_v54  ;;  %v1539_v60 = vsub.f32 %v7939_v45, %v1535_v6  ;;  %1153 = vadd.xlane.f32.xlu1 %v1152_v58 }
 0x64a   :  { %v8002_v61 = vpop.eup %7161 }
 0x64b   :  { %v1541_v42 = vmul.f32 1.442695, %v1539_v60  ;;  %v1270_v57 = vsel %vm847_vm11, %v8002_v61, 0.0 }
 0x64c   :  { %1271 = vadd.xlane.f32.xlu0 %v1270_v57  ;;  %v1538_v15 = vpop.xlane.xlu1 %1537 }
 0x64d   :  { %7169 = vpow2.f32 %v1541_v42  ;;  %v1540_v0 = vsub.f32 %v7943_v49, %v1538_v15 }
 0x64e   :  { %v8007_v11 = vpop.eup %7163 }
 0x64f   :  { %v1543_v1 = vmul.f32 1.442695, %v1540_v0  ;;  %v1273_v4 = vsel %vm847_vm11, %v8007_v11, 0.0 }
 0x650   :  { %1274 = vadd.xlane.f32.xlu1 %v1273_v4  ;;  %v1657_v5 = vpop.xlane.xlu0 %1656 }
 0x651   :  { %7171 = vpow2.f32 %v1543_v1  ;;  %v1661_v16 = vsub.f32 %v7947_v48, %v1657_v5 }
 0x652   :  { %v8011_v45 = vpop.eup %7165 }
 0x653   :  { %v1425_v2 = vsel %vm847_vm11, %v8011_v45, 0.0  ;;  %v1663_v37 = vmul.f32 1.442695, %v1661_v16 }
 0x654   :  { %1426 = vadd.xlane.f32.xlu0 %v1425_v2  ;;  %v1660_v7 = vpop.xlane.xlu1 %1659 }
 0x655   :  { %v1662_v28 = vsub.f32 %v7951_v55, %v1660_v7 }
 0x656   :  { %v8016_v23 = vpop.eup %7167 }
 0x657   :  { %v1665_v49 = vmul.f32 1.442695, %v1662_v28  ;;  %v1428_v24 = vsel %vm847_vm11, %v8016_v23, 0.0 }
 0x658   :  { %v1778_v12 = vpop.xlane.xlu0 %1777  ;;  %1429 = vadd.xlane.f32.xlu1 %v1428_v24 }
 0x659   :  { %7173 = vpow2.f32 %v1665_v49  ;;  %v1782_v13 = vsub.f32 %v7955_v59, %v1778_v12 }
 0x65a   :  { %v8021_v14 = vpop.eup %7169 }
 0x65b   :  { %v1784_v18 = vmul.f32 1.442695, %v1782_v13  ;;  %v1545_v27 = vsel %vm847_vm11, %v8021_v14, 0.0 }
 0x65c   :  { %1546 = vadd.xlane.f32.xlu1 %v1545_v27  ;;  %v1781_v22 = vpop.xlane.xlu1 %1780  ;;  %v1040_v39 = vpop.permute.xlu0 %1039 }
 0x65d   :  { %7175 = vpow2.f32 %v1784_v18  ;;  %v1783_v55 = vsub.f32 %v7959_v62, %v1781_v22 }
 0x65e   :  { %v8026_v26 = vpop.eup %7171 }
 0x65f   :  { %v1786_v29 = vmul.f32 1.442695, %v1783_v55  ;;  %v1548_v20 = vsel %vm847_vm11, %v8026_v26, 0.0 }
 0x660   :  { %1549 = vadd.xlane.f32.xlu1 %v1548_v20  ;;  %v1161_v48 = vpop.permute.xlu1 %1160 }
 0x661   :  { %7177 = vpow2.f32 %v1786_v29 }
 0x662   :  { %7179 = vpow2.f32 %v1663_v37 }
 0x666   :  { %v8030_v59 = vpop.eup %7173 }
 0x667   :  { %v1670_v21 = vsel %vm847_vm11, %v8030_v59, 0.0 }
 0x668   :  { %1671 = vadd.xlane.f32.xlu1 %v1670_v21 }
 0x66a   :  { %v8034_v33 = vpop.eup %7175  ;;  %1281 = vrot.lane.b32.xlu0 %v7862_v52, %s7420_s2 }
 0x66b   :  { %v1788_v62 = vsel %vm847_vm11, %v8034_v33, 0.0 }
 0x66c   :  { %1789 = vadd.xlane.f32.xlu1 %v1788_v62 }
 0x66e   :  { %v8040_v32 = vpop.eup %7177 }
 0x66f   :  { %v1791_v35 = vsel %vm847_vm11, %v8040_v32, 0.0  ;;  %v8047_v31 = vpop.eup %7179 }
 0x670   :  { %1792 = vadd.xlane.f32.xlu1 %v1791_v35  ;;  %v1667_v52 = vsel %vm847_vm11, %v8047_v31, 0.0 }
 0x681   :  { %1557 = vrot.lane.b32.xlu1 %v7848_v40, %s7417_s22 }
 0x689   :  { %1668 = vadd.xlane.f32.xlu0 %v1667_v52 }
 0x69f   :  { %1678 = vrot.lane.b32.xlu0 %v7848_v40, %s7419_s24 }
 0x6a3   :  { %1799 = vrot.lane.b32.xlu0 %v7848_v40, %s7420_s2 }
 0x6c5   :  { %v909_v41 = vpop.xlane.xlu0 %908 }
 0x6c6   :  { %7181 = vrcp.f32 %v909_v41 }
 0x6c9   :  { %v1029_v36 = vpop.xlane.xlu0 %1028 }
 0x6ca   :  { %v912_v43 = vpop.xlane.xlu1 %911 }
 0x6cb   :  { %7183 = vrcp.f32 %v912_v43 }
 0x6ce   :  { %v1032_v46 = vpop.xlane.xlu1 %1031 }
 0x6cf   :  { %7185 = vrcp.f32 %v1032_v46 }
 0x6d0   :  { %7187 = vrcp.f32 %v1029_v36 }
 0x6d1   :  { %v1151_v47 = vpop.xlane.xlu0 %1150 }
 0x6d2   :  { %v1154_v50 = vpop.xlane.xlu1 %1153  ;;  %7189 = vrcp.f32 %v1151_v47 }
 0x6d3   :  { %v7182_v54 = vpop.eup %7181  ;;  %7191 = vrcp.f32 %v1154_v50 }
 0x6d4   :  { %v914_v6 = vmul.f32 %v7182_v54, %v7974_v30 }
 0x6d5   :  { %v1272_v0 = vpop.xlane.xlu0 %1271 }
 0x6d8   :  { %v7184_v38 = vpop.eup %7183 }
 0x6d9   :  { %v916_v58 = vmul.f32 %v7184_v38, %v7981_v25  ;;  %v1275_v57 = vpop.xlane.xlu1 %1274 }
 0x6da   :  { %7193 = vrcp.f32 %v1275_v57 }
 0x6db   :  { %v917_v60 = vpack.c.bf16 %v916_v58, %v914_v6  ;;  %7195 = vrcp.f32 %v1272_v0 }
 0x6dc   :  { %v7186_v42 = vpop.eup %7185 }
 0x6dd   :  { %6553 = vmatmul.mubr.msk.bf16.vlgmr.msra.gmra.mxu0 %vm847_vm11, %v917_v60  ;;  %v7188_v15 = vpop.eup %7187  ;;  %v1036_v1 = vmul.f32 %v7186_v42, %v7988_v44  ;;  %v1427_v7 = vpop.xlane.xlu0 %1426 }
 0x6de   :  { %6563 = vmatpush3.bf16.msra.mxu0 %v1040_v39  ;;  %6564 = vmatprep.mubr.msk.bf16.mxu0 %vm7414_vm10, %v7413_v10  ;;  %v1034_v25 = vmul.f32 %v7188_v15, %v7979_v19 }
 0x6df   :  { %6574 = vmatprep.subr.bf16.mxu0 %v7413_v10  ;;  %v7190_v4 = vpop.eup %7189 }
 0x6e0   :  { %v1037_v2 = vpack.c.bf16 %v1036_v1, %v1034_v25  ;;  %v7192_v5 = vpop.eup %7191  ;;  %v1156_v44 = vmul.f32 %v7190_v4, %v7993_v51 }
 0x6e1   :  { %v1430_v30 = vpop.xlane.xlu1 %1429  ;;  %v1158_v49 = vmul.f32 %v7192_v5, %v7995_v53  ;;  %v1282_v13 = vpop.permute.xlu0 %1281 }
 0x6e2   :  { %7197 = vrcp.f32 %v1430_v30 }
 0x6e3   :  { %7199 = vrcp.f32 %v1427_v7  ;;  %v1159_v19 = vpack.c.bf16 %v1158_v49, %v1156_v44 }
 0x6e5   :  { %6565 = vmatmul.mubr.msk.bf16.vlgmr.msra.gmra.mxu0 %vm847_vm11, %v1037_v2  ;;  %v1547_v28 = vpop.xlane.xlu1 %1546 }
 0x6e6   :  { %6575 = vmatpush3.bf16.msra.mxu0 %v1161_v48  ;;  %6576 = vmatprep.mubr.msk.bf16.mxu0 %vm7414_vm10, %v7413_v10 }
 0x6e7   :  { %6586 = vmatprep.subr.bf16.mxu0 %v7413_v10  ;;  %v7194_v24 = vpop.eup %7193 }
 0x6e8   :  { %v7196_v18 = vpop.eup %7195  ;;  %v1279_v27 = vmul.f32 %v7194_v24, %v8007_v11  ;;  %v7005_v24 = vld [vmem:[%s9308_s10 + $0x18] sm:$0xff]  }
 0x6e9   :  { %v1550_v12 = vpop.xlane.xlu1 %1549  ;;  %v1277_v53 = vmul.f32 %v7196_v18, %v8002_v61  ;;  %6640 = vmatprep.subr.bf16.mxu1 %v7005_v24 }
 0x6ea   :  { %7201 = vrcp.f32 %v1550_v12  ;;  %6641 = vmatpush3.bf16.msra.mxu1 %v7005_v24 }
 0x6eb   :  { %7203 = vrcp.f32 %v1547_v28  ;;  %v1280_v22 = vpack.c.bf16 %v1279_v27, %v1277_v53 }
 0x6ed   :  { %6577 = vmatmul.mubr.msk.bf16.vlgmr.msra.gmra.mxu0 %vm847_vm11, %v1159_v19 }
 0x6ee   :  { %6587 = vmatpush3.bf16.msra.mxu0 %v1282_v13  ;;  %6588 = vmatprep.mubr.msk.bf16.mxu0 %vm7414_vm10, %v7413_v10 }
 0x6ef   :  { %6598 = vmatprep.subr.bf16.mxu0 %v7413_v10  ;;  %v7198_v55 = vpop.eup %7197 }
 0x6f0   :  { %v7200_v20 = vpop.eup %7199  ;;  %v1434_v21 = vmul.f32 %v7198_v55, %v8016_v23  ;;  %v7007_v55 = vld [vmem:[%s9308_s10 + $0x8] sm:$0xff]  }
 0x6f1   :  { %v1672_v51 = vpop.xlane.xlu1 %1671  ;;  %v1432_v62 = vmul.f32 %v7200_v20, %v8011_v45 }
 0x6f2   :  { %7205 = vrcp.f32 %v1672_v51 }
 0x6f3   :  { %v1435_v35 = vpack.c.bf16 %v1434_v21, %v1432_v62  ;;  %v7008_v62 = vld [vmem:[%s9308_s10] sm:$0xff]  }
 0x6f5   :  { %6589 = vmatmul.mubr.msk.bf16.vlgmr.msra.gmra.mxu0 %vm847_vm11, %v1280_v22  ;;  %v1790_v29 = vpop.xlane.xlu1 %1789  ;;  %v7006_v22 = vld [vmem:[%s9308_s10 + $0x10] sm:$0xff]  }
 0x6f6   :  { %6599 = vmatpush3.bf16.msra.mxu0 %v7848_v40  ;;  %6600 = vmatprep.mubr.msk.bf16.mxu0 %vm7414_vm10, %v7413_v10 }
 0x6f7   :  { %6610 = vmatprep.subr.bf16.mxu0 %v7413_v10  ;;  %v7202_v61 = vpop.eup %7201  ;;  %6642 = vmatprep.subr.bf16.mxu1 %v7006_v22 }
 0x6f8   :  { %v7204_v37 = vpop.eup %7203  ;;  %v1554_v40 = vmul.f32 %v7202_v61, %v8026_v26  ;;  %6643 = vmatpush3.bf16.msra.mxu1 %v7006_v22 }
 0x6f9   :  { %v1793_v11 = vpop.xlane.xlu1 %1792  ;;  %v1552_v23 = vmul.f32 %v7204_v37, %v8021_v14  ;;  %6644 = vmatprep.subr.bf16.mxu1 %v7007_v55 }
 0x6fb   :  { %v1555_v52 = vpack.c.bf16 %v1554_v40, %v1552_v23 }
 0x6fc   :  { %6645 = vmatpush3.bf16.msra.mxu1 %v7007_v55 }
 0x6fd   :  { %6601 = vmatmul.mubr.msk.bf16.vlgmr.msra.gmra.mxu0 %vm847_vm11, %v1435_v35  ;;  %v1558_v16 = vpop.permute.xlu1 %1557  ;;  %6646 = vmatprep.subr.bf16.mxu1 %v7008_v62 }
 0x6fe   :  { %6611 = vmatpush3.bf16.msra.mxu0 %v1558_v16  ;;  %6612 = vmatprep.mubr.msk.bf16.mxu0 %vm7414_vm10, %v7413_v10 }
 0x6ff   :  { %6622 = vmatprep.subr.bf16.mxu0 %v7413_v10  ;;  %v7206_v26 = vpop.eup %7205 }
 0x700   :  { %v1676_v14 = vmul.f32 %v7206_v26, %v8030_v59  ;;  %6647 = vmatpush3.bf16.msra.mxu1 %v7008_v62 }
 0x705   :  { %6613 = vmatmul.mubr.msk.bf16.vlgmr.msra.gmra.mxu0 %vm847_vm11, %v1555_v52 }
 0x706   :  { %6624 = vmatprep.mubr.msk.bf16.mxu0 %vm7414_vm10, %v7413_v10 }
 0x712   :  { %v1669_v45 = vpop.xlane.xlu0 %1668 }
 0x713   :  { %7207 = vrcp.f32 %v1669_v45 }
 0x714   :  { %7209 = vrcp.f32 %v1793_v11 }
 0x715   :  { %7211 = vrcp.f32 %v1790_v29 }
 0x716   :  { %v1679_v39 = vpop.permute.xlu0 %1678 }
 0x717   :  { %6623 = vmatpush3.bf16.msra.mxu0 %v1679_v39 }
 0x718   :  { %6634 = vmatprep.subr.bf16.mxu0 %v7413_v10 }
 0x71a   :  { %v1800_v46 = vpop.permute.xlu0 %1799 }
 0x720   :  { %v7208_v48 = vpop.eup %7207 }
 0x721   :  { %v1674_v41 = vmul.f32 %v7208_v48, %v8047_v31  ;;  %v7210_v36 = vpop.eup %7209 }
 0x722   :  { %v7212_v47 = vpop.eup %7211  ;;  %v1797_v50 = vmul.f32 %v7210_v36, %v8040_v32 }
 0x723   :  { %v1677_v43 = vpack.c.bf16 %v1676_v14, %v1674_v41  ;;  %v1795_v54 = vmul.f32 %v7212_v47, %v8034_v33 }
 0x725   :  { %6625 = vmatmul.mubr.msk.bf16.vlgmr.msra.gmra.mxu0 %vm847_vm11, %v1677_v43  ;;  %v1798_v38 = vpack.c.bf16 %v1797_v50, %v1795_v54 }
 0x726   :  { %6635 = vmatpush3.bf16.msra.mxu0 %v1800_v46  ;;  %6636 = vmatprep.mubr.msk.bf16.mxu0 %vm7414_vm10, %v7413_v10 }
 0x72d   :  { %6637 = vmatmul.mubr.msk.bf16.vlgmr.msra.gmra.mxu0 %vm847_vm11, %v1798_v38 }
 0x72e   :  { %2151 = vmatprep.mubr.bf16.mxu0 %v7412_v56 }
 0x79d   :  { %v8101_v59 = vpop.f32.mrf.mxu0 }
 0x79f   :  { %v6554_v31 = vpop.f32.mrf.mxu0 }
 0x7a1   :  { %v8103_v6 = vpop.f32.mrf.mxu0 }
 0x7a3   :  { %v6555_v58 = vpop.f32.mrf.mxu0 }
 0x7a5   :  { %v1079_v60 = vpop.f32.mrf.mxu0 }
 0x7a7   :  { %v6566_v42 = vpop.f32.mrf.mxu0 }
 0x7a9   :  { %v1082_v57 = vpop.f32.mrf.mxu0 }
 0x7aa   :  { %v6881_v15 = vpack.i.bf16 %v1082_v57, %v1079_v60 }
 0x7ab   :  { %v6567_v0 = vpop.f32.mrf.mxu0 }
 0x7ac   :  { %6882 = vrot.lane.b32.xlu0 %v6881_v15, %s7418_s23 }
 0x7ad   :  { %v1200_v32 = vpop.f32.mrf.mxu0 }
 0x7af   :  { %v6578_v33 = vpop.f32.mrf.mxu0 }
 0x7b1   :  { %v1203_v1 = vpop.f32.mrf.mxu0 }
 0x7b2   :  { %v6886_v30 = vpack.i.bf16 %v1203_v1, %v1200_v32 }
 0x7b3   :  { %v6579_v25 = vpop.f32.mrf.mxu0 }
 0x7b4   :  { %6887 = vrot.lane.b32.xlu1 %v6886_v30, %s7416_s6 }
 0x7b5   :  { %v1321_v4 = vpop.f32.mrf.mxu0 }
 0x7b7   :  { %v6590_v2 = vpop.f32.mrf.mxu0 }
 0x7b9   :  { %v1324_v5 = vpop.f32.mrf.mxu0 }
 0x7ba   :  { %v6891_v7 = vpack.i.bf16 %v1324_v5, %v1321_v4 }
 0x7bb   :  { %v6591_v28 = vpop.f32.mrf.mxu0 }
 0x7bc   :  { %6892 = vrot.lane.b32.xlu1 %v6891_v7, %s7415_s1 }
 0x7bd   :  { %v1474_v44 = vpop.f32.mrf.mxu0 }
 0x7bf   :  { %v6602_v49 = vpop.f32.mrf.mxu0 }
 0x7c0   :  { %v5994_v49 = vld [vmem:[%s9309_s11] ss:$0 sm:$0xff] }
 0x7c1   :  { %v1477_v19 = vpop.f32.mrf.mxu0 }
 0x7c3   :  { %v6603_v12 = vpop.f32.mrf.mxu0 }
 0x7c5   :  { %v1597_v13 = vpop.f32.mrf.mxu0 }
 0x7c7   :  { %v6614_v18 = vpop.f32.mrf.mxu0 }
 0x7c9   :  { %v1600_v27 = vpop.f32.mrf.mxu0 }
 0x7ca   :  { %v6896_v51 = vpack.i.bf16 %v1600_v27, %v1597_v13 }
 0x7cb   :  { %v6615_v53 = vpop.f32.mrf.mxu0 }
 0x7cc   :  { %6897 = vrot.lane.b32.xlu0 %v6896_v51, %s7418_s23 }
 0x7e5   :  { %v1718_v29 = vpop.f32.mrf.mxu0 }
 0x7e7   :  { %v6626_v20 = vpop.f32.mrf.mxu0 }
 0x7e9   :  { %v1721_v21 = vpop.f32.mrf.mxu0 }
 0x7ea   :  { %v6901_v11 = vpack.i.bf16 %v1721_v21, %v1718_v29 }
 0x7eb   :  { %v6627_v35 = vpop.f32.mrf.mxu0 }
 0x7ec   :  { %6902 = vrot.lane.b32.xlu0 %v6901_v11, %s7416_s6 }
 0x7ed   :  { %v1839_v61 = vpop.f32.mrf.mxu0 }
 0x7ef   :  { %v6638_v16 = vpop.f32.mrf.mxu0 }
 0x7f1   :  { %v1842_v37 = vpop.f32.mrf.mxu0 }
 0x7f2   :  { %v6906_v40 = vpack.i.bf16 %v1842_v37, %v1839_v61 }
 0x7f3   :  { %v6639_v23 = vpop.f32.mrf.mxu0 }
 0x7f4   :  { %6907 = vrot.lane.b32.xlu1 %v6906_v40, %s7415_s1 }
 0x81e   :  { %v6883_v52 = vpop.permute.xlu0 %6882 }
 0x81f   :  { %v6885_v39 = vunpack.i.h.bf16 %v6883_v52  ;;  %v6884_v26 = vunpack.i.l.bf16 %v6883_v52 }
 0x821   :  { %v1353_v43 = vsel %vm847_vm11, %v8103_v6, %v6885_v39  ;;  %v1352_v36 = vsel %vm847_vm11, %v8101_v59, %v6884_v26 }
 0x826   :  { %v6888_v45 = vpop.permute.xlu1 %6887 }
 0x827   :  { %v6890_v48 = vunpack.i.h.bf16 %v6888_v45  ;;  %v6889_v41 = vunpack.i.l.bf16 %v6888_v45 }
 0x829   :  { %v1355_v50 = vsel %vm73_vm0, %v1353_v43, %v6890_v48  ;;  %v1354_v54 = vsel %vm73_vm0, %v1352_v36, %v6889_v41 }
 0x82e   :  { %v6893_v14 = vpop.permute.xlu1 %6892 }
 0x82f   :  { %v6895_v46 = vunpack.i.h.bf16 %v6893_v14  ;;  %v6894_v47 = vunpack.i.l.bf16 %v6893_v14 }
 0x831   :  { %v1358_v38 = vsel %vm1356_vm12, %v1355_v50, %v6895_v46  ;;  %v1357_v31 = vsel %vm1356_vm12, %v1354_v54, %v6894_v47  ;;  %v7011_v46 = vld [vmem:[%s9312_s14 + $0x34] ss:$8 sps:$4 sm:$0xff]   ;;  %v7009_v47 = vld [vmem:[%s9312_s14 + $0x30] ss:$8 sps:$4 sm:$0xff]   ;;  %v7014_v50 = vld [vmem:[%s9312_s14 + $0x24] ss:$8 sps:$4 sm:$0xff]  }
 0x832   :  { %v1876_v58 = vpack.c.bf16 %v1358_v38, %v1357_v31  ;;  %2127 = vmatprep.subr.bf16.mxu0 %v7011_v46  ;;  %v7012_v54 = vld [vmem:[%s9312_s14 + $0x20] ss:$8 sps:$4 sm:$0xff]   ;;  %v7017_v38 = vld [vmem:[%s9312_s14 + $0x14] ss:$8 sps:$4 sm:$0xff]   ;;  %v7015_v31 = vld [vmem:[%s9312_s14 + $0x10] ss:$8 sps:$4 sm:$0xff]  }
 0x833   :  { %2128 = vmatpush1.bf16.msra.mxu0 %v7009_v47 }
 0x834   :  { %6648 = vmatprep.mubr.msk.bf16.mxu1 %vm297_vm4, %v1876_v58  ;;  %2129 = vmatprep.subr.bf16.mxu0 %v7014_v50  ;;  %v7020_v58 = vld [vmem:[%s9312_s14 + $0x4] ss:$8 sps:$4 sm:$0xff]  }
 0x837   :  { %2130 = vmatpush1.bf16.msra.mxu0 %v7012_v54 }
 0x838   :  { %2131 = vmatprep.subr.bf16.mxu0 %v7017_v38 }
 0x83b   :  { %2132 = vmatpush1.bf16.msra.mxu0 %v7015_v31 }
 0x83c   :  { %2133 = vmatprep.subr.bf16.mxu0 %v7020_v58 }
 0x83e   :  { %v6898_v60 = vpop.permute.xlu0 %6897 }
 0x83f   :  { %v6900_v57 = vunpack.i.h.bf16 %v6898_v60  ;;  %v6899_v6 = vunpack.i.l.bf16 %v6898_v60  ;;  %v7018_v60 = vld [vmem:[%s9312_s14] ss:$8 sps:$4 sm:$0xff]  }
 0x840   :  { %2134 = vmatpush1.bf16.msra.mxu0 %v7018_v60 }
 0x841   :  { %v1871_v32 = vsel %vm847_vm11, %v1477_v19, %v6900_v57  ;;  %v1870_v33 = vsel %vm847_vm11, %v1474_v44, %v6899_v6  ;;  %v7022_v57 = vld [vmem:[%s9314_s16 + $0x38] sm:$0xff]   ;;  %v7023_v6 = vld [vmem:[%s9314_s16 + $0x70] sm:$0xff]  }
 0x85e   :  { %v6903_v42 = vpop.permute.xlu0 %6902 }
 0x85f   :  { %v6905_v15 = vunpack.i.h.bf16 %v6903_v42  ;;  %v6904_v0 = vunpack.i.l.bf16 %v6903_v42  ;;  %v7021_v42 = vld [vmem:[%s9314_s16 + $0x78] sm:$0xff]  }
 0x860   :  { %6364 = vmatprep.subr.bf16.mxu1 %v7021_v42 }
 0x861   :  { %v1873_v25 = vsel %vm73_vm0, %v1871_v32, %v6905_v15  ;;  %v1872_v4 = vsel %vm73_vm0, %v1870_v33, %v6904_v0  ;;  %v7024_v15 = vld [vmem:[%s9314_s16 + $0x30] sm:$0xff]   ;;  %v7025_v0 = vld [vmem:[%s9314_s16 + $0x68] sm:$0xff]   ;;  %v7027_v32 = vld [vmem:[%s9314_s16 + $0x60] sm:$0xff]  }
 0x862   :  { %v7028_v33 = vld [vmem:[%s9314_s16 + $0x20] sm:$0xff]  }
 0x866   :  { %v6908_v59 = vpop.permute.xlu1 %6907 }
 0x867   :  { %v6910_v1 = vunpack.i.h.bf16 %v6908_v59  ;;  %v6909_v30 = vunpack.i.l.bf16 %v6908_v59  ;;  %v7026_v59 = vld [vmem:[%s9314_s16 + $0x28] sm:$0xff]  }
 0x869   :  { %v1875_v2 = vsel %vm1356_vm12, %v1873_v25, %v6910_v1  ;;  %v1874_v5 = vsel %vm1356_vm12, %v1872_v4, %v6909_v30  ;;  %v7029_v1 = vld [vmem:[%s9314_s16 + $0x58] sm:$0xff]  }
 0x86a   :  { %v1877_v7 = vpack.c.bf16 %v1875_v2, %v1874_v5  ;;  %v7030_v30 = vld [vmem:[%s9314_s16 + $0x18] sm:$0xff]  }
 0x86c   :  { %6649 = vmatmul.mubr.msk.bf16.vlgmr.msra.gmra.mxu1 %vm297_vm4, %v1877_v7 }
 0x86d   :  { %6365 = vmatpush3.bf16.msra.mxu1 %v7022_v57 }
 0x86e   :  { %6366 = vmatprep.subr.bf16.mxu1 %v7023_v6 }
 0x871   :  { %6367 = vmatpush3.bf16.msra.mxu1 %v7024_v15 }
 0x872   :  { %6368 = vmatprep.subr.bf16.mxu1 %v7025_v0 }
 0x875   :  { %6369 = vmatpush3.bf16.msra.mxu1 %v7026_v59 }
 0x876   :  { %6370 = vmatprep.subr.bf16.mxu1 %v7027_v32 }
 0x879   :  { %6371 = vmatpush3.bf16.msra.mxu1 %v7028_v33 }
 0x87a   :  { %6372 = vmatprep.subr.bf16.mxu1 %v7029_v1 }
 0x87d   :  { %6373 = vmatpush3.bf16.msra.mxu1 %v7030_v30 }
 0x92c   :  { %v6650_v28 = vpop.f32.mrf.mxu1 }
 0x92d   :  { %v1966_v44 = vadd.f32 %v6650_v28, %v5994_v49 }
 0x92e   :  { %v1957_v19 = vpop.f32.mrf.mxu1 }
 0x92f   :  { %v1958_v24 = vadd.f32 %v5994_v49, %v1957_v19  ;;  %v1974_v22 = vadd.f32 %v1966_v44, %v7817_v8 }
 0x930   :  { %v6651_v12 = vpop.f32.mrf.mxu1 }
 0x931   :  { %v1972_v13 = vadd.f32 %v1958_v24, %v7804_v63  ;;  %v1969_v27 = vadd.f32 %v6651_v12, %v5994_v49  ;;  %v1984_v20 = vsel %vm297_vm4, %v1974_v22, 0.0 }
 0x932   :  { %v1960_v18 = vpop.f32.mrf.mxu1 }
 0x933   :  { %v1961_v51 = vadd.f32 %v5994_v49, %v1960_v18  ;;  %v1978_v53 = vsel %vm297_vm4, %v1972_v13, 0.0  ;;  %v1975_v21 = vadd.f32 %v1969_v27, %v7820_v9 }
 0x934   :  { %1979 = vadd.xlane.f32.xlu0 %v1978_v53 }
 0x935   :  { %v1973_v55 = vadd.f32 %v1961_v51, %v7807_v3  ;;  %v1987_v63 = vsel %vm297_vm4, %v1975_v21, 0.0  ;;  %v6001_v51 = vld [vmem:[%s9310_s12] ss:$0 sm:$0xff] }
 0x937   :  { %v1981_v29 = vsel %vm297_vm4, %v1973_v55, 0.0 }
 0x938   :  { %1982 = vadd.xlane.f32.xlu1 %v1981_v29  ;;  %1985 = vadd.xlane.f32.xlu0 %v1984_v20  ;;  %v6002_v20 = vld [vmem:[%s9311_s13] ss:$0 sm:$0xff] }
 0x93c   :  { %1988 = vadd.xlane.f32.xlu0 %v1987_v63 }
 0x9bd   :  { %v1980_v11 = vpop.xlane.xlu0 %1979 }
 0x9be   :  { %v1991_v62 = vmul.f32 0.015625, %v1980_v11 }
 0x9c0   :  { %v8150_v35 = vsub.f32 %v1972_v13, %v1991_v62 }
 0x9c1   :  { %v1983_v61 = vpop.xlane.xlu1 %1982  ;;  %v1986_v8 = vpop.xlane.xlu0 %1985 }
 0x9c2   :  { %v1992_v16 = vmul.f32 0.015625, %v1983_v61  ;;  %v1993_v37 = vmul.f32 0.015625, %v1986_v8  ;;  %v1999_v3 = vmul.f32 %v8150_v35, %v8150_v35 }
 0x9c4   :  { %v8154_v40 = vsub.f32 %v1973_v55, %v1992_v16  ;;  %v8156_v23 = vsub.f32 %v1974_v22, %v1993_v37  ;;  %v2003_v9 = vsel %vm297_vm4, %v1999_v3, 0.0 }
 0x9c5   :  { %2004 = vadd.xlane.f32.xlu0 %v2003_v9  ;;  %v1989_v52 = vpop.xlane.xlu0 %1988 }
 0x9c6   :  { %v1994_v45 = vmul.f32 0.015625, %v1989_v52  ;;  %v2000_v39 = vmul.f32 %v8154_v40, %v8154_v40  ;;  %v2001_v26 = vmul.f32 %v8156_v23, %v8156_v23  ;;  %v7032_v52 = vld [vmem:[%s9314_s16 + $0x10] sm:$0xff]  }
 0x9c8   :  { %v8163_v48 = vsub.f32 %v1975_v21, %v1994_v45  ;;  %v2006_v41 = vsel %vm297_vm4, %v2000_v39, 0.0  ;;  %v2009_v14 = vsel %vm297_vm4, %v2001_v26, 0.0  ;;  %v7033_v45 = vld [vmem:[%s9314_s16 + $0x48] sm:$0xff]   ;;  %v7035_v26 = vld [vmem:[%s9314_s16 + $0x40] sm:$0xff]  }
 0x9c9   :  { %2007 = vadd.xlane.f32.xlu1 %v2006_v41  ;;  %2010 = vadd.xlane.f32.xlu0 %v2009_v14  ;;  %v7034_v39 = vld [vmem:[%s9314_s16 + $0x8] sm:$0xff]   ;;  %v2061_v41 = vld [vmem:[%s9313_s15] sm:$0x3] }
 0x9ca   :  { %v2002_v43 = vmul.f32 %v8163_v48, %v8163_v48 }
 0x9cc   :  { %v2012_v36 = vsel %vm297_vm4, %v2002_v43, 0.0  ;;  %v2070_v43 = vrot.slane %v2061_v41, %v7839_v17 }
 0x9cd   :  { %2013 = vadd.xlane.f32.xlu1 %v2012_v36  ;;  %v2066_v36 = vrot.slane %v2061_v41, %v7826_v34 }
 0xa4e   :  { %v2005_v25 = vpop.xlane.xlu0 %2004 }
 0xa4f   :  { %v2015_v4 = vmul.f32 0.015625, %v2005_v25 }
 0xa51   :  { %v2019_v2 = vadd.f32 1e-05, %v2015_v4 }
 0xa52   :  { %v2008_v5 = vpop.xlane.xlu1 %2007  ;;  %v2011_v7 = vpop.xlane.xlu0 %2010 }
 0xa53   :  { %7213 = vrsqrt.f32 %v2019_v2  ;;  %v2016_v28 = vmul.f32 0.015625, %v2008_v5  ;;  %v2017_v49 = vmul.f32 0.015625, %v2011_v7 }
 0xa55   :  { %v2020_v19 = vadd.f32 1e-05, %v2016_v28  ;;  %v2021_v44 = vadd.f32 1e-05, %v2017_v49 }
 0xa56   :  { %v2014_v24 = vpop.xlane.xlu1 %2013 }
 0xa57   :  { %7215 = vrsqrt.f32 %v2020_v19  ;;  %v2018_v12 = vmul.f32 0.015625, %v2014_v24 }
 0xa58   :  { %7217 = vrsqrt.f32 %v2021_v44 }
 0xa59   :  { %v2022_v13 = vadd.f32 1e-05, %v2018_v12  ;;  %v6013_v12 = vld [vmem:[%s9315_s17] ss:$0 sm:$0xff] }
 0xa5b   :  { %7219 = vrsqrt.f32 %v2022_v13 }
 0xa60   :  { %v7214_v18 = vpop.eup %7213 }
 0xa61   :  { %v2027_v27 = vmul.f32 %v7214_v18, %v8150_v35 }
 0xa63   :  { %v2037_v55 = vmul.f32 %v6001_v51, %v2027_v27 }
 0xa64   :  { %v7216_v53 = vpop.eup %7215 }
 0xa65   :  { %v2028_v22 = vmul.f32 %v7216_v53, %v8154_v40  ;;  %v7218_v29 = vpop.eup %7217  ;;  %v8232_v11 = vadd.f32 %v6002_v20, %v2037_v55 }
 0xa66   :  { %v2029_v35 = vmul.f32 %v7218_v29, %v8156_v23  ;;  %v7031_v23 = vld [vmem:[%s9314_s16 + $0x50] sm:$0xff]  }
 0xa67   :  { %v2038_v21 = vmul.f32 %v6001_v51, %v2028_v22  ;;  %6374 = vmatprep.subr.bf16.mxu1 %v7031_v23 }
 0xa68   :  { %v7220_v63 = vpop.eup %7219  ;;  %v2039_v37 = vmul.f32 %v6001_v51, %v2029_v35  ;;  %6375 = vmatpush3.bf16.msra.mxu1 %v7032_v52 }
 0xa69   :  { %v8234_v62 = vadd.f32 %v6002_v20, %v2038_v21  ;;  %v2030_v61 = vmul.f32 %v7220_v63, %v8163_v48  ;;  %6376 = vmatprep.subr.bf16.mxu1 %v7033_v45  ;;  %v7036_v48 = vld [vmem:[%s9314_s16] sm:$0xff]  }
 0xa6a   :  { %v8244_v40 = vadd.f32 %v6002_v20, %v2039_v37 }
 0xa6b   :  { %v2051_v8 = vpack.c.bf16 %v8234_v62, %v8232_v11  ;;  %v2040_v16 = vmul.f32 %v6001_v51, %v2030_v61 }
 0xa6c   :  { %6377 = vmatpush3.bf16.msra.mxu1 %v7034_v39 }
 0xa6d   :  { %6011 = vmatmul.mubr.msk.bf16.vlgmr.msra.gmra.mxu0 %vm297_vm4, %v2051_v8  ;;  %v8242_v3 = vadd.f32 %v6002_v20, %v2040_v16  ;;  %6378 = vmatprep.subr.bf16.mxu1 %v7035_v26 }
 0xa6e   :  { %2161 = vmatprep.mubr.bf16.mxu0 %v7412_v56 }
 0xa6f   :  { %v2052_v9 = vpack.c.bf16 %v8242_v3, %v8244_v40 }
 0xa70   :  { %6379 = vmatpush3.bf16.msra.mxu1 %v7036_v48 }
 0xa71   :  { %6664 = vmatprep.subr.bf16.mxu1 %v7413_v10 }
 0xa75   :  { %6012 = vmatmul.mubr.msk.bf16.gmra.mxu0 %vm297_vm4, %v2052_v9 }
 0xa76   :  { %2548 = vmatprep.mubr.bf16.mxu0 %v7412_v56 }
 0xb2d   :  { %v2153_v14 = vpop.f32.mrf.mxu0 }
 0xb2e   :  { %v2154_v38 = vadd.f32 %v2153_v14, %v2066_v36 }
 0xb2f   :  { %v2155_v46 = vpop.f32.mrf.mxu0 }
 0xb30   :  { %v2156_v50 = vadd.f32 %v2155_v46, %v2070_v43  ;;  %v2172_v15 = vmax.f32 %v2154_v38, 0.0 }
 0xb31   :  { %v2157_v47 = vpop.f32.mrf.mxu0 }
 0xb32   :  { %v2158_v54 = vadd.f32 %v2157_v47, %v2066_v36  ;;  %v2173_v57 = vmax.f32 %v2156_v50, 0.0 }
 0xb33   :  { %v2159_v31 = vpop.f32.mrf.mxu0 }
 0xb34   :  { %v2160_v58 = vadd.f32 %v2159_v31, %v2070_v43  ;;  %v2174_v60 = vmax.f32 %v2158_v54, 0.0 }
 0xb35   :  { %v2163_v42 = vpop.f32.mrf.mxu0 }
 0xb36   :  { %v2175_v6 = vmax.f32 %v2160_v58, 0.0  ;;  %v2180_v32 = vpack.c.bf16 %v2174_v60, %v2172_v15  ;;  %v2164_v25 = vadd.f32 %v2163_v42, %v2066_v36 }
 0xb37   :  { %v2165_v0 = vpop.f32.mrf.mxu0 }
 0xb38   :  { %v2181_v59 = vpack.c.bf16 %v2175_v6, %v2173_v57  ;;  %v2166_v1 = vadd.f32 %v2165_v0, %v2070_v43  ;;  %v2176_v49 = vmax.f32 %v2164_v25, 0.0  ;;  %v7039_v0 = vld [vmem:[%s9306_s8 + $0x74] ss:$8 sps:$4 sm:$0xff]   ;;  %v7048_v25 = vld [vmem:[%s9306_s8 + $0x44] ss:$8 sps:$4 sm:$0xff]  }
 0xb39   :  { %v2167_v33 = vpop.f32.mrf.mxu0  ;;  %2524 = vmatprep.subr.bf16.mxu0 %v7039_v0 }
 0xb3a   :  { %v2168_v30 = vadd.f32 %v2167_v33, %v2066_v36  ;;  %2351 = vmatprep.mubr.bf16.mxu1 %v2181_v59  ;;  %v2177_v7 = vmax.f32 %v2166_v1, 0.0  ;;  %v7037_v59 = vld [vmem:[%s9306_s8 + $0x70] ss:$8 sps:$4 sm:$0xff]   ;;  %v7040_v33 = vld [vmem:[%s9306_s8 + $0x60] ss:$8 sps:$4 sm:$0xff]  }
 0xb3b   :  { %v2169_v4 = vpop.f32.mrf.mxu0  ;;  %2352 = vmatmul.mubr.bf16.vlgmr.msra.gmra.mxu1 %v2180_v32  ;;  %2525 = vmatpush1.bf16.msra.mxu0 %v7037_v59  ;;  %v7042_v32 = vld [vmem:[%s9306_s8 + $0x64] ss:$8 sps:$4 sm:$0xff]   ;;  %v7043_v1 = vld [vmem:[%s9306_s8 + $0x50] ss:$8 sps:$4 sm:$0xff]  }
 0xb3c   :  { %v2170_v2 = vadd.f32 %v2169_v4, %v2070_v43  ;;  %v2178_v5 = vmax.f32 %v2168_v30, 0.0  ;;  %2526 = vmatprep.subr.bf16.mxu0 %v7042_v32  ;;  %v7045_v30 = vld [vmem:[%s9306_s8 + $0x54] ss:$8 sps:$4 sm:$0xff]   ;;  %v7046_v4 = vld [vmem:[%s9306_s8 + $0x40] ss:$8 sps:$4 sm:$0xff]  }
 0xb3e   :  { %v2179_v28 = vmax.f32 %v2170_v2, 0.0  ;;  %v2182_v44 = vpack.c.bf16 %v2178_v5, %v2176_v49 }
 0xb3f   :  { %2527 = vmatpush1.bf16.msra.mxu0 %v7040_v33 }
 0xb40   :  { %v2183_v19 = vpack.c.bf16 %v2179_v28, %v2177_v7  ;;  %2528 = vmatprep.subr.bf16.mxu0 %v7045_v30 }
 0xb42   :  { %2359 = vmatprep.mubr.bf16.mxu1 %v2183_v19 }
 0xb43   :  { %2360 = vmatmul.mubr.bf16.gmra.mxu1 %v2182_v44  ;;  %2529 = vmatpush1.bf16.msra.mxu0 %v7043_v1 }
 0xb44   :  { %6666 = vmatprep.mubr.msk.bf16.mxu1 %vm7414_vm10, %v7413_v10  ;;  %2530 = vmatprep.subr.bf16.mxu0 %v7048_v25 }
 0xb47   :  { %2531 = vmatpush1.bf16.msra.mxu0 %v7046_v4 }
 0xb48   :  { %6652 = vmatprep.subr.bf16.mxu0 %v7413_v10 }
 0xbfb   :  { %v6380_v24 = vpop.f32.mrf.mxu1 }
 0xbfd   :  { %v6381_v13 = vpop.f32.mrf.mxu1 }
 0xbfe   :  { %v6382_v18 = vadd.f32 %v6381_v13, %v6380_v24 }
 0xbff   :  { %v6383_v27 = vpop.f32.mrf.mxu1 }
 0xc00   :  { %v2354_v51 = vadd.f32 %v6382_v18, %v6013_v12 }
 0xc01   :  { %v6384_v53 = vpop.f32.mrf.mxu1 }
 0xc02   :  { %v6385_v22 = vadd.f32 %v6384_v53, %v6383_v27  ;;  %v2368_v55 = vadd.f32 %v2354_v51, %v8232_v11 }
 0xc03   :  { %v6386_v29 = vpop.f32.mrf.mxu1 }
 0xc04   :  { %v2357_v20 = vadd.f32 %v6385_v22, %v6013_v12  ;;  %v2374_v21 = vsel %vm297_vm4, %v2368_v55, 0.0  ;;  %v6030_v22 = vld [vmem:[%s9316_s18] ss:$0 sm:$0xff] }
 0xc05   :  { %v6387_v63 = vpop.f32.mrf.mxu1  ;;  %2375 = vadd.xlane.f32.xlu0 %v2374_v21  ;;  %v6031_v21 = vld [vmem:[%s9317_s19] ss:$0 sm:$0xff] }
 0xc06   :  { %v6388_v35 = vadd.f32 %v6387_v63, %v6386_v29  ;;  %v2369_v61 = vadd.f32 %v2357_v20, %v8234_v62 }
 0xc07   :  { %v6389_v8 = vpop.f32.mrf.mxu1 }
 0xc08   :  { %v2362_v16 = vadd.f32 %v6388_v35, %v6013_v12  ;;  %v2377_v37 = vsel %vm297_vm4, %v2369_v61, 0.0 }
 0xc09   :  { %v6390_v9 = vpop.f32.mrf.mxu1  ;;  %2378 = vadd.xlane.f32.xlu1 %v2377_v37 }
 0xc0a   :  { %v6391_v23 = vadd.f32 %v6390_v9, %v6389_v8  ;;  %v2370_v52 = vadd.f32 %v2362_v16, %v8244_v40 }
 0xc0c   :  { %v2365_v45 = vadd.f32 %v6391_v23, %v6013_v12  ;;  %v2380_v11 = vsel %vm297_vm4, %v2370_v52, 0.0 }
 0xc0d   :  { %2381 = vadd.xlane.f32.xlu0 %v2380_v11 }
 0xc0e   :  { %v2371_v39 = vadd.f32 %v2365_v45, %v8242_v3 }
 0xc10   :  { %v2383_v26 = vsel %vm297_vm4, %v2371_v39, 0.0 }
 0xc11   :  { %2384 = vadd.xlane.f32.xlu1 %v2383_v26 }
 0xc8e   :  { %v2376_v48 = vpop.xlane.xlu0 %2375 }
 0xc8f   :  { %v2386_v62 = vmul.f32 0.015625, %v2376_v48  ;;  %v6040_v48 = vld [vmem:[%s9307_s9 + $0x2] sm:$0x3] }
 0xc91   :  { %v2390_v41 = vsub.f32 %v2368_v55, %v2386_v62 }
 0xc92   :  { %v2379_v14 = vpop.xlane.xlu1 %2378 }
 0xc93   :  { %v2387_v43 = vmul.f32 0.015625, %v2379_v14  ;;  %v2394_v36 = vmul.f32 %v2390_v41, %v2390_v41 }
 0xc95   :  { %v2391_v46 = vsub.f32 %v2369_v61, %v2387_v43  ;;  %v2398_v47 = vsel %vm297_vm4, %v2394_v36, 0.0  ;;  %v2467_v43 = vrot.slane %v6040_v48, %v7839_v17 }
 0xc96   :  { %2399 = vadd.xlane.f32.xlu0 %v2398_v47  ;;  %v2382_v40 = vpop.xlane.xlu0 %2381 }
 0xc97   :  { %v2388_v50 = vmul.f32 0.015625, %v2382_v40  ;;  %v2395_v54 = vmul.f32 %v2391_v46, %v2391_v46 }
 0xc99   :  { %v2392_v38 = vsub.f32 %v2370_v52, %v2388_v50  ;;  %v2401_v31 = vsel %vm297_vm4, %v2395_v54, 0.0 }
 0xc9a   :  { %2402 = vadd.xlane.f32.xlu1 %v2401_v31  ;;  %v2385_v3 = vpop.xlane.xlu1 %2384 }
 0xc9b   :  { %v2389_v58 = vmul.f32 0.015625, %v2385_v3  ;;  %v2396_v60 = vmul.f32 %v2392_v38, %v2392_v38 }
 0xc9d   :  { %v2393_v42 = vsub.f32 %v2371_v39, %v2389_v58  ;;  %v2404_v57 = vsel %vm297_vm4, %v2396_v60, 0.0 }
 0xc9e   :  { %2405 = vadd.xlane.f32.xlu0 %v2404_v57 }
 0xc9f   :  { %v2397_v6 = vmul.f32 %v2393_v42, %v2393_v42 }
 0xca1   :  { %v2407_v15 = vsel %vm297_vm4, %v2397_v6, 0.0 }
 0xca2   :  { %2408 = vadd.xlane.f32.xlu1 %v2407_v15 }
 0xd1f   :  { %v2400_v2 = vpop.xlane.xlu0 %2399 }
 0xd20   :  { %v2410_v5 = vmul.f32 0.015625, %v2400_v2 }
 0xd22   :  { %v2414_v7 = vadd.f32 1e-05, %v2410_v5 }
 0xd23   :  { %v2403_v28 = vpop.xlane.xlu1 %2402 }
 0xd24   :  { %7221 = vrsqrt.f32 %v2414_v7  ;;  %v2411_v49 = vmul.f32 0.015625, %v2403_v28 }
 0xd26   :  { %v2415_v19 = vadd.f32 1e-05, %v2411_v49 }
 0xd27   :  { %v2406_v44 = vpop.xlane.xlu0 %2405 }
 0xd28   :  { %7223 = vrsqrt.f32 %v2415_v19  ;;  %v2412_v24 = vmul.f32 0.015625, %v2406_v44 }
 0xd2a   :  { %v2416_v12 = vadd.f32 1e-05, %v2412_v24 }
 0xd2b   :  { %v2409_v13 = vpop.xlane.xlu1 %2408 }
 0xd2c   :  { %7225 = vrsqrt.f32 %v2416_v12  ;;  %v2413_v18 = vmul.f32 0.015625, %v2409_v13 }
 0xd2e   :  { %v2417_v27 = vadd.f32 1e-05, %v2413_v18 }
 0xd30   :  { %7227 = vrsqrt.f32 %v2417_v27 }
 0xd31   :  { %v7222_v51 = vpop.eup %7221 }
 0xd32   :  { %v2422_v53 = vmul.f32 %v7222_v51, %v2390_v41  ;;  %v2463_v41 = vrot.slane %v6040_v48, %v7826_v34 }
 0xd34   :  { %v2432_v29 = vmul.f32 %v6030_v22, %v2422_v53 }
 0xd35   :  { %v7224_v55 = vpop.eup %7223 }
 0xd36   :  { %v2423_v20 = vmul.f32 %v7224_v55, %v2391_v46  ;;  %v8322_v61 = vadd.f32 %v6031_v21, %v2432_v29 }
 0xd38   :  { %v2433_v63 = vmul.f32 %v6030_v22, %v2423_v20 }
 0xd39   :  { %v7226_v35 = vpop.eup %7225 }
 0xd3a   :  { %v8324_v8 = vadd.f32 %v6031_v21, %v2433_v63  ;;  %v2424_v16 = vmul.f32 %v7226_v35, %v2392_v38 }
 0xd3c   :  { %v2446_v37 = vpack.c.bf16 %v8324_v8, %v8322_v61  ;;  %v2434_v52 = vmul.f32 %v6030_v22, %v2424_v16 }
 0xd3d   :  { %v7228_v9 = vpop.eup %7227 }
 0xd3e   :  { %6049 = vmatmul.mubr.msk.bf16.vlgmr.msra.gmra.mxu0 %vm297_vm4, %v2446_v37  ;;  %v2425_v23 = vmul.f32 %v7228_v9, %v2393_v42  ;;  %v8330_v11 = vadd.f32 %v6031_v21, %v2434_v52 }
 0xd3f   :  { %2558 = vmatprep.mubr.bf16.mxu0 %v7412_v56 }
 0xd40   :  { %v2435_v45 = vmul.f32 %v6030_v22, %v2425_v23 }
 0xd42   :  { %v8332_v39 = vadd.f32 %v6031_v21, %v2435_v45 }
 0xd44   :  { %v2447_v26 = vpack.c.bf16 %v8332_v39, %v8330_v11 }
 0xd46   :  { %6050 = vmatmul.mubr.msk.bf16.gmra.mxu0 %vm297_vm4, %v2447_v26 }
 0xd47   :  { %6654 = vmatprep.mubr.msk.bf16.mxu0 %vm7414_vm10, %v7413_v10 }
 0xdfe   :  { %v2550_v62 = vpop.f32.mrf.mxu0 }
 0xdff   :  { %v2551_v46 = vadd.f32 %v2550_v62, %v2463_v41 }
 0xe00   :  { %v2552_v14 = vpop.f32.mrf.mxu0 }
 0xe01   :  { %v2553_v50 = vadd.f32 %v2552_v14, %v2467_v43  ;;  %v2569_v58 = vmul.f32 0.25, %v2551_v46 }
 0xe02   :  { %v2554_v36 = vpop.f32.mrf.mxu0 }
 0xe03   :  { %v2555_v47 = vadd.f32 %v2554_v36, %v2463_v41 }
 0xe04   :  { %v2556_v40 = vpop.f32.mrf.mxu0 }
 0xe05   :  { %v2570_v54 = vmul.f32 0.25, %v2555_v47  ;;  %v2572_v38 = vpack.c.bf16 %v2555_v47, %v2551_v46  ;;  %v2557_v31 = vadd.f32 %v2556_v40, %v2467_v43 }
 0xe06   :  { %v2560_v3 = vpop.f32.mrf.mxu0 }
 0xe07   :  { %v8344_v60 = vpack.c.bf16 %v2557_v31, %v2553_v50  ;;  %2694 = vrot.lane.b32.xlu1 %v2572_v38, %s7415_s1  ;;  %2574 = vrot.lane.b32.xlu0 %v2572_v38, %s7411_s5  ;;  %v2571_v57 = vpack.c.bf16 %v2570_v54, %v2569_v58  ;;  %v2561_v33 = vadd.f32 %v2560_v3, %v2463_v41 }
 0xe08   :  { %v2562_v42 = vpop.f32.mrf.mxu0 }
 0xe09   :  { %v2563_v6 = vadd.f32 %v2562_v42, %v2467_v43  ;;  %v3086_v4 = vmul.f32 0.25, %v2561_v33 }
 0xe0a   :  { %v2564_v15 = vpop.f32.mrf.mxu0 }
 0xe0b   :  { %2814 = vrot.lane.b32.xlu0 %v2571_v57, %s7419_s24  ;;  %2692 = vrot.lane.b32.xlu1 %v2571_v57, %s7417_s22  ;;  %v2565_v59 = vadd.f32 %v2564_v15, %v2463_v41 }
 0xe0c   :  { %v2566_v0 = vpop.f32.mrf.mxu0 }
 0xe0d   :  { %v2567_v32 = vadd.f32 %v2566_v0, %v2467_v43  ;;  %v3089_v30 = vpack.c.bf16 %v2565_v59, %v2561_v33  ;;  %v3087_v25 = vmul.f32 0.25, %v2565_v59 }
 0xe0f   :  { %v8350_v1 = vpack.c.bf16 %v2567_v32, %v2563_v6  ;;  %2935 = vrot.lane.b32.xlu0 %v2571_v57, %s7420_s2  ;;  %2816 = vrot.lane.b32.xlu1 %v2572_v38, %s7416_s6  ;;  %v3088_v2 = vpack.c.bf16 %v3087_v25, %v3086_v4 }
 0xe13   :  { %2937 = vrot.lane.b32.xlu1 %v2572_v38, %s7418_s23  ;;  %3211 = vrot.lane.b32.xlu0 %v3089_v30, %s7415_s1 }
 0xe17   :  { %3333 = vrot.lane.b32.xlu0 %v3089_v30, %s7416_s6  ;;  %3091 = vrot.lane.b32.xlu1 %v3089_v30, %s7411_s5 }
 0xe1b   :  { %3454 = vrot.lane.b32.xlu0 %v3089_v30, %s7418_s23  ;;  %3209 = vrot.lane.b32.xlu1 %v3088_v2, %s7417_s22 }
 0xe1f   :  { %3331 = vrot.lane.b32.xlu1 %v3088_v2, %s7419_s24 }
 0xe23   :  { %3452 = vrot.lane.b32.xlu1 %v3088_v2, %s7420_s2 }
 0xe79   :  { %v2695_v5 = vpop.permute.xlu1 %2694  ;;  %v2575_v7 = vpop.permute.xlu0 %2574 }
 0xe7a   :  { %v2700_v28 = vsel %vm847_vm11, %v2695_v5, 0  ;;  %v2580_v49 = vsel %vm847_vm11, %v2575_v7, 0 }
 0xe7b   :  { %6653 = vmatpush3.bf16.xpose.msra.mxu0 %v2580_v49  ;;  %6665 = vmatpush3.bf16.xpose.msra.mxu1 %v2700_v28 }
 0xe7c   :  { %6658 = vmatprep.subr.bf16.mxu0 %v7413_v10  ;;  %6676 = vmatprep.subr.bf16.mxu1 %v7413_v10 }
 0xe7d   :  { %v2693_v19 = vpop.permute.xlu1 %2692  ;;  %v2815_v13 = vpop.permute.xlu0 %2814 }
 0xe81   :  { %v2817_v44 = vpop.permute.xlu1 %2816  ;;  %v2936_v51 = vpop.permute.xlu0 %2935 }
 0xe82   :  { %v2822_v24 = vsel %vm847_vm11, %v2817_v44, 0  ;;  %6655 = vmatmul.mubr.msk.bf16.vlgmr.msra.gmra.mxu0 %vm847_vm11, %v2571_v57  ;;  %6667 = vmatmul.mubr.msk.bf16.vlgmr.msra.gmra.mxu1 %vm847_vm11, %v2693_v19 }
 0xe83   :  { %6659 = vmatpush3.bf16.msra.mxu0 %v8344_v60  ;;  %6677 = vmatpush3.bf16.xpose.msra.mxu1 %v2822_v24 }
 0xe84   :  { %6678 = vmatprep.mubr.msk.bf16.mxu1 %vm7414_vm10, %v7413_v10  ;;  %6688 = vmatprep.subr.bf16.mxu1 %v7413_v10 }
 0xe85   :  { %6660 = vmatprep.mubr.msk.bf16.mxu0 %vm7414_vm10, %v7413_v10  ;;  %6670 = vmatprep.subr.bf16.mxu0 %v7413_v10  ;;  %v2938_v12 = vpop.permute.xlu1 %2937  ;;  %v3212_v22 = vpop.permute.xlu0 %3211 }
 0xe86   :  { %v2943_v18 = vsel %vm847_vm11, %v2938_v12, 0  ;;  %v3217_v55 = vsel %vm847_vm11, %v3212_v22, 0 }
 0xe89   :  { %v3092_v27 = vpop.permute.xlu1 %3091  ;;  %v3334_v29 = vpop.permute.xlu0 %3333 }
 0xe8a   :  { %6679 = vmatmul.mubr.msk.bf16.vlgmr.msra.gmra.mxu1 %vm847_vm11, %v2815_v13  ;;  %v3097_v53 = vsel %vm847_vm11, %v3092_v27, 0  ;;  %v3339_v21 = vsel %vm847_vm11, %v3334_v29, 0 }
 0xe8b   :  { %6689 = vmatpush3.bf16.xpose.msra.mxu1 %v2943_v18  ;;  %6690 = vmatprep.mubr.msk.bf16.mxu1 %vm7414_vm10, %v7413_v10 }
 0xe8c   :  { %6700 = vmatprep.subr.bf16.mxu1 %v7413_v10 }
 0xe8d   :  { %v3210_v20 = vpop.permute.xlu1 %3209  ;;  %v3455_v63 = vpop.permute.xlu0 %3454 }
 0xe8e   :  { %v3460_v16 = vsel %vm847_vm11, %v3455_v63, 0 }
 0xe91   :  { %v3332_v35 = vpop.permute.xlu1 %3331 }
 0xe92   :  { %6691 = vmatmul.mubr.msk.bf16.vlgmr.msra.gmra.mxu1 %vm847_vm11, %v2936_v51 }
 0xe93   :  { %6701 = vmatpush3.bf16.xpose.msra.mxu1 %v3097_v53  ;;  %6702 = vmatprep.mubr.msk.bf16.mxu1 %vm7414_vm10, %v7413_v10 }
 0xe94   :  { %6712 = vmatprep.subr.bf16.mxu1 %v7413_v10 }
 0xe95   :  { %v3453_v37 = vpop.permute.xlu1 %3452 }
 0xe9a   :  { %6703 = vmatmul.mubr.msk.bf16.vlgmr.msra.gmra.mxu1 %vm847_vm11, %v3088_v2 }
 0xe9b   :  { %6713 = vmatpush3.bf16.xpose.msra.mxu1 %v3217_v55  ;;  %6714 = vmatprep.mubr.msk.bf16.mxu1 %vm7414_vm10, %v7413_v10 }
 0xe9c   :  { %6724 = vmatprep.subr.bf16.mxu1 %v7413_v10 }
 0xea2   :  { %6715 = vmatmul.mubr.msk.bf16.vlgmr.msra.gmra.mxu1 %vm847_vm11, %v3210_v20 }
 0xea3   :  { %6725 = vmatpush3.bf16.xpose.msra.mxu1 %v3339_v21  ;;  %6726 = vmatprep.mubr.msk.bf16.mxu1 %vm7414_vm10, %v7413_v10 }
 0xea4   :  { %6736 = vmatprep.subr.bf16.mxu1 %v7413_v10 }
 0xeaa   :  { %6727 = vmatmul.mubr.msk.bf16.vlgmr.msra.gmra.mxu1 %vm847_vm11, %v3332_v35 }
 0xeab   :  { %6737 = vmatpush3.bf16.xpose.msra.mxu1 %v3460_v16  ;;  %6738 = vmatprep.mubr.msk.bf16.mxu1 %vm7414_vm10, %v7413_v10 }
 0xeb2   :  { %6739 = vmatmul.mubr.msk.bf16.vlgmr.msra.gmra.mxu1 %vm847_vm11, %v3453_v37 }
 0xf42   :  { %v8401_v9 = vpop.f32.mrf.mxu0  ;;  %v8403_v23 = vpop.f32.mrf.mxu1 }
 0xf43   :  { %v2623_v52 = vsel %vm847_vm11, %v8401_v9, -inf  ;;  %v2743_v41 = vsel %vm847_vm11, %v8403_v23, -inf }
 0xf44   :  { %v6668_v45 = vpop.f32.mrf.mxu1  ;;  %2624 = vmax.xlane.f32.xlu0 %v2623_v52  ;;  %v6656_v26 = vpop.f32.mrf.mxu0 }
 0xf46   :  { %v8407_v48 = vpop.f32.mrf.mxu0  ;;  %v8409_v62 = vpop.f32.mrf.mxu1 }
 0xf47   :  { %v2626_v14 = vsel %vm847_vm11, %v8407_v48, -inf  ;;  %v2746_v47 = vsel %vm847_vm11, %v8409_v62, -inf }
 0xf48   :  { %v6669_v43 = vpop.f32.mrf.mxu1  ;;  %2744 = vmax.xlane.f32.xlu0 %v2743_v41  ;;  %2627 = vmax.xlane.f32.xlu1 %v2626_v14  ;;  %v6657_v36 = vpop.f32.mrf.mxu0 }
 0xf4a   :  { %v8415_v46 = vpop.f32.mrf.mxu1 }
 0xf4b   :  { %v2865_v54 = vsel %vm847_vm11, %v8415_v46, -inf }
 0xf4c   :  { %2747 = vmax.xlane.f32.xlu0 %v2746_v47  ;;  %v6680_v40 = vpop.f32.mrf.mxu1 }
 0xf4e   :  { %v8419_v50 = vpop.f32.mrf.mxu1 }
 0xf4f   :  { %v2868_v38 = vsel %vm847_vm11, %v8419_v50, -inf }
 0xf50   :  { %2866 = vmax.xlane.f32.xlu0 %v2865_v54  ;;  %2869 = vmax.xlane.f32.xlu1 %v2868_v38  ;;  %v6681_v31 = vpop.f32.mrf.mxu1 }
 0xf52   :  { %v8425_v3 = vpop.f32.mrf.mxu1 }
 0xf53   :  { %v2986_v58 = vsel %vm847_vm11, %v8425_v3, -inf }
 0xf54   :  { %2987 = vmax.xlane.f32.xlu0 %v2986_v58  ;;  %v6692_v42 = vpop.f32.mrf.mxu1 }
 0xf56   :  { %v8429_v57 = vpop.f32.mrf.mxu1 }
 0xf57   :  { %v2989_v6 = vsel %vm847_vm11, %v8429_v57, -inf }
 0xf58   :  { %2990 = vmax.xlane.f32.xlu1 %v2989_v6  ;;  %v6693_v15 = vpop.f32.mrf.mxu1 }
 0xf5a   :  { %v8433_v0 = vpop.f32.mrf.mxu1 }
 0xf5b   :  { %v3140_v59 = vsel %vm847_vm11, %v8433_v0, -inf }
 0xf5c   :  { %3141 = vmax.xlane.f32.xlu0 %v3140_v59  ;;  %v6704_v32 = vpop.f32.mrf.mxu1 }
 0xf5e   :  { %v8437_v33 = vpop.f32.mrf.mxu1 }
 0xf5f   :  { %v3143_v30 = vsel %vm847_vm11, %v8437_v33, -inf }
 0xf60   :  { %3144 = vmax.xlane.f32.xlu1 %v3143_v30  ;;  %v6705_v25 = vpop.f32.mrf.mxu1 }
 0xf62   :  { %v8441_v4 = vpop.f32.mrf.mxu1 }
 0xf63   :  { %v3260_v2 = vsel %vm847_vm11, %v8441_v4, -inf }
 0xf64   :  { %3261 = vmax.xlane.f32.xlu0 %v3260_v2  ;;  %v6716_v5 = vpop.f32.mrf.mxu1 }
 0xf66   :  { %v8445_v7 = vpop.f32.mrf.mxu1 }
 0xf67   :  { %v3263_v28 = vsel %vm847_vm11, %v8445_v7, -inf }
 0xf68   :  { %3264 = vmax.xlane.f32.xlu1 %v3263_v28  ;;  %v6717_v49 = vpop.f32.mrf.mxu1 }
 0xf6a   :  { %v8449_v19 = vpop.f32.mrf.mxu1 }
 0xf6b   :  { %v3382_v44 = vsel %vm847_vm11, %v8449_v19, -inf }
 0xf6c   :  { %3383 = vmax.xlane.f32.xlu0 %v3382_v44  ;;  %v6728_v24 = vpop.f32.mrf.mxu1 }
 0xf6e   :  { %v8453_v12 = vpop.f32.mrf.mxu1 }
 0xf6f   :  { %v3385_v13 = vsel %vm847_vm11, %v8453_v12, -inf }
 0xf70   :  { %3386 = vmax.xlane.f32.xlu1 %v3385_v13  ;;  %v6729_v18 = vpop.f32.mrf.mxu1 }
 0xf72   :  { %v8457_v27 = vpop.f32.mrf.mxu1 }
 0xf73   :  { %v3503_v51 = vsel %vm847_vm11, %v8457_v27, -inf }
 0xf74   :  { %3504 = vmax.xlane.f32.xlu0 %v3503_v51  ;;  %v6740_v53 = vpop.f32.mrf.mxu1 }
 0xf76   :  { %v8461_v22 = vpop.f32.mrf.mxu1 }
 0xf77   :  { %v3506_v55 = vsel %vm847_vm11, %v8461_v22, -inf }
 0xf78   :  { %3507 = vmax.xlane.f32.xlu1 %v3506_v55  ;;  %v6741_v29 = vpop.f32.mrf.mxu1 }
 0xf89   :  { %2888 = vrot.lane.b32.xlu1 %v8344_v60, %s7419_s24 }
 0xf8a   :  { %2767 = vrot.lane.b32.xlu0 %v8344_v60, %s7417_s22 }
 0xfcd   :  { %v2625_v20 = vpop.xlane.xlu0 %2624 }
 0xfce   :  { %v2629_v21 = vsub.f32 %v8401_v9, %v2625_v20 }
 0xfd0   :  { %v2631_v63 = vmul.f32 1.442695, %v2629_v21 }
 0xfd1   :  { %v2628_v35 = vpop.xlane.xlu1 %2627  ;;  %v2745_v16 = vpop.xlane.xlu0 %2744 }
 0xfd2   :  { %7229 = vpow2.f32 %v2631_v63  ;;  %v2630_v37 = vsub.f32 %v8407_v48, %v2628_v35  ;;  %v2749_v52 = vsub.f32 %v8403_v23, %v2745_v16 }
 0xfd4   :  { %v2633_v45 = vmul.f32 1.442695, %v2630_v37  ;;  %v2751_v26 = vmul.f32 1.442695, %v2749_v52 }
 0xfd5   :  { %v2748_v41 = vpop.xlane.xlu0 %2747 }
 0xfd6   :  { %7231 = vpow2.f32 %v2633_v45  ;;  %v2750_v14 = vsub.f32 %v8409_v62, %v2748_v41 }
 0xfd7   :  { %7233 = vpow2.f32 %v2751_v26 }
 0xfd8   :  { %v2753_v43 = vmul.f32 1.442695, %v2750_v14 }
 0xfd9   :  { %v2870_v36 = vpop.xlane.xlu1 %2869  ;;  %v2867_v47 = vpop.xlane.xlu0 %2866 }
 0xfda   :  { %7235 = vpow2.f32 %v2753_v43  ;;  %v2872_v9 = vsub.f32 %v8419_v50, %v2870_v36  ;;  %v2871_v40 = vsub.f32 %v8415_v46, %v2867_v47 }
 0xfdc   :  { %v2875_v54 = vmul.f32 1.442695, %v2872_v9  ;;  %v2873_v38 = vmul.f32 1.442695, %v2871_v40 }
 0xfdd   :  { %v2988_v48 = vpop.xlane.xlu0 %2987 }
 0xfde   :  { %7237 = vpow2.f32 %v2875_v54  ;;  %v2992_v23 = vsub.f32 %v8425_v3, %v2988_v48 }
 0xfdf   :  { %v8476_v31 = vpop.eup %7229  ;;  %7239 = vpow2.f32 %v2873_v38 }
 0xfe0   :  { %v2994_v58 = vmul.f32 1.442695, %v2992_v23  ;;  %v2635_v62 = vsel %vm847_vm11, %v8476_v31, 0.0 }
 0xfe1   :  { %v2991_v42 = vpop.xlane.xlu1 %2990  ;;  %2636 = vadd.xlane.f32.xlu0 %v2635_v62 }
 0xfe2   :  { %7241 = vpow2.f32 %v2994_v58  ;;  %v2993_v50 = vsub.f32 %v8429_v57, %v2991_v42 }
 0xfe3   :  { %v8481_v6 = vpop.eup %7231 }
 0xfe4   :  { %v8483_v46 = vpop.eup %7233  ;;  %v2996_v15 = vmul.f32 1.442695, %v2993_v50  ;;  %v2638_v3 = vsel %vm847_vm11, %v8481_v6, 0.0 }
 0xfe5   :  { %2639 = vadd.xlane.f32.xlu1 %v2638_v3  ;;  %v2755_v59 = vsel %vm847_vm11, %v8483_v46, 0.0  ;;  %v3142_v32 = vpop.xlane.xlu0 %3141 }
 0xfe6   :  { %7243 = vpow2.f32 %v2996_v15  ;;  %2756 = vadd.xlane.f32.xlu0 %v2755_v59  ;;  %v3146_v30 = vsub.f32 %v8433_v0, %v3142_v32 }
 0xfe7   :  { %v8490_v25 = vpop.eup %7235 }
 0xfe8   :  { %v3148_v57 = vmul.f32 1.442695, %v3146_v30  ;;  %v2758_v2 = vsel %vm847_vm11, %v8490_v25, 0.0 }
 0xfe9   :  { %v3145_v5 = vpop.xlane.xlu1 %3144  ;;  %2759 = vadd.xlane.f32.xlu1 %v2758_v2 }
 0xfea   :  { %7245 = vpow2.f32 %v3148_v57  ;;  %v3147_v28 = vsub.f32 %v8437_v33, %v3145_v5 }
 0xfeb   :  { %v8495_v49 = vpop.eup %7237 }
 0xfec   :  { %v8497_v44 = vpop.eup %7239  ;;  %v3150_v24 = vmul.f32 1.442695, %v3147_v28  ;;  %v2880_v13 = vsel %vm847_vm11, %v8495_v49, 0.0 }
 0xfed   :  { %2881 = vadd.xlane.f32.xlu1 %v2880_v13  ;;  %v2877_v0 = vsel %vm847_vm11, %v8497_v44, 0.0  ;;  %v3262_v18 = vpop.xlane.xlu0 %3261 }
 0xfee   :  { %7247 = vpow2.f32 %v3150_v24  ;;  %2878 = vadd.xlane.f32.xlu0 %v2877_v0  ;;  %v3266_v51 = vsub.f32 %v8441_v4, %v3262_v18 }
 0xfef   :  { %v8504_v53 = vpop.eup %7241 }
 0xff0   :  { %v3268_v33 = vmul.f32 1.442695, %v3266_v51  ;;  %v2998_v55 = vsel %vm847_vm11, %v8504_v53, 0.0 }
 0xff1   :  { %v3265_v29 = vpop.xlane.xlu1 %3264 }
 0xff2   :  { %7249 = vpow2.f32 %v3268_v33  ;;  %v3267_v20 = vsub.f32 %v8445_v7, %v3265_v29  ;;  %2999 = vadd.xlane.f32.xlu0 %v2998_v55 }
 0xff3   :  { %v8509_v21 = vpop.eup %7243 }
 0xff4   :  { %v3270_v63 = vmul.f32 1.442695, %v3267_v20  ;;  %v3001_v35 = vsel %vm847_vm11, %v8509_v21, 0.0 }
 0xff5   :  { %3002 = vadd.xlane.f32.xlu1 %v3001_v35  ;;  %v3384_v37 = vpop.xlane.xlu0 %3383 }
 0xff6   :  { %7251 = vpow2.f32 %v3270_v63  ;;  %v3388_v50 = vsub.f32 %v8449_v19, %v3384_v37 }
 0xff7   :  { %v8513_v4 = vpop.eup %7245 }
 0xff8   :  { %v3152_v16 = vsel %vm847_vm11, %v8513_v4, 0.0  ;;  %v3390_v15 = vmul.f32 1.442695, %v3388_v50 }
 0xff9   :  { %v3387_v52 = vpop.xlane.xlu1 %3386  ;;  %3153 = vadd.xlane.f32.xlu0 %v3152_v16 }
 0xffa   :  { %v3389_v45 = vsub.f32 %v8453_v12, %v3387_v52 }
 0xffb   :  { %v8518_v7 = vpop.eup %7247 }
 0xffc   :  { %v3392_v26 = vmul.f32 1.442695, %v3389_v45  ;;  %v3155_v41 = vsel %vm847_vm11, %v8518_v7, 0.0 }
 0xffd   :  { %3156 = vadd.xlane.f32.xlu1 %v3155_v41  ;;  %v3505_v14 = vpop.xlane.xlu0 %3504 }
 0xffe   :  { %7253 = vpow2.f32 %v3392_v26  ;;  %v3509_v43 = vsub.f32 %v8457_v27, %v3505_v14 }
 0xfff   :  { %v8523_v36 = vpop.eup %7249 }
0x1000   :  { %v3511_v47 = vmul.f32 1.442695, %v3509_v43  ;;  %v3272_v9 = vsel %vm847_vm11, %v8523_v36, 0.0 }
0x1001   :  { %v3508_v40 = vpop.xlane.xlu1 %3507  ;;  %3273 = vadd.xlane.f32.xlu1 %v3272_v9  ;;  %v2768_v59 = vpop.permute.xlu0 %2767 }
0x1002   :  { %7255 = vpow2.f32 %v3511_v47  ;;  %v3510_v12 = vsub.f32 %v8461_v22, %v3508_v40 }
0x1003   :  { %v8528_v54 = vpop.eup %7251 }
0x1004   :  { %v3513_v38 = vmul.f32 1.442695, %v3510_v12  ;;  %v3275_v48 = vsel %vm847_vm11, %v8528_v54, 0.0 }
0x1005   :  { %3276 = vadd.xlane.f32.xlu1 %v3275_v48  ;;  %v2889_v19 = vpop.permute.xlu1 %2888 }
0x1006   :  { %7257 = vpow2.f32 %v3513_v38 }
0x1007   :  { %7259 = vpow2.f32 %v3390_v15 }
0x100b   :  { %v8532_v27 = vpop.eup %7253 }
0x100c   :  { %v3397_v23 = vsel %vm847_vm11, %v8532_v27, 0.0 }
0x100d   :  { %3398 = vadd.xlane.f32.xlu1 %v3397_v23 }
0x100f   :  { %v8536_v58 = vpop.eup %7255  ;;  %3009 = vrot.lane.b32.xlu0 %v8344_v60, %s7420_s2 }
0x1010   :  { %v3515_v22 = vsel %vm847_vm11, %v8536_v58, 0.0 }
0x1011   :  { %3516 = vadd.xlane.f32.xlu1 %v3515_v22 }
0x1013   :  { %v8542_v62 = vpop.eup %7257 }
0x1014   :  { %v3518_v42 = vsel %vm847_vm11, %v8542_v62, 0.0  ;;  %v8549_v3 = vpop.eup %7259 }
0x1015   :  { %3519 = vadd.xlane.f32.xlu1 %v3518_v42  ;;  %v3394_v60 = vsel %vm847_vm11, %v8549_v3, 0.0 }
0x1026   :  { %3284 = vrot.lane.b32.xlu1 %v8350_v1, %s7417_s22 }
0x102e   :  { %3395 = vadd.xlane.f32.xlu0 %v3394_v60 }
0x1044   :  { %3405 = vrot.lane.b32.xlu0 %v8350_v1, %s7419_s24 }
0x1048   :  { %3526 = vrot.lane.b32.xlu0 %v8350_v1, %s7420_s2 }
0x106a   :  { %v2637_v32 = vpop.xlane.xlu0 %2636 }
0x106b   :  { %7261 = vrcp.f32 %v2637_v32 }
0x106e   :  { %v2640_v30 = vpop.xlane.xlu1 %2639 }
0x106f   :  { %7263 = vrcp.f32 %v2640_v30  ;;  %v2757_v57 = vpop.xlane.xlu0 %2756 }
0x1072   :  { %v2760_v2 = vpop.xlane.xlu1 %2759 }
0x1073   :  { %7265 = vrcp.f32 %v2760_v2 }
0x1074   :  { %7267 = vrcp.f32 %v2757_v57 }
0x1076   :  { %v2882_v5 = vpop.xlane.xlu1 %2881 }
0x1077   :  { %v2879_v28 = vpop.xlane.xlu0 %2878  ;;  %7269 = vrcp.f32 %v2882_v5 }
0x1078   :  { %v7262_v24 = vpop.eup %7261  ;;  %7271 = vrcp.f32 %v2879_v28 }
0x1079   :  { %v2642_v0 = vmul.f32 %v7262_v24, %v8476_v31 }
0x107b   :  { %v3000_v20 = vpop.xlane.xlu0 %2999 }
0x107c   :  { %v7264_v13 = vpop.eup %7263 }
0x107d   :  { %v2644_v18 = vmul.f32 %v7264_v13, %v8481_v6 }
0x107e   :  { %v3003_v55 = vpop.xlane.xlu1 %3002 }
0x107f   :  { %v2645_v51 = vpack.c.bf16 %v2644_v18, %v2642_v0  ;;  %7273 = vrcp.f32 %v3003_v55 }
0x1080   :  { %v7266_v33 = vpop.eup %7265  ;;  %7275 = vrcp.f32 %v3000_v20 }
0x1081   :  { %6661 = vmatmul.mubr.msk.bf16.vlgmr.msra.gmra.mxu0 %vm847_vm11, %v2645_v51  ;;  %v7268_v29 = vpop.eup %7267  ;;  %v2764_v63 = vmul.f32 %v7266_v33, %v8490_v25 }
0x1082   :  { %6671 = vmatpush3.bf16.msra.mxu0 %v2768_v59  ;;  %6672 = vmatprep.mubr.msk.bf16.mxu0 %vm7414_vm10, %v7413_v10  ;;  %v2762_v31 = vmul.f32 %v7268_v29, %v8483_v46  ;;  %v3154_v52 = vpop.xlane.xlu0 %3153 }
0x1083   :  { %6682 = vmatprep.subr.bf16.mxu0 %v7413_v10 }
0x1084   :  { %v7270_v35 = vpop.eup %7269  ;;  %v2765_v16 = vpack.c.bf16 %v2764_v63, %v2762_v31 }
0x1085   :  { %v7272_v37 = vpop.eup %7271  ;;  %v2886_v26 = vmul.f32 %v7270_v35, %v8495_v49 }
0x1086   :  { %v3157_v6 = vpop.xlane.xlu1 %3156  ;;  %v2884_v25 = vmul.f32 %v7272_v37, %v8497_v44  ;;  %v3010_v43 = vpop.permute.xlu0 %3009 }
0x1087   :  { %7277 = vrcp.f32 %v3157_v6 }
0x1088   :  { %7279 = vrcp.f32 %v3154_v52  ;;  %v2887_v46 = vpack.c.bf16 %v2886_v26, %v2884_v25 }
0x1089   :  { %6673 = vmatmul.mubr.msk.bf16.vlgmr.msra.gmra.mxu0 %vm847_vm11, %v2765_v16 }
0x108a   :  { %6683 = vmatpush3.bf16.msra.mxu0 %v2889_v19  ;;  %v3274_v45 = vpop.xlane.xlu1 %3273  ;;  %6684 = vmatprep.mubr.msk.bf16.mxu0 %vm7414_vm10, %v7413_v10 }
0x108b   :  { %6694 = vmatprep.subr.bf16.mxu0 %v7413_v10 }
0x108c   :  { %v7274_v41 = vpop.eup %7273 }
0x108d   :  { %v7276_v47 = vpop.eup %7275  ;;  %v3007_v9 = vmul.f32 %v7274_v41, %v8509_v21  ;;  %v7049_v41 = vld [vmem:[%s9308_s10 + $0x38] sm:$0xff]  }
0x108e   :  { %v3277_v14 = vpop.xlane.xlu1 %3276  ;;  %v3005_v49 = vmul.f32 %v7276_v47, %v8504_v53  ;;  %6748 = vmatprep.subr.bf16.mxu1 %v7049_v41 }
0x108f   :  { %7281 = vrcp.f32 %v3277_v14  ;;  %6749 = vmatpush3.bf16.msra.mxu1 %v7049_v41 }
0x1090   :  { %7283 = vrcp.f32 %v3274_v45  ;;  %v3008_v40 = vpack.c.bf16 %v3007_v9, %v3005_v49 }
0x1091   :  { %6685 = vmatmul.mubr.msk.bf16.vlgmr.msra.gmra.mxu0 %vm847_vm11, %v2887_v46 }
0x1092   :  { %6695 = vmatpush3.bf16.msra.mxu0 %v3010_v43  ;;  %6696 = vmatprep.mubr.msk.bf16.mxu0 %vm7414_vm10, %v7413_v10 }
0x1093   :  { %6706 = vmatprep.subr.bf16.mxu0 %v7413_v10 }
0x1094   :  { %v7278_v12 = vpop.eup %7277 }
0x1095   :  { %v7280_v38 = vpop.eup %7279  ;;  %v3161_v23 = vmul.f32 %v7278_v12, %v8518_v7  ;;  %v7051_v12 = vld [vmem:[%s9308_s10 + $0x28] sm:$0xff]  }
0x1096   :  { %v3399_v44 = vpop.xlane.xlu1 %3398  ;;  %v3159_v21 = vmul.f32 %v7280_v38, %v8513_v4 }
0x1097   :  { %7285 = vrcp.f32 %v3399_v44 }
0x1098   :  { %v3162_v53 = vpack.c.bf16 %v3161_v23, %v3159_v21 }
0x1099   :  { %6697 = vmatmul.mubr.msk.bf16.vlgmr.msra.gmra.mxu0 %vm847_vm11, %v3008_v40  ;;  %v7050_v40 = vld [vmem:[%s9308_s10 + $0x30] sm:$0xff]  }
0x109a   :  { %6707 = vmatpush3.bf16.msra.mxu0 %v8350_v1  ;;  %v3517_v48 = vpop.xlane.xlu1 %3516  ;;  %6708 = vmatprep.mubr.msk.bf16.mxu0 %vm7414_vm10, %v7413_v10 }
0x109b   :  { %6718 = vmatprep.subr.bf16.mxu0 %v7413_v10  ;;  %6750 = vmatprep.subr.bf16.mxu1 %v7050_v40 }
0x109c   :  { %v7282_v42 = vpop.eup %7281  ;;  %6751 = vmatpush3.bf16.msra.mxu1 %v7050_v40 }
0x109d   :  { %v7284_v50 = vpop.eup %7283  ;;  %v3281_v1 = vmul.f32 %v7282_v42, %v8528_v54  ;;  %6752 = vmatprep.subr.bf16.mxu1 %v7051_v12 }
0x109e   :  { %v3520_v22 = vpop.xlane.xlu1 %3519  ;;  %v3279_v7 = vmul.f32 %v7284_v50, %v8523_v36 }
0x10a0   :  { %v3282_v60 = vpack.c.bf16 %v3281_v1, %v3279_v7  ;;  %6753 = vmatpush3.bf16.msra.mxu1 %v7051_v12 }
0x10a1   :  { %6709 = vmatmul.mubr.msk.bf16.vlgmr.msra.gmra.mxu0 %vm847_vm11, %v3162_v53 }
0x10a2   :  { %v3285_v15 = vpop.permute.xlu1 %3284  ;;  %6720 = vmatprep.mubr.msk.bf16.mxu0 %vm7414_vm10, %v7413_v10 }
0x10a3   :  { %6719 = vmatpush3.bf16.msra.mxu0 %v3285_v15 }
0x10a4   :  { %6730 = vmatprep.subr.bf16.mxu0 %v7413_v10  ;;  %v7286_v54 = vpop.eup %7285 }
0x10a5   :  { %v3403_v36 = vmul.f32 %v7286_v54, %v8532_v27 }
0x10a9   :  { %6721 = vmatmul.mubr.msk.bf16.vlgmr.msra.gmra.mxu0 %vm847_vm11, %v3282_v60 }
0x10aa   :  { %6732 = vmatprep.mubr.msk.bf16.mxu0 %vm7414_vm10, %v7413_v10 }
0x10b7   :  { %v3396_v4 = vpop.xlane.xlu0 %3395 }
0x10b8   :  { %7287 = vrcp.f32 %v3396_v4 }
0x10b9   :  { %7289 = vrcp.f32 %v3520_v22  ;;  %v7052_v22 = vld [vmem:[%s9308_s10 + $0x20] sm:$0xff]  }
0x10ba   :  { %7291 = vrcp.f32 %v3517_v48  ;;  %6754 = vmatprep.subr.bf16.mxu1 %v7052_v22 }
0x10bb   :  { %v3406_v59 = vpop.permute.xlu0 %3405  ;;  %6755 = vmatpush3.bf16.msra.mxu1 %v7052_v22 }
0x10bc   :  { %6731 = vmatpush3.bf16.msra.mxu0 %v3406_v59 }
0x10bd   :  { %6742 = vmatprep.subr.bf16.mxu0 %v7413_v10 }
0x10bf   :  { %v3527_v2 = vpop.permute.xlu0 %3526 }
0x10c5   :  { %v7288_v19 = vpop.eup %7287 }
0x10c6   :  { %v3401_v32 = vmul.f32 %v7288_v19, %v8549_v3  ;;  %v7290_v57 = vpop.eup %7289 }
0x10c7   :  { %v7292_v5 = vpop.eup %7291  ;;  %v3524_v28 = vmul.f32 %v7290_v57, %v8542_v62 }
0x10c8   :  { %v3404_v30 = vpack.c.bf16 %v3403_v36, %v3401_v32  ;;  %v3522_v24 = vmul.f32 %v7292_v5, %v8536_v58 }
0x10ca   :  { %6733 = vmatmul.mubr.msk.bf16.vlgmr.msra.gmra.mxu0 %vm847_vm11, %v3404_v30  ;;  %v3525_v13 = vpack.c.bf16 %v3524_v28, %v3522_v24 }
0x10cb   :  { %6743 = vmatpush3.bf16.msra.mxu0 %v3527_v2  ;;  %6744 = vmatprep.mubr.msk.bf16.mxu0 %vm7414_vm10, %v7413_v10 }
0x10d2   :  { %6745 = vmatmul.mubr.msk.bf16.vlgmr.msra.gmra.mxu0 %vm847_vm11, %v3525_v13 }
0x10d3   :  { %3883 = vmatprep.mubr.bf16.mxu0 %v7412_v56 }
0x1141   :  { %v8603_v27 = vpop.f32.mrf.mxu0 }
0x1143   :  { %v6662_v3 = vpop.f32.mrf.mxu0 }
0x1145   :  { %v2687_v0 = vpop.f32.mrf.mxu0 }
0x1147   :  { %v6663_v18 = vpop.f32.mrf.mxu0 }
0x1149   :  { %v2807_v51 = vpop.f32.mrf.mxu0 }
0x114b   :  { %v6674_v33 = vpop.f32.mrf.mxu0 }
0x114d   :  { %v2810_v55 = vpop.f32.mrf.mxu0 }
0x114e   :  { %v6911_v29 = vpack.i.bf16 %v2810_v55, %v2807_v51 }
0x114f   :  { %v6675_v20 = vpop.f32.mrf.mxu0 }
0x1150   :  { %6912 = vrot.lane.b32.xlu0 %v6911_v29, %s7418_s23 }
0x1151   :  { %v2928_v62 = vpop.f32.mrf.mxu0 }
0x1153   :  { %v6686_v63 = vpop.f32.mrf.mxu0 }
0x1155   :  { %v2931_v58 = vpop.f32.mrf.mxu0 }
0x1156   :  { %v6916_v31 = vpack.i.bf16 %v2931_v58, %v2928_v62 }
0x1157   :  { %v6687_v6 = vpop.f32.mrf.mxu0 }
0x1158   :  { %6917 = vrot.lane.b32.xlu1 %v6916_v31, %s7416_s6 }
0x1159   :  { %v3049_v35 = vpop.f32.mrf.mxu0 }
0x115b   :  { %v6698_v16 = vpop.f32.mrf.mxu0 }
0x115d   :  { %v3052_v37 = vpop.f32.mrf.mxu0 }
0x115e   :  { %v6921_v52 = vpack.i.bf16 %v3052_v37, %v3049_v35 }
0x115f   :  { %v6699_v45 = vpop.f32.mrf.mxu0 }
0x1160   :  { %6922 = vrot.lane.b32.xlu1 %v6921_v52, %s7415_s1 }
0x1161   :  { %v3201_v25 = vpop.f32.mrf.mxu0 }
0x1163   :  { %v6710_v26 = vpop.f32.mrf.mxu0 }
0x1164   :  { %v6076_v26 = vld [vmem:[%s9309_s11 + $0x1] ss:$0 sm:$0xff] }
0x1165   :  { %v3204_v46 = vpop.f32.mrf.mxu0 }
0x1167   :  { %v6711_v14 = vpop.f32.mrf.mxu0 }
0x1169   :  { %v3324_v43 = vpop.f32.mrf.mxu0 }
0x116b   :  { %v6722_v47 = vpop.f32.mrf.mxu0 }
0x116d   :  { %v3327_v9 = vpop.f32.mrf.mxu0 }
0x116e   :  { %v6926_v49 = vpack.i.bf16 %v3327_v9, %v3324_v43 }
0x116f   :  { %v6723_v44 = vpop.f32.mrf.mxu0 }
0x1170   :  { %6927 = vrot.lane.b32.xlu0 %v6926_v49, %s7418_s23 }
0x118a   :  { %v3445_v38 = vpop.f32.mrf.mxu0 }
0x118c   :  { %v6734_v48 = vpop.f32.mrf.mxu0 }
0x118e   :  { %v3448_v23 = vpop.f32.mrf.mxu0 }
0x118f   :  { %v6931_v21 = vpack.i.bf16 %v3448_v23, %v3445_v38 }
0x1190   :  { %v6735_v53 = vpop.f32.mrf.mxu0 }
0x1191   :  { %6932 = vrot.lane.b32.xlu0 %v6931_v21, %s7416_s6 }
0x1192   :  { %v3566_v42 = vpop.f32.mrf.mxu0 }
0x1194   :  { %v6746_v50 = vpop.f32.mrf.mxu0 }
0x1196   :  { %v3569_v15 = vpop.f32.mrf.mxu0 }
0x1197   :  { %v6936_v1 = vpack.i.bf16 %v3569_v15, %v3566_v42 }
0x1198   :  { %v6747_v7 = vpop.f32.mrf.mxu0 }
0x1199   :  { %6937 = vrot.lane.b32.xlu1 %v6936_v1, %s7415_s1 }
0x11c2   :  { %v6913_v60 = vpop.permute.xlu0 %6912 }
0x11c3   :  { %v6915_v59 = vunpack.i.h.bf16 %v6913_v60  ;;  %v6914_v54 = vunpack.i.l.bf16 %v6913_v60 }
0x11c5   :  { %v3081_v30 = vsel %vm847_vm11, %v2687_v0, %v6915_v59  ;;  %v3080_v57 = vsel %vm847_vm11, %v8603_v27, %v6914_v54 }
0x11ca   :  { %v6918_v4 = vpop.permute.xlu1 %6917 }
0x11cb   :  { %v6920_v19 = vunpack.i.h.bf16 %v6918_v4  ;;  %v6919_v32 = vunpack.i.l.bf16 %v6918_v4 }
0x11cd   :  { %v3082_v28 = vsel %vm73_vm0, %v3080_v57, %v6919_v32  ;;  %v3083_v24 = vsel %vm73_vm0, %v3081_v30, %v6920_v19 }
0x11d2   :  { %v6923_v36 = vpop.permute.xlu1 %6922 }
0x11d3   :  { %v6925_v2 = vunpack.i.h.bf16 %v6923_v36  ;;  %v6924_v5 = vunpack.i.l.bf16 %v6923_v36 }
0x11d5   :  { %v3084_v13 = vsel %vm1356_vm12, %v3082_v28, %v6924_v5  ;;  %v3085_v3 = vsel %vm1356_vm12, %v3083_v24, %v6925_v2  ;;  %v7055_v2 = vld [vmem:[%s9312_s14 + $0x74] ss:$8 sps:$4 sm:$0xff]   ;;  %v7053_v5 = vld [vmem:[%s9312_s14 + $0x70] ss:$8 sps:$4 sm:$0xff]   ;;  %v7058_v28 = vld [vmem:[%s9312_s14 + $0x64] ss:$8 sps:$4 sm:$0xff]  }
0x11d6   :  { %v3603_v18 = vpack.c.bf16 %v3085_v3, %v3084_v13  ;;  %3859 = vmatprep.subr.bf16.mxu0 %v7055_v2  ;;  %v7056_v24 = vld [vmem:[%s9312_s14 + $0x60] ss:$8 sps:$4 sm:$0xff]   ;;  %v7061_v13 = vld [vmem:[%s9312_s14 + $0x54] ss:$8 sps:$4 sm:$0xff]   ;;  %v7059_v3 = vld [vmem:[%s9312_s14 + $0x50] ss:$8 sps:$4 sm:$0xff]  }
0x11d7   :  { %3860 = vmatpush1.bf16.msra.mxu0 %v7053_v5 }
0x11d8   :  { %6756 = vmatprep.mubr.msk.bf16.mxu1 %vm297_vm4, %v3603_v18  ;;  %3861 = vmatprep.subr.bf16.mxu0 %v7058_v28  ;;  %v7064_v18 = vld [vmem:[%s9312_s14 + $0x44] ss:$8 sps:$4 sm:$0xff]  }
0x11db   :  { %3862 = vmatpush1.bf16.msra.mxu0 %v7056_v24 }
0x11dc   :  { %3863 = vmatprep.subr.bf16.mxu0 %v7061_v13 }
0x11df   :  { %3864 = vmatpush1.bf16.msra.mxu0 %v7059_v3 }
0x11e0   :  { %3865 = vmatprep.subr.bf16.mxu0 %v7064_v18 }
0x11e2   :  { %v6928_v51 = vpop.permute.xlu0 %6927 }
0x11e3   :  { %v6930_v55 = vunpack.i.h.bf16 %v6928_v51  ;;  %v6929_v0 = vunpack.i.l.bf16 %v6928_v51  ;;  %v7062_v51 = vld [vmem:[%s9312_s14 + $0x40] ss:$8 sps:$4 sm:$0xff]  }
0x11e4   :  { %3866 = vmatpush1.bf16.msra.mxu0 %v7062_v51 }
0x11e5   :  { %v3598_v62 = vsel %vm847_vm11, %v3204_v46, %v6930_v55  ;;  %v3597_v63 = vsel %vm847_vm11, %v3201_v25, %v6929_v0  ;;  %v7066_v55 = vld [vmem:[%s9314_s16 + $0xb8] sm:$0xff]   ;;  %v7067_v0 = vld [vmem:[%s9314_s16 + $0xf0] sm:$0xff]  }
0x1203   :  { %v6933_v33 = vpop.permute.xlu0 %6932 }
0x1204   :  { %v6935_v29 = vunpack.i.h.bf16 %v6933_v33  ;;  %v6934_v20 = vunpack.i.l.bf16 %v6933_v33  ;;  %v7065_v33 = vld [vmem:[%s9314_s16 + $0xf8] sm:$0xff]  }
0x1205   :  { %6430 = vmatprep.subr.bf16.mxu1 %v7065_v33 }
0x1206   :  { %v3599_v6 = vsel %vm73_vm0, %v3597_v63, %v6934_v20  ;;  %v3600_v35 = vsel %vm73_vm0, %v3598_v62, %v6935_v29  ;;  %v7068_v29 = vld [vmem:[%s9314_s16 + $0xb0] sm:$0xff]   ;;  %v7069_v20 = vld [vmem:[%s9314_s16 + $0xe8] sm:$0xff]   ;;  %v7071_v62 = vld [vmem:[%s9314_s16 + $0xe0] sm:$0xff]  }
0x1207   :  { %v7072_v63 = vld [vmem:[%s9314_s16 + $0xa0] sm:$0xff]  }
0x120b   :  { %v6938_v27 = vpop.permute.xlu1 %6937 }
0x120c   :  { %v6940_v58 = vunpack.i.h.bf16 %v6938_v27  ;;  %v6939_v31 = vunpack.i.l.bf16 %v6938_v27  ;;  %v7070_v27 = vld [vmem:[%s9314_s16 + $0xa8] sm:$0xff]  }
0x120e   :  { %v3601_v16 = vsel %vm1356_vm12, %v3599_v6, %v6939_v31  ;;  %v3602_v37 = vsel %vm1356_vm12, %v3600_v35, %v6940_v58  ;;  %v7073_v58 = vld [vmem:[%s9314_s16 + $0xd8] sm:$0xff]  }
0x120f   :  { %v3604_v52 = vpack.c.bf16 %v3602_v37, %v3601_v16  ;;  %v7074_v31 = vld [vmem:[%s9314_s16 + $0x98] sm:$0xff]  }
0x1211   :  { %6757 = vmatmul.mubr.msk.bf16.vlgmr.msra.gmra.mxu1 %vm297_vm4, %v3604_v52 }
0x1212   :  { %6431 = vmatpush3.bf16.msra.mxu1 %v7066_v55 }
0x1213   :  { %6432 = vmatprep.subr.bf16.mxu1 %v7067_v0 }
0x1216   :  { %6433 = vmatpush3.bf16.msra.mxu1 %v7068_v29 }
0x1217   :  { %6434 = vmatprep.subr.bf16.mxu1 %v7069_v20 }
0x121a   :  { %6435 = vmatpush3.bf16.msra.mxu1 %v7070_v27 }
0x121b   :  { %6436 = vmatprep.subr.bf16.mxu1 %v7071_v62 }
0x121e   :  { %6437 = vmatpush3.bf16.msra.mxu1 %v7072_v63 }
0x121f   :  { %6438 = vmatprep.subr.bf16.mxu1 %v7073_v58 }
0x1222   :  { %6439 = vmatpush3.bf16.msra.mxu1 %v7074_v31 }
0x12d1   :  { %v6758_v45 = vpop.f32.mrf.mxu1 }
0x12d2   :  { %v3695_v25 = vadd.f32 %v6758_v45, %v6076_v26 }
0x12d3   :  { %v3686_v46 = vpop.f32.mrf.mxu1 }
0x12d4   :  { %v3687_v41 = vadd.f32 %v6076_v26, %v3686_v46  ;;  %v3703_v9 = vadd.f32 %v3695_v25, %v8330_v11 }
0x12d5   :  { %v6759_v14 = vpop.f32.mrf.mxu1 }
0x12d6   :  { %v3701_v43 = vadd.f32 %v3687_v41, %v8322_v61  ;;  %v3698_v49 = vadd.f32 %v6759_v14, %v6076_v26  ;;  %v3715_v23 = vsel %vm297_vm4, %v3703_v9, 0.0 }
0x12d7   :  { %v3689_v47 = vpop.f32.mrf.mxu1 }
0x12d8   :  { %v3690_v44 = vadd.f32 %v6076_v26, %v3689_v47  ;;  %v3709_v40 = vsel %vm297_vm4, %v3701_v43, 0.0  ;;  %v3704_v38 = vadd.f32 %v3698_v49, %v8332_v39  ;;  %v6085_v49 = vld [vmem:[%s9310_s12 + $0x1] ss:$0 sm:$0xff] }
0x12d9   :  { %3710 = vadd.xlane.f32.xlu0 %v3709_v40 }
0x12da   :  { %v3702_v12 = vadd.f32 %v3690_v44, %v8324_v8  ;;  %v3718_v61 = vsel %vm297_vm4, %v3704_v38, 0.0 }
0x12dc   :  { %v3712_v48 = vsel %vm297_vm4, %v3702_v12, 0.0 }
0x12dd   :  { %3713 = vadd.xlane.f32.xlu1 %v3712_v48  ;;  %3716 = vadd.xlane.f32.xlu0 %v3715_v23  ;;  %v6086_v48 = vld [vmem:[%s9311_s13 + $0x1] ss:$0 sm:$0xff] }
0x12e1   :  { %3719 = vadd.xlane.f32.xlu0 %v3718_v61 }
0x1362   :  { %v3711_v21 = vpop.xlane.xlu0 %3710 }
0x1363   :  { %v3721_v11 = vmul.f32 0.015625, %v3711_v21 }
0x1365   :  { %v8649_v22 = vsub.f32 %v3701_v43, %v3721_v11 }
0x1366   :  { %v3714_v53 = vpop.xlane.xlu1 %3713  ;;  %v3717_v42 = vpop.xlane.xlu0 %3716 }
0x1367   :  { %v3722_v50 = vmul.f32 0.015625, %v3714_v53  ;;  %v3723_v15 = vmul.f32 0.015625, %v3717_v42  ;;  %v3729_v8 = vmul.f32 %v8649_v22, %v8649_v22 }
0x1369   :  { %v8653_v39 = vsub.f32 %v3702_v12, %v3722_v50  ;;  %v8655_v1 = vsub.f32 %v3703_v9, %v3723_v15  ;;  %v3733_v7 = vsel %vm297_vm4, %v3729_v8, 0.0 }
0x136a   :  { %3734 = vadd.xlane.f32.xlu0 %v3733_v7  ;;  %v3720_v60 = vpop.xlane.xlu0 %3719 }
0x136b   :  { %v3724_v4 = vmul.f32 0.015625, %v3720_v60  ;;  %v3730_v59 = vmul.f32 %v8653_v39, %v8653_v39  ;;  %v3731_v54 = vmul.f32 %v8655_v1, %v8655_v1  ;;  %v7076_v60 = vld [vmem:[%s9314_s16 + $0x90] sm:$0xff]  }
0x136d   :  { %v8662_v19 = vsub.f32 %v3704_v38, %v3724_v4  ;;  %v3736_v32 = vsel %vm297_vm4, %v3730_v59, 0.0  ;;  %v3739_v36 = vsel %vm297_vm4, %v3731_v54, 0.0  ;;  %v7077_v4 = vld [vmem:[%s9314_s16 + $0xc8] sm:$0xff]   ;;  %v7079_v54 = vld [vmem:[%s9314_s16 + $0xc0] sm:$0xff]  }
0x136e   :  { %3737 = vadd.xlane.f32.xlu1 %v3736_v32  ;;  %3740 = vadd.xlane.f32.xlu0 %v3739_v36  ;;  %v7078_v59 = vld [vmem:[%s9314_s16 + $0x88] sm:$0xff]   ;;  %v6095_v32 = vld [vmem:[%s9313_s15 + $0x2] sm:$0x3] }
0x136f   :  { %v3732_v30 = vmul.f32 %v8662_v19, %v8662_v19 }
0x1371   :  { %v3742_v57 = vsel %vm297_vm4, %v3732_v30, 0.0  ;;  %v3802_v30 = vrot.slane %v6095_v32, %v7839_v17 }
0x1372   :  { %3743 = vadd.xlane.f32.xlu1 %v3742_v57  ;;  %v3798_v57 = vrot.slane %v6095_v32, %v7826_v34 }
0x13f3   :  { %v3735_v6 = vpop.xlane.xlu0 %3734 }
0x13f4   :  { %v3745_v35 = vmul.f32 0.015625, %v3735_v6 }
0x13f6   :  { %v3749_v16 = vadd.f32 1e-05, %v3745_v35 }
0x13f7   :  { %v3738_v37 = vpop.xlane.xlu1 %3737  ;;  %v3741_v52 = vpop.xlane.xlu0 %3740 }
0x13f8   :  { %7293 = vrsqrt.f32 %v3749_v16  ;;  %v3746_v45 = vmul.f32 0.015625, %v3738_v37  ;;  %v3747_v26 = vmul.f32 0.015625, %v3741_v52 }
0x13fa   :  { %v3750_v46 = vadd.f32 1e-05, %v3746_v45  ;;  %v3751_v25 = vadd.f32 1e-05, %v3747_v26 }
0x13fb   :  { %v3744_v41 = vpop.xlane.xlu1 %3743 }
0x13fc   :  { %7295 = vrsqrt.f32 %v3750_v46  ;;  %v3748_v14 = vmul.f32 0.015625, %v3744_v41 }
0x13fd   :  { %7297 = vrsqrt.f32 %v3751_v25 }
0x13fe   :  { %v3752_v43 = vadd.f32 1e-05, %v3748_v14  ;;  %v6139_v14 = vld [vmem:[%s9315_s17 + $0x1] ss:$0 sm:$0xff] }
0x1400   :  { %7299 = vrsqrt.f32 %v3752_v43 }
0x1405   :  { %v7294_v47 = vpop.eup %7293 }
0x1406   :  { %v3757_v9 = vmul.f32 %v7294_v47, %v8649_v22 }
0x1408   :  { %v3767_v12 = vmul.f32 %v6085_v49, %v3757_v9 }
0x1409   :  { %v7296_v44 = vpop.eup %7295 }
0x140a   :  { %v3758_v40 = vmul.f32 %v7296_v44, %v8653_v39  ;;  %v7298_v38 = vpop.eup %7297  ;;  %v8731_v21 = vadd.f32 %v6086_v48, %v3767_v12 }
0x140b   :  { %v3759_v22 = vmul.f32 %v7298_v38, %v8655_v1  ;;  %v7075_v1 = vld [vmem:[%s9314_s16 + $0xd0] sm:$0xff]  }
0x140c   :  { %v3768_v23 = vmul.f32 %v6085_v49, %v3758_v40  ;;  %6440 = vmatprep.subr.bf16.mxu1 %v7075_v1 }
0x140d   :  { %v7300_v61 = vpop.eup %7299  ;;  %v3769_v15 = vmul.f32 %v6085_v49, %v3759_v22  ;;  %6441 = vmatpush3.bf16.msra.mxu1 %v7076_v60 }
0x140e   :  { %v8733_v11 = vadd.f32 %v6086_v48, %v3768_v23  ;;  %v3760_v53 = vmul.f32 %v7300_v61, %v8662_v19  ;;  %6442 = vmatprep.subr.bf16.mxu1 %v7077_v4  ;;  %v7080_v19 = vld [vmem:[%s9314_s16 + $0x80] sm:$0xff]  }
0x140f   :  { %v8743_v39 = vadd.f32 %v6086_v48, %v3769_v15 }
0x1410   :  { %v3781_v42 = vpack.c.bf16 %v8733_v11, %v8731_v21  ;;  %v3770_v50 = vmul.f32 %v6085_v49, %v3760_v53 }
0x1411   :  { %6443 = vmatpush3.bf16.msra.mxu1 %v7078_v59 }
0x1412   :  { %6104 = vmatmul.mubr.msk.bf16.vlgmr.msra.gmra.mxu0 %vm297_vm4, %v3781_v42  ;;  %v8741_v8 = vadd.f32 %v6086_v48, %v3770_v50  ;;  %6444 = vmatprep.subr.bf16.mxu1 %v7079_v54 }
0x1413   :  { %3893 = vmatprep.mubr.bf16.mxu0 %v7412_v56 }
0x1414   :  { %v3782_v7 = vpack.c.bf16 %v8741_v8, %v8743_v39 }
0x1415   :  { %6445 = vmatpush3.bf16.msra.mxu1 %v7080_v19 }
0x1416   :  { %6772 = vmatprep.subr.bf16.mxu1 %v7413_v10 }
0x141a   :  { %6105 = vmatmul.mubr.msk.bf16.gmra.mxu0 %vm297_vm4, %v3782_v7 }
0x141b   :  { %4284 = vmatprep.mubr.bf16.mxu0 %v7412_v56 }
0x14d2   :  { %v3885_v36 = vpop.f32.mrf.mxu0 }
0x14d3   :  { %v3886_v13 = vadd.f32 %v3885_v36, %v3798_v57 }
0x14d4   :  { %v3887_v2 = vpop.f32.mrf.mxu0 }
0x14d5   :  { %v3888_v28 = vadd.f32 %v3887_v2, %v3802_v30  ;;  %v3904_v29 = vmax.f32 %v3886_v13, 0.0 }
0x14d6   :  { %v3889_v5 = vpop.f32.mrf.mxu0 }
0x14d7   :  { %v3890_v24 = vadd.f32 %v3889_v5, %v3798_v57  ;;  %v3905_v55 = vmax.f32 %v3888_v28, 0.0 }
0x14d8   :  { %v3891_v3 = vpop.f32.mrf.mxu0 }
0x14d9   :  { %v3892_v18 = vadd.f32 %v3891_v3, %v3802_v30  ;;  %v3906_v51 = vmax.f32 %v3890_v24, 0.0 }
0x14da   :  { %v3895_v33 = vpop.f32.mrf.mxu0 }
0x14db   :  { %v3907_v0 = vmax.f32 %v3892_v18, 0.0  ;;  %v3912_v62 = vpack.c.bf16 %v3906_v51, %v3904_v29  ;;  %v3896_v6 = vadd.f32 %v3895_v33, %v3798_v57 }
0x14dc   :  { %v3897_v20 = vpop.f32.mrf.mxu0 }
0x14dd   :  { %v3913_v27 = vpack.c.bf16 %v3907_v0, %v3905_v55  ;;  %v3898_v58 = vadd.f32 %v3897_v20, %v3802_v30  ;;  %v3908_v26 = vmax.f32 %v3896_v6, 0.0  ;;  %v7083_v20 = vld [vmem:[%s9306_s8 + $0xb4] ss:$8 sps:$4 sm:$0xff]   ;;  %v7092_v6 = vld [vmem:[%s9306_s8 + $0x84] ss:$8 sps:$4 sm:$0xff]  }
0x14de   :  { %v3899_v63 = vpop.f32.mrf.mxu0  ;;  %4260 = vmatprep.subr.bf16.mxu0 %v7083_v20 }
0x14df   :  { %v3900_v31 = vadd.f32 %v3899_v63, %v3798_v57  ;;  %4085 = vmatprep.mubr.bf16.mxu1 %v3913_v27  ;;  %v3909_v52 = vmax.f32 %v3898_v58, 0.0  ;;  %v7081_v27 = vld [vmem:[%s9306_s8 + $0xb0] ss:$8 sps:$4 sm:$0xff]   ;;  %v7084_v63 = vld [vmem:[%s9306_s8 + $0xa0] ss:$8 sps:$4 sm:$0xff]  }
0x14e0   :  { %v3901_v35 = vpop.f32.mrf.mxu0  ;;  %4086 = vmatmul.mubr.bf16.vlgmr.msra.gmra.mxu1 %v3912_v62  ;;  %4261 = vmatpush1.bf16.msra.mxu0 %v7081_v27  ;;  %v7086_v62 = vld [vmem:[%s9306_s8 + $0xa4] ss:$8 sps:$4 sm:$0xff]   ;;  %v7089_v58 = vld [vmem:[%s9306_s8 + $0x94] ss:$8 sps:$4 sm:$0xff]  }
0x14e1   :  { %v3902_v16 = vadd.f32 %v3901_v35, %v3802_v30  ;;  %v3910_v37 = vmax.f32 %v3900_v31, 0.0  ;;  %4262 = vmatprep.subr.bf16.mxu0 %v7086_v62  ;;  %v7087_v31 = vld [vmem:[%s9306_s8 + $0x90] ss:$8 sps:$4 sm:$0xff]   ;;  %v7090_v35 = vld [vmem:[%s9306_s8 + $0x80] ss:$8 sps:$4 sm:$0xff]  }
0x14e3   :  { %v3911_v45 = vmax.f32 %v3902_v16, 0.0  ;;  %v3914_v25 = vpack.c.bf16 %v3910_v37, %v3908_v26 }
0x14e4   :  { %4263 = vmatpush1.bf16.msra.mxu0 %v7084_v63 }
0x14e5   :  { %v3915_v46 = vpack.c.bf16 %v3911_v45, %v3909_v52  ;;  %4264 = vmatprep.subr.bf16.mxu0 %v7089_v58 }
0x14e7   :  { %4093 = vmatprep.mubr.bf16.mxu1 %v3915_v46 }
0x14e8   :  { %4094 = vmatmul.mubr.bf16.gmra.mxu1 %v3914_v25  ;;  %4265 = vmatpush1.bf16.msra.mxu0 %v7087_v31 }
0x14e9   :  { %6774 = vmatprep.mubr.msk.bf16.mxu1 %vm7414_vm10, %v7413_v10  ;;  %4266 = vmatprep.subr.bf16.mxu0 %v7092_v6 }
0x14ec   :  { %4267 = vmatpush1.bf16.msra.mxu0 %v7090_v35 }
0x14ed   :  { %6760 = vmatprep.subr.bf16.mxu0 %v7413_v10 }
0x15a0   :  { %v6446_v41 = vpop.f32.mrf.mxu1 }
0x15a2   :  { %v6447_v43 = vpop.f32.mrf.mxu1 }
0x15a3   :  { %v6448_v47 = vadd.f32 %v6447_v43, %v6446_v41 }
0x15a4   :  { %v6449_v9 = vpop.f32.mrf.mxu1 }
0x15a5   :  { %v4088_v49 = vadd.f32 %v6448_v47, %v6139_v14 }
0x15a6   :  { %v6450_v44 = vpop.f32.mrf.mxu1 }
0x15a7   :  { %v6451_v40 = vadd.f32 %v6450_v44, %v6449_v9  ;;  %v4102_v12 = vadd.f32 %v4088_v49, %v8731_v21 }
0x15a8   :  { %v6452_v38 = vpop.f32.mrf.mxu1 }
0x15a9   :  { %v4091_v48 = vadd.f32 %v6451_v40, %v6139_v14  ;;  %v4110_v23 = vsel %vm297_vm4, %v4102_v12, 0.0  ;;  %v6158_v40 = vld [vmem:[%s9316_s18 + $0x1] ss:$0 sm:$0xff] }
0x15aa   :  { %4111 = vadd.xlane.f32.xlu0 %v4110_v23  ;;  %v6453_v61 = vpop.f32.mrf.mxu1  ;;  %v6159_v23 = vld [vmem:[%s9317_s19 + $0x1] ss:$0 sm:$0xff] }
0x15ab   :  { %v6454_v22 = vadd.f32 %v6453_v61, %v6452_v38  ;;  %v4103_v53 = vadd.f32 %v4091_v48, %v8733_v11 }
0x15ac   :  { %v6455_v42 = vpop.f32.mrf.mxu1 }
0x15ad   :  { %v4096_v50 = vadd.f32 %v6454_v22, %v6139_v14  ;;  %v4113_v15 = vsel %vm297_vm4, %v4103_v53, 0.0 }
0x15ae   :  { %4114 = vadd.xlane.f32.xlu1 %v4113_v15  ;;  %v6456_v7 = vpop.f32.mrf.mxu1 }
0x15af   :  { %v6457_v1 = vadd.f32 %v6456_v7, %v6455_v42  ;;  %v4104_v60 = vadd.f32 %v4096_v50, %v8743_v39 }
0x15b1   :  { %v4099_v4 = vadd.f32 %v6457_v1, %v6139_v14  ;;  %v4116_v21 = vsel %vm297_vm4, %v4104_v60, 0.0 }
0x15b2   :  { %4117 = vadd.xlane.f32.xlu0 %v4116_v21 }
0x15b3   :  { %v4105_v59 = vadd.f32 %v4099_v4, %v8741_v8 }
0x15b5   :  { %v4119_v54 = vsel %vm297_vm4, %v4105_v59, 0.0 }
0x15b6   :  { %4120 = vadd.xlane.f32.xlu1 %v4119_v54 }
0x1633   :  { %v4112_v19 = vpop.xlane.xlu0 %4111 }
0x1634   :  { %v4122_v11 = vmul.f32 0.015625, %v4112_v19  ;;  %v6168_v19 = vld [vmem:[%s9307_s9 + $0x4] sm:$0x3] }
0x1636   :  { %v4126_v32 = vsub.f32 %v4102_v12, %v4122_v11 }
0x1637   :  { %v4115_v36 = vpop.xlane.xlu1 %4114 }
0x1638   :  { %v4123_v30 = vmul.f32 0.015625, %v4115_v36  ;;  %v4130_v57 = vmul.f32 %v4126_v32, %v4126_v32 }
0x163a   :  { %v4127_v2 = vsub.f32 %v4103_v53, %v4123_v30  ;;  %v4134_v5 = vsel %vm297_vm4, %v4130_v57, 0.0  ;;  %v4203_v30 = vrot.slane %v6168_v19, %v7839_v17 }
0x163b   :  { %4135 = vadd.xlane.f32.xlu0 %v4134_v5  ;;  %v4118_v39 = vpop.xlane.xlu0 %4117 }
0x163c   :  { %v4124_v28 = vmul.f32 0.015625, %v4118_v39  ;;  %v4131_v24 = vmul.f32 %v4127_v2, %v4127_v2 }
0x163e   :  { %v4128_v13 = vsub.f32 %v4104_v60, %v4124_v28  ;;  %v4137_v3 = vsel %vm297_vm4, %v4131_v24, 0.0 }
0x163f   :  { %4138 = vadd.xlane.f32.xlu1 %v4137_v3  ;;  %v4121_v8 = vpop.xlane.xlu1 %4120 }
0x1640   :  { %v4125_v18 = vmul.f32 0.015625, %v4121_v8  ;;  %v4132_v51 = vmul.f32 %v4128_v13, %v4128_v13 }
0x1642   :  { %v4129_v33 = vsub.f32 %v4105_v59, %v4125_v18  ;;  %v4140_v55 = vsel %vm297_vm4, %v4132_v51, 0.0 }
0x1643   :  { %4141 = vadd.xlane.f32.xlu0 %v4140_v55 }
0x1644   :  { %v4133_v0 = vmul.f32 %v4129_v33, %v4129_v33 }
0x1646   :  { %v4143_v29 = vsel %vm297_vm4, %v4133_v0, 0.0 }
0x1647   :  { %4144 = vadd.xlane.f32.xlu1 %v4143_v29 }
0x16c4   :  { %v4136_v16 = vpop.xlane.xlu0 %4135 }
0x16c5   :  { %v4146_v37 = vmul.f32 0.015625, %v4136_v16 }
0x16c7   :  { %v4150_v52 = vadd.f32 1e-05, %v4146_v37 }
0x16c8   :  { %v4139_v45 = vpop.xlane.xlu1 %4138 }
0x16c9   :  { %7301 = vrsqrt.f32 %v4150_v52  ;;  %v4147_v26 = vmul.f32 0.015625, %v4139_v45 }
0x16cb   :  { %v4151_v46 = vadd.f32 1e-05, %v4147_v26 }
0x16cc   :  { %v4142_v25 = vpop.xlane.xlu0 %4141 }
0x16cd   :  { %7303 = vrsqrt.f32 %v4151_v46  ;;  %v4148_v41 = vmul.f32 0.015625, %v4142_v25 }
0x16cf   :  { %v4152_v14 = vadd.f32 1e-05, %v4148_v41 }
0x16d0   :  { %v4145_v43 = vpop.xlane.xlu1 %4144 }
0x16d1   :  { %7305 = vrsqrt.f32 %v4152_v14  ;;  %v4149_v47 = vmul.f32 0.015625, %v4145_v43 }
0x16d3   :  { %v4153_v9 = vadd.f32 1e-05, %v4149_v47 }
0x16d5   :  { %7307 = vrsqrt.f32 %v4153_v9 }
0x16d6   :  { %v7302_v49 = vpop.eup %7301 }
0x16d7   :  { %v4158_v44 = vmul.f32 %v7302_v49, %v4126_v32  ;;  %v4199_v32 = vrot.slane %v6168_v19, %v7826_v34 }
0x16d9   :  { %v4168_v38 = vmul.f32 %v6158_v40, %v4158_v44 }
0x16da   :  { %v7304_v12 = vpop.eup %7303 }
0x16db   :  { %v4159_v48 = vmul.f32 %v7304_v12, %v4127_v2  ;;  %v8821_v53 = vadd.f32 %v6159_v23, %v4168_v38 }
0x16dd   :  { %v4169_v61 = vmul.f32 %v6158_v40, %v4159_v48 }
0x16de   :  { %v7306_v22 = vpop.eup %7305 }
0x16df   :  { %v8823_v42 = vadd.f32 %v6159_v23, %v4169_v61  ;;  %v4160_v50 = vmul.f32 %v7306_v22, %v4128_v13 }
0x16e1   :  { %v4182_v15 = vpack.c.bf16 %v8823_v42, %v8821_v53  ;;  %v4170_v60 = vmul.f32 %v6158_v40, %v4160_v50 }
0x16e2   :  { %v7308_v7 = vpop.eup %7307 }
0x16e3   :  { %v4161_v1 = vmul.f32 %v7308_v7, %v4129_v33  ;;  %6177 = vmatmul.mubr.msk.bf16.vlgmr.msra.gmra.mxu0 %vm297_vm4, %v4182_v15  ;;  %v8829_v21 = vadd.f32 %v6159_v23, %v4170_v60 }
0x16e4   :  { %4294 = vmatprep.mubr.bf16.mxu0 %v7412_v56 }
0x16e5   :  { %v4171_v4 = vmul.f32 %v6158_v40, %v4161_v1 }
0x16e7   :  { %v8831_v59 = vadd.f32 %v6159_v23, %v4171_v4 }
0x16e9   :  { %v4183_v54 = vpack.c.bf16 %v8831_v59, %v8829_v21 }
0x16eb   :  { %6178 = vmatmul.mubr.msk.bf16.gmra.mxu0 %vm297_vm4, %v4183_v54 }
0x16ec   :  { %6762 = vmatprep.mubr.msk.bf16.mxu0 %vm7414_vm10, %v7413_v10 }
0x17a3   :  { %v4286_v11 = vpop.f32.mrf.mxu0 }
0x17a4   :  { %v4287_v2 = vadd.f32 %v4286_v11, %v4199_v32 }
0x17a5   :  { %v4288_v36 = vpop.f32.mrf.mxu0 }
0x17a6   :  { %v4289_v28 = vadd.f32 %v4288_v36, %v4203_v30  ;;  %v4305_v18 = vmul.f32 0.25, %v4287_v2 }
0x17a7   :  { %v4290_v57 = vpop.f32.mrf.mxu0 }
0x17a8   :  { %v4291_v5 = vadd.f32 %v4290_v57, %v4199_v32 }
0x17a9   :  { %v4292_v39 = vpop.f32.mrf.mxu0 }
0x17aa   :  { %v4306_v24 = vmul.f32 0.25, %v4291_v5  ;;  %v4308_v13 = vpack.c.bf16 %v4291_v5, %v4287_v2  ;;  %v4293_v3 = vadd.f32 %v4292_v39, %v4203_v30 }
0x17ab   :  { %v4296_v8 = vpop.f32.mrf.mxu0 }
0x17ac   :  { %v8843_v51 = vpack.c.bf16 %v4293_v3, %v4289_v28  ;;  %4430 = vrot.lane.b32.xlu1 %v4308_v13, %s7415_s1  ;;  %4310 = vrot.lane.b32.xlu0 %v4308_v13, %s7411_s5  ;;  %v4307_v55 = vpack.c.bf16 %v4306_v24, %v4305_v18  ;;  %v4297_v63 = vadd.f32 %v4296_v8, %v4199_v32 }
0x17ad   :  { %v4298_v33 = vpop.f32.mrf.mxu0 }
0x17ae   :  { %v4299_v0 = vadd.f32 %v4298_v33, %v4203_v30  ;;  %v4822_v35 = vmul.f32 0.25, %v4297_v63 }
0x17af   :  { %v4300_v29 = vpop.f32.mrf.mxu0 }
0x17b0   :  { %4550 = vrot.lane.b32.xlu0 %v4307_v55, %s7419_s24  ;;  %4428 = vrot.lane.b32.xlu1 %v4307_v55, %s7417_s22  ;;  %v4301_v27 = vadd.f32 %v4300_v29, %v4199_v32 }
0x17b1   :  { %v4302_v20 = vpop.f32.mrf.mxu0 }
0x17b2   :  { %v4303_v62 = vadd.f32 %v4302_v20, %v4203_v30  ;;  %v4825_v31 = vpack.c.bf16 %v4301_v27, %v4297_v63  ;;  %v4823_v6 = vmul.f32 0.25, %v4301_v27 }
0x17b4   :  { %v8849_v58 = vpack.c.bf16 %v4303_v62, %v4299_v0  ;;  %4671 = vrot.lane.b32.xlu0 %v4307_v55, %s7420_s2  ;;  %4552 = vrot.lane.b32.xlu1 %v4308_v13, %s7416_s6  ;;  %v4824_v16 = vpack.c.bf16 %v4823_v6, %v4822_v35 }
0x17b8   :  { %4673 = vrot.lane.b32.xlu1 %v4308_v13, %s7418_s23  ;;  %4947 = vrot.lane.b32.xlu0 %v4825_v31, %s7415_s1 }
0x17bc   :  { %5069 = vrot.lane.b32.xlu0 %v4825_v31, %s7416_s6  ;;  %4827 = vrot.lane.b32.xlu1 %v4825_v31, %s7411_s5 }
0x17c0   :  { %5190 = vrot.lane.b32.xlu0 %v4825_v31, %s7418_s23  ;;  %4945 = vrot.lane.b32.xlu1 %v4824_v16, %s7417_s22 }
0x17c4   :  { %5067 = vrot.lane.b32.xlu1 %v4824_v16, %s7419_s24 }
0x17c8   :  { %5188 = vrot.lane.b32.xlu1 %v4824_v16, %s7420_s2 }
0x181e   :  { %v4431_v37 = vpop.permute.xlu1 %4430  ;;  %v4311_v52 = vpop.permute.xlu0 %4310 }
0x181f   :  { %v4436_v45 = vsel %vm847_vm11, %v4431_v37, 0  ;;  %v4316_v26 = vsel %vm847_vm11, %v4311_v52, 0 }
0x1820   :  { %6761 = vmatpush3.bf16.xpose.msra.mxu0 %v4316_v26  ;;  %6773 = vmatpush3.bf16.xpose.msra.mxu1 %v4436_v45 }
0x1821   :  { %6766 = vmatprep.subr.bf16.mxu0 %v7413_v10  ;;  %6784 = vmatprep.subr.bf16.mxu1 %v7413_v10 }
0x1822   :  { %v4429_v46 = vpop.permute.xlu1 %4428  ;;  %v4551_v43 = vpop.permute.xlu0 %4550 }
0x1826   :  { %v4553_v25 = vpop.permute.xlu1 %4552  ;;  %v4672_v49 = vpop.permute.xlu0 %4671 }
0x1827   :  { %v4558_v41 = vsel %vm847_vm11, %v4553_v25, 0  ;;  %6763 = vmatmul.mubr.msk.bf16.vlgmr.msra.gmra.mxu0 %vm847_vm11, %v4307_v55  ;;  %6775 = vmatmul.mubr.msk.bf16.vlgmr.msra.gmra.mxu1 %vm847_vm11, %v4429_v46 }
0x1828   :  { %6767 = vmatpush3.bf16.msra.mxu0 %v8843_v51  ;;  %6785 = vmatpush3.bf16.xpose.msra.mxu1 %v4558_v41 }
0x1829   :  { %6786 = vmatprep.mubr.msk.bf16.mxu1 %vm7414_vm10, %v7413_v10  ;;  %6796 = vmatprep.subr.bf16.mxu1 %v7413_v10 }
0x182a   :  { %6768 = vmatprep.mubr.msk.bf16.mxu0 %vm7414_vm10, %v7413_v10  ;;  %6778 = vmatprep.subr.bf16.mxu0 %v7413_v10  ;;  %v4674_v14 = vpop.permute.xlu1 %4673  ;;  %v4948_v40 = vpop.permute.xlu0 %4947 }
0x182b   :  { %v4679_v47 = vsel %vm847_vm11, %v4674_v14, 0  ;;  %v4953_v12 = vsel %vm847_vm11, %v4948_v40, 0 }
0x182e   :  { %v4828_v9 = vpop.permute.xlu1 %4827  ;;  %v5070_v38 = vpop.permute.xlu0 %5069 }
0x182f   :  { %6787 = vmatmul.mubr.msk.bf16.vlgmr.msra.gmra.mxu1 %vm847_vm11, %v4551_v43  ;;  %v4833_v44 = vsel %vm847_vm11, %v4828_v9, 0  ;;  %v5075_v23 = vsel %vm847_vm11, %v5070_v38, 0 }
0x1830   :  { %6797 = vmatpush3.bf16.xpose.msra.mxu1 %v4679_v47  ;;  %6798 = vmatprep.mubr.msk.bf16.mxu1 %vm7414_vm10, %v7413_v10 }
0x1831   :  { %6808 = vmatprep.subr.bf16.mxu1 %v7413_v10 }
0x1832   :  { %v4946_v48 = vpop.permute.xlu1 %4945  ;;  %v5191_v61 = vpop.permute.xlu0 %5190 }
0x1833   :  { %v5196_v50 = vsel %vm847_vm11, %v5191_v61, 0 }
0x1836   :  { %v5068_v22 = vpop.permute.xlu1 %5067 }
0x1837   :  { %6799 = vmatmul.mubr.msk.bf16.vlgmr.msra.gmra.mxu1 %vm847_vm11, %v4672_v49 }
0x1838   :  { %6809 = vmatpush3.bf16.xpose.msra.mxu1 %v4833_v44  ;;  %6810 = vmatprep.mubr.msk.bf16.mxu1 %vm7414_vm10, %v7413_v10 }
0x1839   :  { %6820 = vmatprep.subr.bf16.mxu1 %v7413_v10 }
0x183a   :  { %v5189_v15 = vpop.permute.xlu1 %5188 }
0x183f   :  { %6811 = vmatmul.mubr.msk.bf16.vlgmr.msra.gmra.mxu1 %vm847_vm11, %v4824_v16 }
0x1840   :  { %6821 = vmatpush3.bf16.xpose.msra.mxu1 %v4953_v12  ;;  %6822 = vmatprep.mubr.msk.bf16.mxu1 %vm7414_vm10, %v7413_v10 }
0x1841   :  { %6832 = vmatprep.subr.bf16.mxu1 %v7413_v10 }
0x1847   :  { %6823 = vmatmul.mubr.msk.bf16.vlgmr.msra.gmra.mxu1 %vm847_vm11, %v4946_v48 }
0x1848   :  { %6833 = vmatpush3.bf16.xpose.msra.mxu1 %v5075_v23  ;;  %6834 = vmatprep.mubr.msk.bf16.mxu1 %vm7414_vm10, %v7413_v10 }
0x1849   :  { %6844 = vmatprep.subr.bf16.mxu1 %v7413_v10 }
0x184f   :  { %6835 = vmatmul.mubr.msk.bf16.vlgmr.msra.gmra.mxu1 %vm847_vm11, %v5068_v22 }
0x1850   :  { %6845 = vmatpush3.bf16.xpose.msra.mxu1 %v5196_v50  ;;  %6846 = vmatprep.mubr.msk.bf16.mxu1 %vm7414_vm10, %v7413_v10 }
0x1857   :  { %6847 = vmatmul.mubr.msk.bf16.vlgmr.msra.gmra.mxu1 %vm847_vm11, %v5189_v15 }
0x18e7   :  { %v8900_v7 = vpop.f32.mrf.mxu0  ;;  %v8902_v1 = vpop.f32.mrf.mxu1 }
0x18e8   :  { %v4359_v60 = vsel %vm847_vm11, %v8900_v7, -inf  ;;  %v4479_v32 = vsel %vm847_vm11, %v8902_v1, -inf }
0x18e9   :  { %v6776_v4 = vpop.f32.mrf.mxu1  ;;  %4360 = vmax.xlane.f32.xlu0 %v4359_v60  ;;  %v6764_v54 = vpop.f32.mrf.mxu0 }
0x18eb   :  { %v8906_v19 = vpop.f32.mrf.mxu0  ;;  %v8908_v11 = vpop.f32.mrf.mxu1 }
0x18ec   :  { %v4362_v36 = vsel %vm847_vm11, %v8906_v19, -inf  ;;  %v4482_v5 = vsel %vm847_vm11, %v8908_v11, -inf }
0x18ed   :  { %v6777_v30 = vpop.f32.mrf.mxu1  ;;  %4480 = vmax.xlane.f32.xlu0 %v4479_v32  ;;  %4363 = vmax.xlane.f32.xlu1 %v4362_v36  ;;  %v6765_v57 = vpop.f32.mrf.mxu0 }
0x18ef   :  { %v8914_v2 = vpop.f32.mrf.mxu1 }
0x18f0   :  { %v4601_v24 = vsel %vm847_vm11, %v8914_v2, -inf }
0x18f1   :  { %4483 = vmax.xlane.f32.xlu0 %v4482_v5  ;;  %v6788_v39 = vpop.f32.mrf.mxu1 }
0x18f3   :  { %v8918_v28 = vpop.f32.mrf.mxu1 }
0x18f4   :  { %v4604_v13 = vsel %vm847_vm11, %v8918_v28, -inf }
0x18f5   :  { %4602 = vmax.xlane.f32.xlu0 %v4601_v24  ;;  %4605 = vmax.xlane.f32.xlu1 %v4604_v13  ;;  %v6789_v3 = vpop.f32.mrf.mxu1 }
0x18f7   :  { %v8924_v8 = vpop.f32.mrf.mxu1 }
0x18f8   :  { %v4722_v18 = vsel %vm847_vm11, %v8924_v8, -inf }
0x18f9   :  { %4723 = vmax.xlane.f32.xlu0 %v4722_v18  ;;  %v6800_v33 = vpop.f32.mrf.mxu1 }
0x18fb   :  { %v8928_v55 = vpop.f32.mrf.mxu1 }
0x18fc   :  { %v4725_v0 = vsel %vm847_vm11, %v8928_v55, -inf }
0x18fd   :  { %4726 = vmax.xlane.f32.xlu1 %v4725_v0  ;;  %v6801_v29 = vpop.f32.mrf.mxu1 }
0x18ff   :  { %v8932_v20 = vpop.f32.mrf.mxu1 }
0x1900   :  { %v4876_v27 = vsel %vm847_vm11, %v8932_v20, -inf }
0x1901   :  { %4877 = vmax.xlane.f32.xlu0 %v4876_v27  ;;  %v6812_v62 = vpop.f32.mrf.mxu1 }
0x1903   :  { %v8936_v63 = vpop.f32.mrf.mxu1 }
0x1904   :  { %v4879_v31 = vsel %vm847_vm11, %v8936_v63, -inf }
0x1905   :  { %4880 = vmax.xlane.f32.xlu1 %v4879_v31  ;;  %v6813_v6 = vpop.f32.mrf.mxu1 }
0x1907   :  { %v8940_v35 = vpop.f32.mrf.mxu1 }
0x1908   :  { %v4996_v16 = vsel %vm847_vm11, %v8940_v35, -inf }
0x1909   :  { %4997 = vmax.xlane.f32.xlu0 %v4996_v16  ;;  %v6824_v37 = vpop.f32.mrf.mxu1 }
0x190b   :  { %v8944_v52 = vpop.f32.mrf.mxu1 }
0x190c   :  { %v4999_v45 = vsel %vm847_vm11, %v8944_v52, -inf }
0x190d   :  { %5000 = vmax.xlane.f32.xlu1 %v4999_v45  ;;  %v6825_v26 = vpop.f32.mrf.mxu1 }
0x190f   :  { %v8948_v46 = vpop.f32.mrf.mxu1 }
0x1910   :  { %v5118_v25 = vsel %vm847_vm11, %v8948_v46, -inf }
0x1911   :  { %5119 = vmax.xlane.f32.xlu0 %v5118_v25  ;;  %v6836_v41 = vpop.f32.mrf.mxu1 }
0x1913   :  { %v8952_v14 = vpop.f32.mrf.mxu1 }
0x1914   :  { %v5121_v43 = vsel %vm847_vm11, %v8952_v14, -inf }
0x1915   :  { %5122 = vmax.xlane.f32.xlu1 %v5121_v43  ;;  %v6837_v47 = vpop.f32.mrf.mxu1 }
0x1917   :  { %v8956_v9 = vpop.f32.mrf.mxu1 }
0x1918   :  { %v5239_v49 = vsel %vm847_vm11, %v8956_v9, -inf }
0x1919   :  { %5240 = vmax.xlane.f32.xlu0 %v5239_v49  ;;  %v6848_v44 = vpop.f32.mrf.mxu1 }
0x191b   :  { %v8960_v40 = vpop.f32.mrf.mxu1 }
0x191c   :  { %v5242_v12 = vsel %vm847_vm11, %v8960_v40, -inf }
0x191d   :  { %5243 = vmax.xlane.f32.xlu1 %v5242_v12  ;;  %v6849_v38 = vpop.f32.mrf.mxu1 }
0x192e   :  { %4624 = vrot.lane.b32.xlu1 %v8843_v51, %s7419_s24 }
0x192f   :  { %4503 = vrot.lane.b32.xlu0 %v8843_v51, %s7417_s22 }
0x1972   :  { %v4361_v48 = vpop.xlane.xlu0 %4360 }
0x1973   :  { %v4365_v23 = vsub.f32 %v8900_v7, %v4361_v48 }
0x1975   :  { %v4367_v61 = vmul.f32 1.442695, %v4365_v23 }
0x1976   :  { %v4364_v22 = vpop.xlane.xlu1 %4363  ;;  %v4481_v50 = vpop.xlane.xlu0 %4480 }
0x1977   :  { %7309 = vpow2.f32 %v4367_v61  ;;  %v4366_v15 = vsub.f32 %v8906_v19, %v4364_v22  ;;  %v4485_v60 = vsub.f32 %v8902_v1, %v4481_v50 }
0x1979   :  { %v4369_v4 = vmul.f32 1.442695, %v4366_v15  ;;  %v4487_v54 = vmul.f32 1.442695, %v4485_v60 }
0x197a   :  { %v4484_v32 = vpop.xlane.xlu0 %4483 }
0x197b   :  { %7311 = vpow2.f32 %v4369_v4  ;;  %v4486_v36 = vsub.f32 %v8908_v11, %v4484_v32 }
0x197c   :  { %7313 = vpow2.f32 %v4487_v54 }
0x197d   :  { %v4489_v30 = vmul.f32 1.442695, %v4486_v36 }
0x197e   :  { %v4606_v57 = vpop.xlane.xlu1 %4605  ;;  %v4603_v5 = vpop.xlane.xlu0 %4602 }
0x197f   :  { %7315 = vpow2.f32 %v4489_v30  ;;  %v4608_v7 = vsub.f32 %v8918_v28, %v4606_v57  ;;  %v4607_v39 = vsub.f32 %v8914_v2, %v4603_v5 }
0x1981   :  { %v4611_v24 = vmul.f32 1.442695, %v4608_v7  ;;  %v4609_v13 = vmul.f32 1.442695, %v4607_v39 }
0x1982   :  { %v4724_v19 = vpop.xlane.xlu0 %4723 }
0x1983   :  { %7317 = vpow2.f32 %v4611_v24  ;;  %v4728_v1 = vsub.f32 %v8924_v8, %v4724_v19 }
0x1984   :  { %v8975_v3 = vpop.eup %7309  ;;  %7319 = vpow2.f32 %v4609_v13 }
0x1985   :  { %v4730_v18 = vmul.f32 1.442695, %v4728_v1  ;;  %v4371_v11 = vsel %vm847_vm11, %v8975_v3, 0.0 }
0x1986   :  { %v4727_v33 = vpop.xlane.xlu1 %4726  ;;  %4372 = vadd.xlane.f32.xlu0 %v4371_v11 }
0x1987   :  { %7321 = vpow2.f32 %v4730_v18  ;;  %v4729_v28 = vsub.f32 %v8928_v55, %v4727_v33 }
0x1988   :  { %v8980_v0 = vpop.eup %7311 }
0x1989   :  { %v8982_v2 = vpop.eup %7313  ;;  %v4732_v29 = vmul.f32 1.442695, %v4729_v28  ;;  %v4374_v8 = vsel %vm847_vm11, %v8980_v0, 0.0 }
0x198a   :  { %4375 = vadd.xlane.f32.xlu1 %v4374_v8  ;;  %v4491_v27 = vsel %vm847_vm11, %v8982_v2, 0.0  ;;  %v4878_v62 = vpop.xlane.xlu0 %4877 }
0x198b   :  { %7323 = vpow2.f32 %v4732_v29  ;;  %4492 = vadd.xlane.f32.xlu0 %v4491_v27  ;;  %v4882_v31 = vsub.f32 %v8932_v20, %v4878_v62 }
0x198c   :  { %v8989_v6 = vpop.eup %7315 }
0x198d   :  { %v4884_v55 = vmul.f32 1.442695, %v4882_v31  ;;  %v4494_v16 = vsel %vm847_vm11, %v8989_v6, 0.0 }
0x198e   :  { %v4881_v37 = vpop.xlane.xlu1 %4880  ;;  %4495 = vadd.xlane.f32.xlu1 %v4494_v16 }
0x198f   :  { %7325 = vpow2.f32 %v4884_v55  ;;  %v4883_v45 = vsub.f32 %v8936_v63, %v4881_v37 }
0x1990   :  { %v8994_v26 = vpop.eup %7317 }
0x1991   :  { %v8996_v25 = vpop.eup %7319  ;;  %v4886_v41 = vmul.f32 1.442695, %v4883_v45  ;;  %v4616_v43 = vsel %vm847_vm11, %v8994_v26, 0.0 }
0x1992   :  { %4617 = vadd.xlane.f32.xlu1 %v4616_v43  ;;  %v4613_v20 = vsel %vm847_vm11, %v8996_v25, 0.0  ;;  %v4998_v47 = vpop.xlane.xlu0 %4997 }
0x1993   :  { %7327 = vpow2.f32 %v4886_v41  ;;  %4614 = vadd.xlane.f32.xlu0 %v4613_v20  ;;  %v5002_v49 = vsub.f32 %v8940_v35, %v4998_v47 }
0x1994   :  { %v9003_v44 = vpop.eup %7321 }
0x1995   :  { %v5004_v63 = vmul.f32 1.442695, %v5002_v49  ;;  %v4734_v12 = vsel %vm847_vm11, %v9003_v44, 0.0 }
0x1996   :  { %v5001_v38 = vpop.xlane.xlu1 %5000 }
0x1997   :  { %7329 = vpow2.f32 %v5004_v63  ;;  %v5003_v48 = vsub.f32 %v8944_v52, %v5001_v38  ;;  %4735 = vadd.xlane.f32.xlu0 %v4734_v12 }
0x1998   :  { %v9008_v23 = vpop.eup %7323 }
0x1999   :  { %v5006_v61 = vmul.f32 1.442695, %v5003_v48  ;;  %v4737_v22 = vsel %vm847_vm11, %v9008_v23, 0.0 }
0x199a   :  { %4738 = vadd.xlane.f32.xlu1 %v4737_v22  ;;  %v5120_v15 = vpop.xlane.xlu0 %5119 }
0x199b   :  { %7331 = vpow2.f32 %v5006_v61  ;;  %v5124_v28 = vsub.f32 %v8948_v46, %v5120_v15 }
0x199c   :  { %v9012_v35 = vpop.eup %7325 }
0x199d   :  { %v4888_v50 = vsel %vm847_vm11, %v9012_v35, 0.0  ;;  %v5126_v29 = vmul.f32 1.442695, %v5124_v28 }
0x199e   :  { %v5123_v60 = vpop.xlane.xlu1 %5122  ;;  %4889 = vadd.xlane.f32.xlu0 %v4888_v50 }
0x199f   :  { %v5125_v4 = vsub.f32 %v8952_v14, %v5123_v60 }
0x19a0   :  { %v9017_v52 = vpop.eup %7327 }
0x19a1   :  { %v5128_v54 = vmul.f32 1.442695, %v5125_v4  ;;  %v4891_v32 = vsel %vm847_vm11, %v9017_v52, 0.0 }
0x19a2   :  { %4892 = vadd.xlane.f32.xlu1 %v4891_v32  ;;  %v5241_v36 = vpop.xlane.xlu0 %5240 }
0x19a3   :  { %7333 = vpow2.f32 %v5128_v54  ;;  %v5245_v30 = vsub.f32 %v8956_v9, %v5241_v36 }
0x19a4   :  { %v9022_v57 = vpop.eup %7329 }
0x19a5   :  { %v5247_v5 = vmul.f32 1.442695, %v5245_v30  ;;  %v5008_v7 = vsel %vm847_vm11, %v9022_v57, 0.0 }
0x19a6   :  { %v5244_v39 = vpop.xlane.xlu1 %5243  ;;  %5009 = vadd.xlane.f32.xlu1 %v5008_v7  ;;  %v4504_v27 = vpop.permute.xlu0 %4503 }
0x19a7   :  { %7335 = vpow2.f32 %v5247_v5  ;;  %v5246_v14 = vsub.f32 %v8960_v40, %v5244_v39 }
0x19a8   :  { %v9027_v24 = vpop.eup %7331 }
0x19a9   :  { %v5249_v13 = vmul.f32 1.442695, %v5246_v14  ;;  %v5011_v19 = vsel %vm847_vm11, %v9027_v24, 0.0 }
0x19aa   :  { %5012 = vadd.xlane.f32.xlu1 %v5011_v19  ;;  %v4625_v46 = vpop.permute.xlu1 %4624 }
0x19ab   :  { %7337 = vpow2.f32 %v5249_v13 }
0x19ac   :  { %7339 = vpow2.f32 %v5126_v29 }
0x19b0   :  { %v9031_v9 = vpop.eup %7333 }
0x19b1   :  { %v5133_v1 = vsel %vm847_vm11, %v9031_v9, 0.0 }
0x19b2   :  { %5134 = vadd.xlane.f32.xlu1 %v5133_v1 }
0x19b4   :  { %v9035_v18 = vpop.eup %7335  ;;  %4745 = vrot.lane.b32.xlu0 %v8843_v51, %s7420_s2 }
0x19b5   :  { %v5251_v40 = vsel %vm847_vm11, %v9035_v18, 0.0 }
0x19b6   :  { %5252 = vadd.xlane.f32.xlu1 %v5251_v40 }
0x19b8   :  { %v9041_v11 = vpop.eup %7337 }
0x19b9   :  { %v5254_v33 = vsel %vm847_vm11, %v9041_v11, 0.0  ;;  %v9048_v8 = vpop.eup %7339 }
0x19ba   :  { %5255 = vadd.xlane.f32.xlu1 %v5254_v33  ;;  %v5130_v51 = vsel %vm847_vm11, %v9048_v8, 0.0 }
0x19cb   :  { %5020 = vrot.lane.b32.xlu1 %v8849_v58, %s7417_s22 }
0x19d3   :  { %5131 = vadd.xlane.f32.xlu0 %v5130_v51 }
0x19e9   :  { %5141 = vrot.lane.b32.xlu0 %v8849_v58, %s7419_s24 }
0x19ed   :  { %5262 = vrot.lane.b32.xlu0 %v8849_v58, %s7420_s2 }
0x1a0f   :  { %v4373_v62 = vpop.xlane.xlu0 %4372 }
0x1a10   :  { %7341 = vrcp.f32 %v4373_v62 }
0x1a13   :  { %v4376_v31 = vpop.xlane.xlu1 %4375 }
0x1a14   :  { %7343 = vrcp.f32 %v4376_v31  ;;  %v4493_v55 = vpop.xlane.xlu0 %4492 }
0x1a17   :  { %v4496_v16 = vpop.xlane.xlu1 %4495 }
0x1a18   :  { %7345 = vrcp.f32 %v4496_v16 }
0x1a19   :  { %7347 = vrcp.f32 %v4493_v55 }
0x1a1b   :  { %v4618_v37 = vpop.xlane.xlu1 %4617 }
0x1a1c   :  { %v4615_v45 = vpop.xlane.xlu0 %4614  ;;  %7349 = vrcp.f32 %v4618_v37 }
0x1a1d   :  { %v7342_v41 = vpop.eup %7341  ;;  %7351 = vrcp.f32 %v4615_v45 }
0x1a1e   :  { %v4378_v20 = vmul.f32 %v7342_v41, %v8975_v3 }
0x1a20   :  { %v4736_v48 = vpop.xlane.xlu0 %4735 }
0x1a21   :  { %v7344_v43 = vpop.eup %7343 }
0x1a22   :  { %v4380_v47 = vmul.f32 %v7344_v43, %v8980_v0 }
0x1a23   :  { %v4739_v12 = vpop.xlane.xlu1 %4738 }
0x1a24   :  { %v4381_v49 = vpack.c.bf16 %v4380_v47, %v4378_v20  ;;  %7353 = vrcp.f32 %v4739_v12 }
0x1a25   :  { %v7346_v63 = vpop.eup %7345  ;;  %7355 = vrcp.f32 %v4736_v48 }
0x1a26   :  { %6769 = vmatmul.mubr.msk.bf16.vlgmr.msra.gmra.mxu0 %vm847_vm11, %v4381_v49  ;;  %v7348_v38 = vpop.eup %7347  ;;  %v4500_v61 = vmul.f32 %v7346_v63, %v8989_v6 }
0x1a27   :  { %6779 = vmatpush3.bf16.msra.mxu0 %v4504_v27  ;;  %6780 = vmatprep.mubr.msk.bf16.mxu0 %vm7414_vm10, %v7413_v10  ;;  %v4498_v3 = vmul.f32 %v7348_v38, %v8982_v2  ;;  %v4890_v60 = vpop.xlane.xlu0 %4889 }
0x1a28   :  { %6790 = vmatprep.subr.bf16.mxu0 %v7413_v10 }
0x1a29   :  { %v7350_v22 = vpop.eup %7349  ;;  %v4501_v50 = vpack.c.bf16 %v4500_v61, %v4498_v3 }
0x1a2a   :  { %v7352_v15 = vpop.eup %7351  ;;  %v4622_v6 = vmul.f32 %v7350_v22, %v8994_v26 }
0x1a2b   :  { %v4893_v0 = vpop.xlane.xlu1 %4892  ;;  %v4620_v54 = vmul.f32 %v7352_v15, %v8996_v25  ;;  %v4746_v30 = vpop.permute.xlu0 %4745 }
0x1a2c   :  { %7357 = vrcp.f32 %v4893_v0 }
0x1a2d   :  { %7359 = vrcp.f32 %v4890_v60  ;;  %v4623_v2 = vpack.c.bf16 %v4622_v6, %v4620_v54 }
0x1a2e   :  { %6781 = vmatmul.mubr.msk.bf16.vlgmr.msra.gmra.mxu0 %vm847_vm11, %v4501_v50 }
0x1a2f   :  { %6791 = vmatpush3.bf16.msra.mxu0 %v4625_v46  ;;  %v5010_v4 = vpop.xlane.xlu1 %5009  ;;  %6792 = vmatprep.mubr.msk.bf16.mxu0 %vm7414_vm10, %v7413_v10 }
0x1a30   :  { %6802 = vmatprep.subr.bf16.mxu0 %v7413_v10 }
0x1a31   :  { %v7354_v32 = vpop.eup %7353 }
0x1a32   :  { %v7356_v5 = vpop.eup %7355  ;;  %v4743_v7 = vmul.f32 %v7354_v32, %v9008_v23 }
0x1a33   :  { %v5013_v36 = vpop.xlane.xlu1 %5012  ;;  %v4741_v26 = vmul.f32 %v7356_v5, %v9003_v44 }
0x1a34   :  { %7361 = vrcp.f32 %v5013_v36 }
0x1a35   :  { %7363 = vrcp.f32 %v5010_v4  ;;  %v4744_v39 = vpack.c.bf16 %v4743_v7, %v4741_v26 }
0x1a36   :  { %6793 = vmatmul.mubr.msk.bf16.vlgmr.msra.gmra.mxu0 %vm847_vm11, %v4623_v2  ;;  %v7093_v2 = vld [vmem:[%s9308_s10 + $0x58] sm:$0xff]  }
0x1a37   :  { %6803 = vmatpush3.bf16.msra.mxu0 %v4746_v30  ;;  %6804 = vmatprep.mubr.msk.bf16.mxu0 %vm7414_vm10, %v7413_v10 }
0x1a38   :  { %6814 = vmatprep.subr.bf16.mxu0 %v7413_v10  ;;  %6856 = vmatprep.subr.bf16.mxu1 %v7093_v2 }
0x1a39   :  { %v7358_v14 = vpop.eup %7357  ;;  %6857 = vmatpush3.bf16.msra.mxu1 %v7093_v2 }
0x1a3a   :  { %v7360_v13 = vpop.eup %7359  ;;  %v4897_v23 = vmul.f32 %v7358_v14, %v9017_v52 }
0x1a3b   :  { %v5135_v25 = vpop.xlane.xlu1 %5134  ;;  %v4895_v1 = vmul.f32 %v7360_v13, %v9012_v35 }
0x1a3c   :  { %7365 = vrcp.f32 %v5135_v25  ;;  %v7094_v25 = vld [vmem:[%s9308_s10 + $0x50] sm:$0xff]  }
0x1a3d   :  { %v4898_v40 = vpack.c.bf16 %v4897_v23, %v4895_v1  ;;  %6858 = vmatprep.subr.bf16.mxu1 %v7094_v25  ;;  %v7096_v1 = vld [vmem:[%s9308_s10 + $0x40] sm:$0xff]  }
0x1a3e   :  { %6805 = vmatmul.mubr.msk.bf16.vlgmr.msra.gmra.mxu0 %vm847_vm11, %v4744_v39  ;;  %v7095_v39 = vld [vmem:[%s9308_s10 + $0x48] sm:$0xff]   ;;  %6859 = vmatpush3.bf16.msra.mxu1 %v7094_v25 }
0x1a3f   :  { %6815 = vmatpush3.bf16.msra.mxu0 %v8849_v58  ;;  %v5253_v19 = vpop.xlane.xlu1 %5252  ;;  %6816 = vmatprep.mubr.msk.bf16.mxu0 %vm7414_vm10, %v7413_v10 }
0x1a40   :  { %6826 = vmatprep.subr.bf16.mxu0 %v7413_v10  ;;  %6860 = vmatprep.subr.bf16.mxu1 %v7095_v39 }
0x1a41   :  { %v7362_v33 = vpop.eup %7361 }
0x1a42   :  { %v7364_v28 = vpop.eup %7363  ;;  %v5017_v58 = vmul.f32 %v7362_v33, %v9027_v24  ;;  %6861 = vmatpush3.bf16.msra.mxu1 %v7095_v39 }
0x1a43   :  { %v5256_v44 = vpop.xlane.xlu1 %5255  ;;  %v5015_v52 = vmul.f32 %v7364_v28, %v9022_v57  ;;  %6862 = vmatprep.subr.bf16.mxu1 %v7096_v1 }
0x1a45   :  { %v5018_v51 = vpack.c.bf16 %v5017_v58, %v5015_v52 }
0x1a46   :  { %6817 = vmatmul.mubr.msk.bf16.vlgmr.msra.gmra.mxu0 %vm847_vm11, %v4898_v40  ;;  %6863 = vmatpush3.bf16.msra.mxu1 %v7096_v1 }
0x1a47   :  { %v5021_v29 = vpop.permute.xlu1 %5020  ;;  %6828 = vmatprep.mubr.msk.bf16.mxu0 %vm7414_vm10, %v7413_v10 }
0x1a48   :  { %6827 = vmatpush3.bf16.msra.mxu0 %v5021_v29 }
0x1a49   :  { %6838 = vmatprep.subr.bf16.mxu0 %v7413_v10  ;;  %v7366_v24 = vpop.eup %7365 }
0x1a4a   :  { %v5139_v62 = vmul.f32 %v7366_v24, %v9031_v9 }
0x1a4e   :  { %6829 = vmatmul.mubr.msk.bf16.vlgmr.msra.gmra.mxu0 %vm847_vm11, %v5018_v51 }
0x1a4f   :  { %6840 = vmatprep.mubr.msk.bf16.mxu0 %vm7414_vm10, %v7413_v10 }
0x1a5c   :  { %v5132_v35 = vpop.xlane.xlu0 %5131 }
0x1a5d   :  { %7367 = vrcp.f32 %v5132_v35 }
0x1a5e   :  { %7369 = vrcp.f32 %v5256_v44 }
0x1a5f   :  { %7371 = vrcp.f32 %v5253_v19 }
0x1a60   :  { %v5142_v27 = vpop.permute.xlu0 %5141 }
0x1a61   :  { %6839 = vmatpush3.bf16.msra.mxu0 %v5142_v27 }
0x1a62   :  { %6850 = vmatprep.subr.bf16.mxu0 %v7413_v10 }
0x1a64   :  { %v5263_v16 = vpop.permute.xlu0 %5262 }
0x1a6a   :  { %v7368_v46 = vpop.eup %7367 }
0x1a6b   :  { %v5137_v57 = vmul.f32 %v7368_v46, %v9048_v8  ;;  %v7370_v55 = vpop.eup %7369 }
0x1a6c   :  { %v7372_v37 = vpop.eup %7371  ;;  %v5260_v45 = vmul.f32 %v7370_v55, %v9041_v11 }
0x1a6d   :  { %v5140_v31 = vpack.c.bf16 %v5139_v62, %v5137_v57  ;;  %v5258_v41 = vmul.f32 %v7372_v37, %v9035_v18 }
0x1a6f   :  { %6841 = vmatmul.mubr.msk.bf16.vlgmr.msra.gmra.mxu0 %vm847_vm11, %v5140_v31  ;;  %v5261_v43 = vpack.c.bf16 %v5260_v45, %v5258_v41 }
0x1a70   :  { %6851 = vmatpush3.bf16.msra.mxu0 %v5263_v16  ;;  %6852 = vmatprep.mubr.msk.bf16.mxu0 %vm7414_vm10, %v7413_v10 }
0x1a77   :  { %6853 = vmatmul.mubr.msk.bf16.vlgmr.msra.gmra.mxu0 %vm847_vm11, %v5261_v43 }
0x1a78   :  { %5619 = vmatprep.mubr.bf16.mxu0 %v7412_v56 }
0x1ae6   :  { %v9102_v9 = vpop.f32.mrf.mxu0 }
0x1ae8   :  { %v6770_v8 = vpop.f32.mrf.mxu0 }
0x1aea   :  { %v4423_v20 = vpop.f32.mrf.mxu0 }
0x1aec   :  { %v6771_v47 = vpop.f32.mrf.mxu0 }
0x1aee   :  { %v4543_v49 = vpop.f32.mrf.mxu0 }
0x1af0   :  { %v6782_v63 = vpop.f32.mrf.mxu0 }
0x1af2   :  { %v4546_v12 = vpop.f32.mrf.mxu0 }
0x1af3   :  { %v6941_v38 = vpack.i.bf16 %v4546_v12, %v4543_v49 }
0x1af4   :  { %v6783_v48 = vpop.f32.mrf.mxu0 }
0x1af5   :  { %6942 = vrot.lane.b32.xlu0 %v6941_v38, %s7418_s23 }
0x1af6   :  { %v4664_v10 = vpop.f32.mrf.mxu0 }
0x1af8   :  { %v6794_v11 = vpop.f32.mrf.mxu0 }
0x1afa   :  { %v4667_v18 = vpop.f32.mrf.mxu0 }
0x1afb   :  { %v6946_v61 = vpack.i.bf16 %v4667_v18, %v4664_v10 }
0x1afc   :  { %v6795_v3 = vpop.f32.mrf.mxu0 }
0x1afd   :  { %6947 = vrot.lane.b32.xlu1 %v6946_v61, %s7416_s6 }
0x1afe   :  { %v4785_v0 = vpop.f32.mrf.mxu0 }
0x1b00   :  { %v6806_v22 = vpop.f32.mrf.mxu0 }
0x1b02   :  { %v4788_v50 = vpop.f32.mrf.mxu0 }
0x1b03   :  { %v6951_v15 = vpack.i.bf16 %v4788_v50, %v4785_v0 }
0x1b04   :  { %v6807_v60 = vpop.f32.mrf.mxu0 }
0x1b05   :  { %6952 = vrot.lane.b32.xlu1 %v6951_v15, %s7415_s1  ;;  %v6204_v60 = vld [vmem:[%s9309_s11 + $0x2] ss:$0 sm:$0xff] }
0x1b06   :  { %v4937_v4 = vpop.f32.mrf.mxu0 }
0x1b08   :  { %v6818_v6 = vpop.f32.mrf.mxu0 }
0x1b0a   :  { %v4940_v54 = vpop.f32.mrf.mxu0 }
0x1b0c   :  { %v6819_v32 = vpop.f32.mrf.mxu0 }
0x1b0e   :  { %v5060_v36 = vpop.f32.mrf.mxu0 }
0x1b10   :  { %v6830_v30 = vpop.f32.mrf.mxu0 }
0x1b12   :  { %v5063_v5 = vpop.f32.mrf.mxu0 }
0x1b13   :  { %v6956_v7 = vpack.i.bf16 %v5063_v5, %v5060_v36 }
0x1b14   :  { %v6831_v26 = vpop.f32.mrf.mxu0 }
0x1b15   :  { %6957 = vrot.lane.b32.xlu0 %v6956_v7, %s7418_s23 }
0x1b2f   :  { %v5181_v14 = vpop.f32.mrf.mxu0 }
0x1b31   :  { %v6842_v13 = vpop.f32.mrf.mxu0 }
0x1b33   :  { %v5184_v19 = vpop.f32.mrf.mxu0 }
0x1b34   :  { %v6961_v23 = vpack.i.bf16 %v5184_v19, %v5181_v14 }
0x1b35   :  { %v6843_v44 = vpop.f32.mrf.mxu0 }
0x1b36   :  { %6962 = vrot.lane.b32.xlu0 %v6961_v23, %s7416_s6 }
0x1b37   :  { %v5302_v40 = vpop.f32.mrf.mxu0 }
0x1b39   :  { %v6854_v33 = vpop.f32.mrf.mxu0 }
0x1b3b   :  { %v5305_v28 = vpop.f32.mrf.mxu0 }
0x1b3c   :  { %v6966_v29 = vpack.i.bf16 %v5305_v28, %v5302_v40 }
0x1b3d   :  { %v6855_v58 = vpop.f32.mrf.mxu0 }
0x1b3e   :  { %6967 = vrot.lane.b32.xlu1 %v6966_v29, %s7415_s1 }
0x1b67   :  { %v6943_v52 = vpop.permute.xlu0 %6942 }
0x1b68   :  { %v6945_v35 = vunpack.i.h.bf16 %v6943_v52  ;;  %v6944_v27 = vunpack.i.l.bf16 %v6943_v52 }
0x1b6a   :  { %v4817_v57 = vsel %vm847_vm11, %v4423_v20, %v6945_v35  ;;  %v4816_v31 = vsel %vm847_vm11, %v9102_v9, %v6944_v27 }
0x1b6f   :  { %v6948_v51 = vpop.permute.xlu1 %6947 }
0x1b70   :  { %v6950_v24 = vunpack.i.h.bf16 %v6948_v51  ;;  %v6949_v46 = vunpack.i.l.bf16 %v6948_v51 }
0x1b72   :  { %v4818_v37 = vsel %vm73_vm0, %v4816_v31, %v6949_v46  ;;  %v4819_v45 = vsel %vm73_vm0, %v4817_v57, %v6950_v24  ;;  %v7099_v31 = vld [vmem:[%s9312_s14 + $0xb4] ss:$8 sps:$4 sm:$0xff]  }
0x1b73   :  { %5595 = vmatprep.subr.bf16.mxu0 %v7099_v31 }
0x1b77   :  { %v6953_v62 = vpop.permute.xlu1 %6952 }
0x1b78   :  { %v6955_v55 = vunpack.i.h.bf16 %v6953_v62  ;;  %v6954_v16 = vunpack.i.l.bf16 %v6953_v62 }
0x1b7a   :  { %v4820_v41 = vsel %vm1356_vm12, %v4818_v37, %v6954_v16  ;;  %v4821_v43 = vsel %vm1356_vm12, %v4819_v45, %v6955_v55  ;;  %v7097_v55 = vld [vmem:[%s9312_s14 + $0xb0] ss:$8 sps:$4 sm:$0xff]   ;;  %v7102_v16 = vld [vmem:[%s9312_s14 + $0xa4] ss:$8 sps:$4 sm:$0xff]   ;;  %v7100_v37 = vld [vmem:[%s9312_s14 + $0xa0] ss:$8 sps:$4 sm:$0xff]  }
0x1b7b   :  { %v5339_v8 = vpack.c.bf16 %v4821_v43, %v4820_v41  ;;  %5596 = vmatpush1.bf16.msra.mxu0 %v7097_v55  ;;  %v7105_v45 = vld [vmem:[%s9312_s14 + $0x94] ss:$8 sps:$4 sm:$0xff]   ;;  %v7103_v41 = vld [vmem:[%s9312_s14 + $0x90] ss:$8 sps:$4 sm:$0xff]   ;;  %v7108_v43 = vld [vmem:[%s9312_s14 + $0x84] ss:$8 sps:$4 sm:$0xff]  }
0x1b7c   :  { %5597 = vmatprep.subr.bf16.mxu0 %v7102_v16 }
0x1b7d   :  { %6864 = vmatprep.mubr.msk.bf16.mxu1 %vm297_vm4, %v5339_v8  ;;  %v7106_v8 = vld [vmem:[%s9312_s14 + $0x80] ss:$8 sps:$4 sm:$0xff]  }
0x1b7f   :  { %5598 = vmatpush1.bf16.msra.mxu0 %v7100_v37 }
0x1b80   :  { %5599 = vmatprep.subr.bf16.mxu0 %v7105_v45 }
0x1b83   :  { %5600 = vmatpush1.bf16.msra.mxu0 %v7103_v41 }
0x1b84   :  { %5601 = vmatprep.subr.bf16.mxu0 %v7108_v43 }
0x1b87   :  { %v6958_v47 = vpop.permute.xlu0 %6957  ;;  %5602 = vmatpush1.bf16.msra.mxu0 %v7106_v8 }
0x1b88   :  { %v6960_v63 = vunpack.i.h.bf16 %v6958_v47  ;;  %v6959_v20 = vunpack.i.l.bf16 %v6958_v47  ;;  %v7109_v47 = vld [vmem:[%s9314_s16 + $0x178] sm:$0xff]  }
0x1b89   :  { %6496 = vmatprep.subr.bf16.mxu1 %v7109_v47 }
0x1b8a   :  { %v5334_v48 = vsel %vm847_vm11, %v4940_v54, %v6960_v63  ;;  %v5333_v10 = vsel %vm847_vm11, %v4937_v4, %v6959_v20  ;;  %v7111_v63 = vld [vmem:[%s9314_s16 + $0x170] sm:$0xff]  }
0x1b8b   :  { %v7112_v20 = vld [vmem:[%s9314_s16 + $0x130] sm:$0xff]  }
0x1ba8   :  { %v6963_v49 = vpop.permute.xlu0 %6962 }
0x1ba9   :  { %v6965_v12 = vunpack.i.h.bf16 %v6963_v49  ;;  %v6964_v38 = vunpack.i.l.bf16 %v6963_v49  ;;  %v7110_v49 = vld [vmem:[%s9314_s16 + $0x138] sm:$0xff]  }
0x1bab   :  { %v5335_v61 = vsel %vm73_vm0, %v5333_v10, %v6964_v38  ;;  %v5336_v3 = vsel %vm73_vm0, %v5334_v48, %v6965_v12  ;;  %v7113_v12 = vld [vmem:[%s9314_s16 + $0x168] sm:$0xff]   ;;  %v7116_v48 = vld [vmem:[%s9314_s16 + $0x120] sm:$0xff]   ;;  %v7117_v10 = vld [vmem:[%s9314_s16 + $0x158] sm:$0xff]  }
0x1bac   :  { %v7114_v38 = vld [vmem:[%s9314_s16 + $0x128] sm:$0xff]  }
0x1bb0   :  { %v6968_v9 = vpop.permute.xlu1 %6967 }
0x1bb1   :  { %v6970_v11 = vunpack.i.h.bf16 %v6968_v9  ;;  %v6969_v18 = vunpack.i.l.bf16 %v6968_v9  ;;  %v7115_v9 = vld [vmem:[%s9314_s16 + $0x160] sm:$0xff]  }
0x1bb3   :  { %v5337_v0 = vsel %vm1356_vm12, %v5335_v61, %v6969_v18  ;;  %v5338_v22 = vsel %vm1356_vm12, %v5336_v3, %v6970_v11  ;;  %v7118_v11 = vld [vmem:[%s9314_s16 + $0x118] sm:$0xff]  }
0x1bb4   :  { %v5340_v50 = vpack.c.bf16 %v5338_v22, %v5337_v0 }
0x1bb6   :  { %6865 = vmatmul.mubr.msk.bf16.vlgmr.msra.gmra.mxu1 %vm297_vm4, %v5340_v50 }
0x1bb7   :  { %6497 = vmatpush3.bf16.msra.mxu1 %v7110_v49 }
0x1bb8   :  { %6498 = vmatprep.subr.bf16.mxu1 %v7111_v63 }
0x1bbb   :  { %6499 = vmatpush3.bf16.msra.mxu1 %v7112_v20 }
0x1bbc   :  { %6500 = vmatprep.subr.bf16.mxu1 %v7113_v12 }
0x1bbf   :  { %6501 = vmatpush3.bf16.msra.mxu1 %v7114_v38 }
0x1bc0   :  { %6502 = vmatprep.subr.bf16.mxu1 %v7115_v9 }
0x1bc3   :  { %6503 = vmatpush3.bf16.msra.mxu1 %v7116_v48 }
0x1bc4   :  { %6504 = vmatprep.subr.bf16.mxu1 %v7117_v10 }
0x1bc7   :  { %6505 = vmatpush3.bf16.msra.mxu1 %v7118_v11 }
0x1c76   :  { %v6866_v15 = vpop.f32.mrf.mxu1 }
0x1c77   :  { %v5431_v4 = vadd.f32 %v6866_v15, %v6204_v60 }
0x1c78   :  { %v5422_v6 = vpop.f32.mrf.mxu1 }
0x1c79   :  { %v5423_v54 = vadd.f32 %v6204_v60, %v5422_v6  ;;  %v5439_v30 = vadd.f32 %v5431_v4, %v8829_v21 }
0x1c7a   :  { %v6867_v2 = vpop.f32.mrf.mxu1 }
0x1c7b   :  { %v5437_v32 = vadd.f32 %v5423_v54, %v8821_v53  ;;  %v5434_v5 = vadd.f32 %v6867_v2, %v6204_v60  ;;  %v5451_v13 = vsel %vm297_vm4, %v5439_v30, 0.0 }
0x1c7c   :  { %v5425_v36 = vpop.f32.mrf.mxu1 }
0x1c7d   :  { %v5426_v7 = vadd.f32 %v6204_v60, %v5425_v36  ;;  %v5445_v26 = vsel %vm297_vm4, %v5437_v32, 0.0  ;;  %v5440_v39 = vadd.f32 %v5434_v5, %v8831_v59 }
0x1c7e   :  { %5446 = vadd.xlane.f32.xlu0 %v5445_v26 }
0x1c7f   :  { %v5438_v25 = vadd.f32 %v5426_v7, %v8823_v42  ;;  %v5454_v53 = vsel %vm297_vm4, %v5440_v39, 0.0 }
0x1c81   :  { %v5448_v14 = vsel %vm297_vm4, %v5438_v25, 0.0 }
0x1c82   :  { %5449 = vadd.xlane.f32.xlu1 %v5448_v14  ;;  %5452 = vadd.xlane.f32.xlu0 %v5451_v13 }
0x1c86   :  { %5455 = vadd.xlane.f32.xlu0 %v5454_v53 }
0x1d07   :  { %v5447_v19 = vpop.xlane.xlu0 %5446 }
0x1d08   :  { %v5457_v21 = vmul.f32 0.015625, %v5447_v19 }
0x1d0a   :  { %v9148_v23 = vsub.f32 %v5437_v32, %v5457_v21 }
0x1d0b   :  { %v5450_v1 = vpop.xlane.xlu1 %5449  ;;  %v5453_v44 = vpop.xlane.xlu0 %5452 }
0x1d0c   :  { %v5458_v40 = vmul.f32 0.015625, %v5450_v1  ;;  %v5459_v33 = vmul.f32 0.015625, %v5453_v44  ;;  %v5465_v42 = vmul.f32 %v9148_v23, %v9148_v23 }
0x1d0e   :  { %v9152_v59 = vsub.f32 %v5438_v25, %v5458_v40  ;;  %v9154_v28 = vsub.f32 %v5439_v30, %v5459_v33  ;;  %v5469_v29 = vsel %vm297_vm4, %v5465_v42, 0.0  ;;  %v6213_v30 = vld [vmem:[%s9310_s12 + $0x2] ss:$0 sm:$0xff] }
0x1d0f   :  { %5470 = vadd.xlane.f32.xlu0 %v5469_v29  ;;  %v5456_v58 = vpop.xlane.xlu0 %5455  ;;  %v7120_v29 = vld [vmem:[%s9314_s16 + $0x110] sm:$0xff]  }
0x1d10   :  { %v5460_v52 = vmul.f32 0.015625, %v5456_v58  ;;  %v5466_v51 = vmul.f32 %v9152_v59, %v9152_v59  ;;  %v5467_v35 = vmul.f32 %v9154_v28, %v9154_v28  ;;  %v7122_v58 = vld [vmem:[%s9314_s16 + $0x108] sm:$0xff]  }
0x1d12   :  { %v9161_v27 = vsub.f32 %v5440_v39, %v5460_v52  ;;  %v5472_v24 = vsel %vm297_vm4, %v5466_v51, 0.0  ;;  %v5475_v46 = vsel %vm297_vm4, %v5467_v35, 0.0  ;;  %v6214_v39 = vld [vmem:[%s9311_s13 + $0x2] ss:$0 sm:$0xff]  ;;  %v6223_v35 = vld [vmem:[%s9313_s15 + $0x4] sm:$0x3] }
0x1d13   :  { %5473 = vadd.xlane.f32.xlu1 %v5472_v24  ;;  %5476 = vadd.xlane.f32.xlu0 %v5475_v46  ;;  %v7123_v52 = vld [vmem:[%s9314_s16 + $0x140] sm:$0xff]   ;;  %v5538_v24 = vrot.slane %v6223_v35, %v7839_v17  ;;  %v5534_v46 = vrot.slane %v6223_v35, %v7826_v34 }
0x1d14   :  { %v5468_v62 = vmul.f32 %v9161_v27, %v9161_v27  ;;  %v7124_v51 = vld [vmem:[%s9314_s16 + $0x100] sm:$0xff]  }
0x1d16   :  { %v5478_v57 = vsel %vm297_vm4, %v5468_v62, 0.0 }
0x1d17   :  { %5479 = vadd.xlane.f32.xlu1 %v5478_v57 }
0x1d98   :  { %v5471_v18 = vpop.xlane.xlu0 %5470 }
0x1d99   :  { %v5481_v61 = vmul.f32 0.015625, %v5471_v18 }
0x1d9b   :  { %v5485_v3 = vadd.f32 1e-05, %v5481_v61 }
0x1d9c   :  { %v5474_v0 = vpop.xlane.xlu1 %5473  ;;  %v5477_v22 = vpop.xlane.xlu0 %5476 }
0x1d9d   :  { %7373 = vrsqrt.f32 %v5485_v3  ;;  %v5482_v50 = vmul.f32 0.015625, %v5474_v0  ;;  %v5483_v15 = vmul.f32 0.015625, %v5477_v22 }
0x1d9f   :  { %v5486_v60 = vadd.f32 1e-05, %v5482_v50  ;;  %v5487_v6 = vadd.f32 1e-05, %v5483_v15  ;;  %v6267_v15 = vld [vmem:[%s9315_s17 + $0x2] ss:$0 sm:$0xff] }
0x1da0   :  { %v5480_v4 = vpop.xlane.xlu1 %5479 }
0x1da1   :  { %7375 = vrsqrt.f32 %v5486_v60  ;;  %v5484_v54 = vmul.f32 0.015625, %v5480_v4 }
0x1da2   :  { %7377 = vrsqrt.f32 %v5487_v6 }
0x1da3   :  { %v5488_v2 = vadd.f32 1e-05, %v5484_v54 }
0x1da5   :  { %7379 = vrsqrt.f32 %v5488_v2 }
0x1daa   :  { %v7374_v32 = vpop.eup %7373 }
0x1dab   :  { %v5493_v36 = vmul.f32 %v7374_v32, %v9148_v23 }
0x1dad   :  { %v5503_v7 = vmul.f32 %v6213_v30, %v5493_v36 }
0x1dae   :  { %v7376_v5 = vpop.eup %7375 }
0x1daf   :  { %v5494_v26 = vmul.f32 %v7376_v5, %v9152_v59  ;;  %v7378_v25 = vpop.eup %7377  ;;  %v9232_v21 = vadd.f32 %v6214_v39, %v5503_v7 }
0x1db0   :  { %v5495_v53 = vmul.f32 %v7378_v25, %v9154_v28  ;;  %v7119_v28 = vld [vmem:[%s9314_s16 + $0x150] sm:$0xff]  }
0x1db1   :  { %v5504_v14 = vmul.f32 %v6213_v30, %v5494_v26  ;;  %6506 = vmatprep.subr.bf16.mxu1 %v7119_v28 }
0x1db2   :  { %v7380_v13 = vpop.eup %7379  ;;  %v5505_v40 = vmul.f32 %v6213_v30, %v5495_v53  ;;  %6507 = vmatpush3.bf16.msra.mxu1 %v7120_v29 }
0x1db3   :  { %v5496_v19 = vmul.f32 %v7380_v13, %v9161_v27  ;;  %v9234_v23 = vadd.f32 %v6214_v39, %v5504_v14 }
0x1db4   :  { %v9242_v42 = vadd.f32 %v6214_v39, %v5505_v40 }
0x1db5   :  { %v5517_v1 = vpack.c.bf16 %v9234_v23, %v9232_v21  ;;  %v5506_v44 = vmul.f32 %v6213_v30, %v5496_v19 }
0x1db7   :  { %6232 = vmatmul.mubr.msk.bf16.vlgmr.msra.gmra.mxu0 %vm297_vm4, %v5517_v1  ;;  %v9240_v33 = vadd.f32 %v6214_v39, %v5506_v44 }
0x1db8   :  { %5629 = vmatprep.mubr.bf16.mxu0 %v7412_v56  ;;  %v7121_v56 = vld [vmem:[%s9314_s16 + $0x148] sm:$0xff]  }
0x1db9   :  { %v5518_v59 = vpack.c.bf16 %v9240_v33, %v9242_v42  ;;  %6508 = vmatprep.subr.bf16.mxu1 %v7121_v56 }
0x1dba   :  { %6509 = vmatpush3.bf16.msra.mxu1 %v7122_v58 }
0x1dbb   :  { %6510 = vmatprep.subr.bf16.mxu1 %v7123_v52 }
0x1dbe   :  { %6511 = vmatpush3.bf16.msra.mxu1 %v7124_v51 }
0x1dbf   :  { %6233 = vmatmul.mubr.msk.bf16.gmra.mxu0 %vm297_vm4, %v5518_v59 }
0x1e77   :  { %v5621_v27 = vpop.f32.mrf.mxu0 }
0x1e78   :  { %v5622_v16 = vadd.f32 %v5621_v27, %v5534_v46 }
0x1e79   :  { %v5623_v62 = vpop.f32.mrf.mxu0 }
0x1e7a   :  { %v5624_v31 = vadd.f32 %v5623_v62, %v5538_v24  ;;  %v5640_v49 = vmax.f32 %v5622_v16, 0.0 }
0x1e7b   :  { %v5625_v57 = vpop.f32.mrf.mxu0 }
0x1e7c   :  { %v5626_v55 = vadd.f32 %v5625_v57, %v5534_v46  ;;  %v5641_v8 = vmax.f32 %v5624_v31, 0.0 }
0x1e7d   :  { %v5627_v37 = vpop.f32.mrf.mxu0 }
0x1e7e   :  { %v5628_v45 = vadd.f32 %v5627_v37, %v5538_v24  ;;  %v5642_v41 = vmax.f32 %v5626_v55, 0.0 }
0x1e7f   :  { %v5631_v43 = vpop.f32.mrf.mxu0 }
0x1e80   :  { %v5643_v47 = vmax.f32 %v5628_v45, 0.0  ;;  %v5648_v12 = vpack.c.bf16 %v5642_v41, %v5640_v49  ;;  %v5632_v34 = vadd.f32 %v5631_v43, %v5534_v46 }
0x1e81   :  { %v5633_v63 = vpop.f32.mrf.mxu0 }
0x1e82   :  { %v5649_v20 = vpack.c.bf16 %v5643_v47, %v5641_v8  ;;  %v5634_v9 = vadd.f32 %v5633_v63, %v5538_v24  ;;  %v5644_v3 = vmax.f32 %v5632_v34, 0.0 }
0x1e83   :  { %v5635_v38 = vpop.f32.mrf.mxu0 }
0x1e84   :  { %v5636_v17 = vadd.f32 %v5635_v38, %v5534_v46  ;;  %5821 = vmatprep.mubr.bf16.mxu1 %v5649_v20  ;;  %v5645_v18 = vmax.f32 %v5634_v9, 0.0 }
0x1e85   :  { %v5637_v48 = vpop.f32.mrf.mxu0  ;;  %5822 = vmatmul.mubr.bf16.vlgmr.msra.gmra.mxu1 %v5648_v12 }
0x1e86   :  { %v5638_v10 = vadd.f32 %v5637_v48, %v5538_v24  ;;  %v5646_v11 = vmax.f32 %v5636_v17, 0.0 }
0x1e88   :  { %v5647_v61 = vmax.f32 %v5638_v10, 0.0  ;;  %v5650_v22 = vpack.c.bf16 %v5646_v11, %v5644_v3  ;;  %v6286_v11 = vld [vmem:[%s9316_s18 + $0x2] ss:$0 sm:$0xff]  ;;  %s7421_s18 = smov [#allocation2]  }
0x1e89   :  { %s5927_s30 = sshll.u32 %s7421_s18, 4  ;;  %s5928_s30 = int_to_ptr.vmem [resolvable:$true] %s5927_s30 }
0x1e8a   :  { %v5651_v0 = vpack.c.bf16 %v5647_v61, %v5645_v18  ;;  %v6287_v61 = vld [vmem:[%s9317_s19 + $0x2] ss:$0 sm:$0xff]  ;;  %s7389_s19 = scalar_lea.vmem %s5928_s30, 512  ;;  %p7394_p1 = scmp.lt.s32.totalorder %s5928_s30, %s5928_s30 }
0x1e8b   :  { %p7390_p0 = scmp.ne.s32.totalorder %s5928_s30, %s7389_s19  ;;  %p7395_p2 = scmp.lt.s32.totalorder %s7389_s19, %s7389_s19 }
0x1e8c   :  { %5829 = vmatprep.mubr.bf16.mxu1 %v5651_v0 }
0x1e8d   :  { %5830 = vmatmul.mubr.bf16.gmra.mxu1 %v5650_v22  ;;  %p7396_p3 = por %p7395_p2, %p7394_p1 }
0x1e8f   :  { %p7397_p4 = pnand %p7396_p3, %p7390_p0 }
0x1f45   :  { %v6512_v50 = vpop.f32.mrf.mxu1 }
0x1f47   :  { %v6513_v60 = vpop.f32.mrf.mxu1 }
0x1f48   :  { %v6514_v6 = vadd.f32 %v6513_v60, %v6512_v50 }
0x1f49   :  { %v6515_v4 = vpop.f32.mrf.mxu1 }
0x1f4a   :  { %v5824_v54 = vadd.f32 %v6514_v6, %v6267_v15 }
0x1f4b   :  { %v6516_v2 = vpop.f32.mrf.mxu1 }
0x1f4c   :  { %v6517_v32 = vadd.f32 %v6516_v2, %v6515_v4  ;;  %v5838_v36 = vadd.f32 %v5824_v54, %v9232_v21 }
0x1f4d   :  { %v6518_v30 = vpop.f32.mrf.mxu1 }
0x1f4e   :  { %v5827_v5 = vadd.f32 %v6517_v32, %v6267_v15  ;;  %v5846_v7 = vsel %vm297_vm4, %v5838_v36, 0.0 }
0x1f4f   :  { %5847 = vadd.xlane.f32.xlu0 %v5846_v7  ;;  %v6519_v26 = vpop.f32.mrf.mxu1 }
0x1f50   :  { %v6520_v25 = vadd.f32 %v6519_v26, %v6518_v30  ;;  %v5839_v39 = vadd.f32 %v5827_v5, %v9234_v23 }
0x1f51   :  { %v6521_v14 = vpop.f32.mrf.mxu1 }
0x1f52   :  { %v5832_v13 = vadd.f32 %v6520_v25, %v6267_v15  ;;  %v5849_v53 = vsel %vm297_vm4, %v5839_v39, 0.0 }
0x1f53   :  { %5850 = vadd.xlane.f32.xlu1 %v5849_v53  ;;  %v6522_v19 = vpop.f32.mrf.mxu1 }
0x1f54   :  { %v6523_v1 = vadd.f32 %v6522_v19, %v6521_v14  ;;  %v5840_v44 = vadd.f32 %v5832_v13, %v9242_v42 }
0x1f56   :  { %v5835_v40 = vadd.f32 %v6523_v1, %v6267_v15  ;;  %v5852_v21 = vsel %vm297_vm4, %v5840_v44, 0.0 }
0x1f57   :  { %5853 = vadd.xlane.f32.xlu0 %v5852_v21 }
0x1f58   :  { %v5841_v59 = vadd.f32 %v5835_v40, %v9240_v33 }
0x1f5a   :  { %v5855_v28 = vsel %vm297_vm4, %v5841_v59, 0.0 }
0x1f5b   :  { %5856 = vadd.xlane.f32.xlu1 %v5855_v28 }
0x1fd8   :  { %v5848_v29 = vpop.xlane.xlu0 %5847 }
0x1fd9   :  { %v5858_v23 = vmul.f32 0.015625, %v5848_v29 }
0x1fdb   :  { %v5862_v56 = vsub.f32 %v5838_v36, %v5858_v23 }
0x1fdc   :  { %v5851_v58 = vpop.xlane.xlu1 %5850 }
0x1fdd   :  { %v5859_v52 = vmul.f32 0.015625, %v5851_v58  ;;  %v5866_v51 = vmul.f32 %v5862_v56, %v5862_v56 }
0x1fdf   :  { %v5863_v35 = vsub.f32 %v5839_v39, %v5859_v52  ;;  %v5870_v27 = vsel %vm297_vm4, %v5866_v51, 0.0 }
0x1fe0   :  { %5871 = vadd.xlane.f32.xlu0 %v5870_v27  ;;  %v5854_v42 = vpop.xlane.xlu0 %5853 }
0x1fe1   :  { %v5860_v24 = vmul.f32 0.015625, %v5854_v42  ;;  %v5867_v46 = vmul.f32 %v5863_v35, %v5863_v35 }
0x1fe3   :  { %v5864_v62 = vsub.f32 %v5840_v44, %v5860_v24  ;;  %v5873_v57 = vsel %vm297_vm4, %v5867_v46, 0.0 }
0x1fe4   :  { %5874 = vadd.xlane.f32.xlu1 %v5873_v57  ;;  %v5857_v33 = vpop.xlane.xlu1 %5856 }
0x1fe5   :  { %v5861_v31 = vmul.f32 0.015625, %v5857_v33  ;;  %v5868_v55 = vmul.f32 %v5864_v62, %v5864_v62 }
0x1fe7   :  { %v5865_v16 = vsub.f32 %v5841_v59, %v5861_v31  ;;  %v5876_v37 = vsel %vm297_vm4, %v5868_v55, 0.0 }
0x1fe8   :  { %5877 = vadd.xlane.f32.xlu0 %v5876_v37 }
0x1fe9   :  { %v5869_v45 = vmul.f32 %v5865_v16, %v5865_v16 }
0x1feb   :  { %v5879_v41 = vsel %vm297_vm4, %v5869_v45, 0.0 }
0x1fec   :  { %5880 = vadd.xlane.f32.xlu1 %v5879_v41 }
0x2069   :  { %v5872_v43 = vpop.xlane.xlu0 %5871 }
0x206a   :  { %v5882_v8 = vmul.f32 0.015625, %v5872_v43 }
0x206c   :  { %v5886_v47 = vadd.f32 1e-05, %v5882_v8 }
0x206d   :  { %v5875_v49 = vpop.xlane.xlu1 %5874 }
0x206e   :  { %7381 = vrsqrt.f32 %v5886_v47  ;;  %v5883_v63 = vmul.f32 0.015625, %v5875_v49 }
0x2070   :  { %v5887_v20 = vadd.f32 1e-05, %v5883_v63 }
0x2071   :  { %v5878_v12 = vpop.xlane.xlu0 %5877 }
0x2072   :  { %7383 = vrsqrt.f32 %v5887_v20  ;;  %v5884_v38 = vmul.f32 0.015625, %v5878_v12 }
0x2074   :  { %v5888_v9 = vadd.f32 1e-05, %v5884_v38 }
0x2075   :  { %v5881_v17 = vpop.xlane.xlu1 %5880 }
0x2076   :  { %7385 = vrsqrt.f32 %v5888_v9  ;;  %v5885_v34 = vmul.f32 0.015625, %v5881_v17 }
0x2078   :  { %v5889_v48 = vadd.f32 1e-05, %v5885_v34 }
0x207a   :  { %7387 = vrsqrt.f32 %v5889_v48 }
0x207b   :  { %v7382_v10 = vpop.eup %7381 }
0x207c   :  { %v5894_v18 = vmul.f32 %v7382_v10, %v5862_v56 }
0x207e   :  { %v5904_v3 = vmul.f32 %v6286_v11, %v5894_v18 }
0x207f   :  { %v7384_v0 = vpop.eup %7383 }
0x2080   :  { %v5895_v22 = vmul.f32 %v7384_v0, %v5863_v35  ;;  %v5914_v50 = vadd.f32 %v6287_v61, %v5904_v3 }
0x2082   :  { %v5905_v15 = vmul.f32 %v6286_v11, %v5895_v22  ;;  %5918 = vst.msk [vmem:[#allocation2] sm:$0xff] %vm297_vm4, %v5914_v50 }
0x2083   :  { %v7386_v60 = vpop.eup %7385 }
0x2084   :  { %v5896_v6 = vmul.f32 %v7386_v60, %v5864_v62  ;;  %v5915_v4 = vadd.f32 %v6287_v61, %v5905_v15 }
0x2086   :  { %v5906_v54 = vmul.f32 %v6286_v11, %v5896_v6  ;;  %5919 = vst.msk [vmem:[#allocation2 + $0x8] sm:$0xff] %vm297_vm4, %v5915_v4 }
0x2087   :  { %v7388_v2 = vpop.eup %7387 }
0x2088   :  { %v5897_v32 = vmul.f32 %v7388_v2, %v5865_v16  ;;  %v5916_v36 = vadd.f32 %v6287_v61, %v5906_v54 }
0x208a   :  { %v5907_v30 = vmul.f32 %v6286_v11, %v5897_v32  ;;  %5920 = vst.msk [vmem:[#allocation2 + $0x10] sm:$0xff] %vm297_vm4, %v5916_v36 }
0x208c   :  { %v5917_v5 = vadd.f32 %v6287_v61, %v5907_v30 }
0x208e   :  { %5921 = vst.msk [vmem:[#allocation2 + $0x18] sm:$0xff] %vm297_vm4, %v5917_v5 }
0x208f   :  { %7400 = shalt.err (!%p7397_p4)
}
0x2090   :  { %s7422_s0 = smov 128   ;;  %s7423_s7 = smov 8  }
0x2091   :  { %5933 = dma.vmem_to_hbm [thread:$0]  %s5928_s30, 512, %s9318_s20, [#allocation3], %s7422_s0, %s7422_s0, %s7423_s7  }
0x2092   :  { %7409 = dma.done.wait [#allocation3], 512  }
0x2093   :  { %7410 = vsyncadd [#allocation3], 4294966784 }
0x2094   :  { %5937 = vsyncpa [#allocation3], 1 }

</bundles_post_ra>
